<compile_context>
chip_gen: v6e
topology: v6e:2x2x1
jax: 0.10.0
libtpu: 0.0.40
codegen_flags: <defaults>
</compile_context>

<pallas_src>
import numpy as np
import jax
import jax.numpy as jnp
from jax.experimental import pallas as pl
from jax.experimental.pallas import tpu as pltpu

HIDDEN = 64      # hidden_nf
N_LAYERS = 4     # n_layers in EGNN_vel
D = 3            # spatial dim

# Rows of the packed per-layer bias/vector slab [L, NB, H]
(R_BE1, R_BE2, R_BC1, R_BV1, R_BN1, R_BN2,
 R_WE1R, R_WC2T, R_WV2T, R_BV2) = range(10)
NB = 10

# Slots of the packed per-layer square-weight slab [L, 4, H, H]
S_WE2, S_WC1, S_WN1A, S_WN2 = range(4)

WKEYS = ("we1s", "we1t", "we1r", "be1", "we2", "be2",
         "wc1", "bc1", "wc2",
         "wv1", "bv1", "wv2", "bv2",
         "wn1h", "wn1a", "bn1", "wn2", "bn2")


def _silu(x):
    return x * jax.nn.sigmoid(x)


# ----------------------------------------------------------------------------
# Fused Pallas kernel: embedding + 4 E_GCL_vel layers + final concat.
# One batch element per grid step; all weights resident in VMEM.
# ----------------------------------------------------------------------------
def decoder_kernel(inp_ref, emb_ref, w_hcat_ref, w_sq_ref, bias_ref, out_ref):
    H = HIDDEN
    inp = inp_ref[0]                                   # [N, 2D]
    n = inp.shape[0]
    pos = inp[:, 0:D]
    vel0 = inp[:, D:2 * D]

    # EGNN_vel.embedding: Linear(1, H) on ||vel|| -> elementwise since in_dim == 1
    hn = jnp.sqrt(jnp.sum(vel0 * vel0, axis=-1, keepdims=True))     # [N, 1]
    emb = emb_ref[...]                                              # [2, H]
    h = hn * emb[0:1, :] + emb[1:2, :]                              # [N, H]

    x = pos
    v = vel0

    # Hoisted: diagonal (self-edge) mask and folded 1/(N-1) for scatter_mean
    ii = jax.lax.broadcasted_iota(jnp.int32, (n, n), 0)
    jj = jax.lax.broadcasted_iota(jnp.int32, (n, n), 1)
    mask = (ii != jj).astype(jnp.float32)[:, :, None]               # [N, N, 1]
    mask_mean = mask * (1.0 / (n - 1))

    for l in range(N_LAYERS):                                       # static unroll
        bl = bias_ref[l]                                            # [NB, H]
        be1 = bl[R_BE1:R_BE1 + 1, :]
        be2 = bl[R_BE2:R_BE2 + 1, :]
        bc1 = bl[R_BC1:R_BC1 + 1, :]
        bv1 = bl[R_BV1:R_BV1 + 1, :]
        bn1 = bl[R_BN1:R_BN1 + 1, :]
        bn2 = bl[R_BN2:R_BN2 + 1, :]
        we1r = bl[R_WE1R:R_WE1R + 1, :]
        wc2t = bl[R_WC2T:R_WC2T + 1, :]
        wv2t = bl[R_WV2T:R_WV2T + 1, :]
        bv2 = bl[R_BV2:R_BV2 + 1, 0:1]                              # [1, 1]

        # coord2radial (send = i / axis 0, recv = j / axis 1)
        coord_diff = x[:, None, :] - x[None, :, :]                  # [N, N, D]
        radial = jnp.sum(coord_diff * coord_diff, axis=-1, keepdims=True)  # [N, N, 1]

        # One [N,H] x [H,4H] matmul for the four linears that consume h
        hc = jnp.dot(h, w_hcat_ref[l], preferred_element_type=jnp.float32)  # [N, 4H]
        s1 = hc[:, 0 * H:1 * H]          # edge_mlp L1, source part
        t1 = hc[:, 1 * H:2 * H]          # edge_mlp L1, target part
        v1pre = hc[:, 2 * H:3 * H] + bv1  # coord_mlp_vel L1
        n1h = hc[:, 3 * H:4 * H]         # node_mlp L1, h part

        # edge_mlp
        pre1 = s1[:, None, :] + t1[None, :, :] + radial * we1r + be1        # [N, N, H]
        e1 = _silu(pre1).reshape(n * n, H)
        e2 = _silu(jnp.dot(e1, w_sq_ref[l, S_WE2],
                           preferred_element_type=jnp.float32) + be2)       # [N*N, H]

        # coord_mlp -> per-edge scalar (VPU mult + lane reduce, no 1-lane matmul)
        c1 = _silu(jnp.dot(e2, w_sq_ref[l, S_WC1],
                           preferred_element_type=jnp.float32) + bc1)
        c2 = jnp.sum(c1 * wc2t, axis=-1, keepdims=True)                     # [N*N, 1]
        trans = jnp.clip(coord_diff * c2.reshape(n, n, 1), -100.0, 100.0)
        agg_coord = jnp.sum(trans * mask_mean, axis=0)                      # [N, D] scatter_mean

        # coord_mlp_vel
        v1 = _silu(v1pre)
        v2 = jnp.sum(v1 * wv2t, axis=-1, keepdims=True) + bv2               # [N, 1]

        new_vel = agg_coord + v2 * vel0          # coords_weight = 1.0; original vel each layer
        x = x + new_vel
        v = new_vel

        # node_mlp on [h | scatter_sum(e2)], recurrent residual
        agg_h = jnp.sum(e2.reshape(n, n, H) * mask, axis=0)                 # [N, H]
        n1 = _silu(n1h
                   + jnp.dot(agg_h, w_sq_ref[l, S_WN1A],
                             preferred_element_type=jnp.float32)
                   + bn1)
        h = jnp.dot(n1, w_sq_ref[l, S_WN2],
                    preferred_element_type=jnp.float32) + bn2 + h

    # Single HBM store per batch element
    out_ref[0] = jnp.concatenate([x, v], axis=-1)                           # [N, 2D]


# ----------------------------------------------------------------------------
# Weight packing + forward wrapper
# ----------------------------------------------------------------------------
def pack_weights(weights):
    H = HIDDEN
    emb = jnp.concatenate([weights["emb_w"], weights["emb_b"]], axis=0)     # [2, H]
    hcat, sq, bias = [], [], []
    for lw in weights["layers"]:
        hcat.append(jnp.concatenate(
            [lw["we1s"], lw["we1t"], lw["wv1"], lw["wn1h"]], axis=1))       # [H, 4H]
        sq.append(jnp.stack(
            [lw["we2"], lw["wc1"], lw["wn1a"], lw["wn2"]], axis=0))         # [4, H, H]
        rows = jnp.concatenate([
            lw["be1"], lw["be2"], lw["bc1"], lw["bv1"], lw["bn1"], lw["bn2"],
            lw["we1r"], lw["wc2"].T, lw["wv2"].T,
            jnp.broadcast_to(lw["bv2"], (1, H)),
        ], axis=0)                                                          # [NB, H]
        bias.append(rows)
    return {
        "emb": emb,                              # [2, H]
        "w_hcat": jnp.stack(hcat, axis=0),       # [L, H, 4H]
        "w_sq": jnp.stack(sq, axis=0),           # [L, 4, H, H]
        "bias": jnp.stack(bias, axis=0),         # [L, NB, H]
    }


def decoder_forward(inputs, packed):
    B, N, F = inputs.shape                       # F = 2*D

    def full_spec(a):
        # Whole array resident in VMEM; constant index_map => DMA'd once, revisited.
        return pl.BlockSpec(a.shape, lambda b, nd=a.ndim: (0,) * nd)

    io_spec = pl.BlockSpec((1, N, F), lambda b: (b, 0, 0))
    warrs = [packed["emb"], packed["w_hcat"], packed["w_sq"], packed["bias"]]

    return pl.pallas_call(
        decoder_kernel,
        out_shape=jax.ShapeDtypeStruct((B, N, F), jnp.float32),
        grid=(B,),
        in_specs=[io_spec] + [full_spec(a) for a in warrs],
        out_specs=io_spec,
        compiler_params=pltpu.CompilerParams(dimension_semantics=("parallel",)),
    )(inputs, *warrs)


# ----------------------------------------------------------------------------
# Deterministic synthetic parameters (shapes from the module __init__)
# ----------------------------------------------------------------------------
def init_weights(key):
    keys = iter(jax.random.split(key, 2 + N_LAYERS * len(WKEYS)))

    def mat(shape, scale):
        return jax.random.normal(next(keys), shape, jnp.float32) * scale

    H = HIDDEN
    weights = {"emb_w": mat((1, H), 1.0), "emb_b": mat((1, H), 0.1), "layers": []}
    s_edge = 1.0 / np.sqrt(2 * H + 1)
    s_h = 1.0 / np.sqrt(H)
    s_node = 1.0 / np.sqrt(2 * H)
    for _ in range(N_LAYERS):
        lw = {
            "we1s": mat((H, H), s_edge), "we1t": mat((H, H), s_edge),
            "we1r": mat((1, H), s_edge), "be1": mat((1, H), 0.05),
            "we2": mat((H, H), s_h), "be2": mat((1, H), 0.05),
            "wc1": mat((H, H), s_h), "bc1": mat((1, H), 0.05),
            "wc2": mat((H, 1), 0.001),              # xavier gain=0.001, no bias
            "wv1": mat((H, H), s_h), "bv1": mat((1, H), 0.05),
            "wv2": mat((H, 1), s_h), "bv2": mat((1, 1), 0.05),
            "wn1h": mat((H, H), s_node), "wn1a": mat((H, H), s_node),
            "bn1": mat((1, H), 0.05),
            "wn2": mat((H, H), s_h), "bn2": mat((1, H), 0.05),
        }
        weights["layers"].append(lw)
    return weights


# ----------------------------------------------------------------------------
# Pure-JAX reference (explicit edge list + segment ops, mirrors the PyTorch code)
# ----------------------------------------------------------------------------
def _egcl_reference(h, coord, vel, w, send, recv):
    n = h.shape[1]
    coord_diff = coord[:, send] - coord[:, recv]
    radial = jnp.sum(coord_diff ** 2, axis=-1, keepdims=True)
    we1 = jnp.concatenate([w["we1s"], w["we1t"], w["we1r"]], axis=0)
    edge_in = jnp.concatenate([h[:, send], h[:, recv], radial], axis=-1)
    e1 = _silu(edge_in @ we1 + w["be1"])
    e2 = _silu(e1 @ w["we2"] + w["be2"])
    c1 = _silu(e2 @ w["wc1"] + w["bc1"])
    c2 = c1 @ w["wc2"]
    trans = jnp.clip(coord_diff * c2, -100.0, 100.0)
    seg_sum = jax.vmap(lambda t: jax.ops.segment_sum(t, recv, num_segments=n))
    agg_c = seg_sum(trans) / (n - 1)                       # scatter_mean
    v1 = _silu(h @ w["wv1"] + w["bv1"])
    v2 = v1 @ w["wv2"] + w["bv2"]
    new_vel = agg_c + v2 * vel
    new_coord = coord + new_vel
    agg_h = seg_sum(e2)                                    # scatter_sum
    wn1 = jnp.concatenate([w["wn1h"], w["wn1a"]], axis=0)
    node_in = jnp.concatenate([h, agg_h], axis=-1)
    n1 = _silu(node_in @ wn1 + w["bn1"])
    n2 = n1 @ w["wn2"] + w["bn2"]
    return n2 + h, new_coord, new_vel


def decoder_reference(inputs, weights, send, recv):
    pos, vel = jnp.split(inputs, 2, axis=-1)
    hidden = jnp.linalg.norm(vel, axis=-1, keepdims=True)
    h = hidden @ weights["emb_w"] + weights["emb_b"]
    x = pos
    v = vel
    for lw in weights["layers"]:
        h, x, v = _egcl_reference(h, x, vel, lw, send, recv)
    return jnp.concatenate([x, v], axis=-1)


if __name__ == "__main__":
    # Decoder params: {'num_vars': 8, 'num_edge_types': 2, 'decoder_type': 'mlp'}
    # -> markov=True (no GRU path), attention/tanh/norm_diff disabled by defaults.
    B, N = 2, 8
    key = jax.random.PRNGKey(0)
    k_in, k_w = jax.random.split(key)
    inputs = jax.random.normal(k_in, (B, N, 2 * D), jnp.float32)   # [2, 8, 6]
    weights = init_weights(k_w)
    packed = pack_weights(weights)

    out = jax.block_until_ready(decoder_forward(inputs, packed))
    assert out.shape == (B, N, 2 * D)

    edges = np.ones((N, N)) - np.eye(N)
    send = jnp.asarray(np.where(edges)[0], dtype=jnp.int32)
    recv = jnp.asarray(np.where(edges)[1], dtype=jnp.int32)
    ref = jax.block_until_ready(decoder_reference(inputs, weights, send, recv))
    np.testing.assert_allclose(np.asarray(out), np.asarray(ref), rtol=2e-2, atol=2e-3)

    print("KERNEL_OK")
</pallas_src>

<mosaic_0001>
module attributes {stable_mosaic.version = 11 : i64} {
  func.func @decoder_kernel(%arg0: i32, %arg1: memref<1x8x6xf32, #tpu.memory_space<vmem>>, %arg2: memref<2x64xf32, #tpu.memory_space<vmem>>, %arg3: memref<4x64x256xf32, #tpu.memory_space<vmem>>, %arg4: memref<4x4x64x64xf32, #tpu.memory_space<vmem>>, %arg5: memref<4x10x64xf32, #tpu.memory_space<vmem>>, %arg6: memref<1x8x6xf32, #tpu.memory_space<vmem>>) attributes {dimension_semantics = [#tpu.dimension_semantics<parallel>], iteration_bounds = array<i64: 2>, scalar_prefetch = 0 : i64, scratch_operands = 0 : i64, tpu.core_type = #tpu.core_type<tc>, window_params = [{transform_indices = @transform_0, window_bounds = array<i64: 1, 8, 6>}, {pipeline_mode = #tpu.pipeline_mode<synchronous>, transform_indices = @transform_1, window_bounds = array<i64: 2, 64>}, {pipeline_mode = #tpu.pipeline_mode<synchronous>, transform_indices = @transform_2, window_bounds = array<i64: 4, 64, 256>}, {pipeline_mode = #tpu.pipeline_mode<synchronous>, transform_indices = @transform_3, window_bounds = array<i64: 4, 4, 64, 64>}, {pipeline_mode = #tpu.pipeline_mode<synchronous>, transform_indices = @transform_4, window_bounds = array<i64: 4, 10, 64>}, {transform_indices = @transform_5, window_bounds = array<i64: 1, 8, 6>}]} {
    %c0 = arith.constant 0 : index
    %c0_0 = arith.constant 0 : index
    %c0_1 = arith.constant 0 : index
    %0 = vector.load %arg1[%c0, %c0_0, %c0_1] : memref<1x8x6xf32, #tpu.memory_space<vmem>>, vector<1x8x6xf32>
    %1 = vector.shape_cast %0 : vector<1x8x6xf32> to vector<8x6xf32>
    %2 = vector.extract_strided_slice %1 {offsets = [0, 0], sizes = [8, 3], strides = [1, 1]} : vector<8x6xf32> to vector<8x3xf32>
    %3 = vector.extract_strided_slice %1 {offsets = [0, 3], sizes = [8, 3], strides = [1, 1]} : vector<8x6xf32> to vector<8x3xf32>
    %4 = arith.mulf %3, %3 : vector<8x3xf32>
    %cst = arith.constant dense<0.000000e+00> : vector<8xf32>
    %5 = vector.multi_reduction <add>, %4, %cst [1] : vector<8x3xf32> to vector<8xf32>
    %6 = vector.shape_cast %5 : vector<8xf32> to vector<8x1xf32>
    %7 = math.sqrt %6 : vector<8x1xf32>
    %c0_2 = arith.constant 0 : index
    %c0_3 = arith.constant 0 : index
    %8 = vector.load %arg2[%c0_2, %c0_3] : memref<2x64xf32, #tpu.memory_space<vmem>>, vector<2x64xf32>
    %9 = vector.extract_strided_slice %8 {offsets = [0, 0], sizes = [1, 64], strides = [1, 1]} : vector<2x64xf32> to vector<1x64xf32>
    %10 = vector.broadcast %7 : vector<8x1xf32> to vector<8x64xf32>
    %11 = vector.broadcast %9 : vector<1x64xf32> to vector<8x64xf32>
    %12 = arith.mulf %10, %11 : vector<8x64xf32>
    %13 = vector.extract_strided_slice %8 {offsets = [1, 0], sizes = [1, 64], strides = [1, 1]} : vector<2x64xf32> to vector<1x64xf32>
    %14 = vector.broadcast %13 : vector<1x64xf32> to vector<8x64xf32>
    %15 = arith.addf %12, %14 : vector<8x64xf32>
    %16 = tpu.iota {dimensions = array<i32: 0>} : vector<8x8xi32>
    %17 = tpu.iota {dimensions = array<i32: 1>} : vector<8x8xi32>
    %18 = arith.cmpi ne, %16, %17 : vector<8x8xi32>
    %19 = arith.extui %18 : vector<8x8xi1> to vector<8x8xi32>
    %20 = arith.sitofp %19 : vector<8x8xi32> to vector<8x8xf32>
    %21 = vector.shape_cast %20 : vector<8x8xf32> to vector<8x8x1xf32>
    %cst_4 = arith.constant 0.142857149 : f32
    %22 = vector.broadcast %cst_4 : f32 to vector<8x8x1xf32>
    %23 = arith.mulf %21, %22 : vector<8x8x1xf32>
    %c0_5 = arith.constant 0 : index
    %c0_6 = arith.constant 0 : index
    %c0_7 = arith.constant 0 : index
    %24 = vector.load %arg5[%c0_5, %c0_6, %c0_7] : memref<4x10x64xf32, #tpu.memory_space<vmem>>, vector<1x10x64xf32>
    %25 = vector.shape_cast %24 : vector<1x10x64xf32> to vector<10x64xf32>
    %26 = vector.extract_strided_slice %25 {offsets = [0, 0], sizes = [1, 64], strides = [1, 1]} : vector<10x64xf32> to vector<1x64xf32>
    %27 = vector.extract_strided_slice %25 {offsets = [1, 0], sizes = [1, 64], strides = [1, 1]} : vector<10x64xf32> to vector<1x64xf32>
    %28 = vector.extract_strided_slice %25 {offsets = [2, 0], sizes = [1, 64], strides = [1, 1]} : vector<10x64xf32> to vector<1x64xf32>
    %29 = vector.extract_strided_slice %25 {offsets = [3, 0], sizes = [1, 64], strides = [1, 1]} : vector<10x64xf32> to vector<1x64xf32>
    %30 = vector.extract_strided_slice %25 {offsets = [4, 0], sizes = [1, 64], strides = [1, 1]} : vector<10x64xf32> to vector<1x64xf32>
    %31 = vector.extract_strided_slice %25 {offsets = [5, 0], sizes = [1, 64], strides = [1, 1]} : vector<10x64xf32> to vector<1x64xf32>
    %32 = vector.extract_strided_slice %25 {offsets = [6, 0], sizes = [1, 64], strides = [1, 1]} : vector<10x64xf32> to vector<1x64xf32>
    %33 = vector.extract_strided_slice %25 {offsets = [7, 0], sizes = [1, 64], strides = [1, 1]} : vector<10x64xf32> to vector<1x64xf32>
    %34 = vector.extract_strided_slice %25 {offsets = [8, 0], sizes = [1, 64], strides = [1, 1]} : vector<10x64xf32> to vector<1x64xf32>
    %35 = vector.extract_strided_slice %25 {offsets = [9, 0], sizes = [1, 1], strides = [1, 1]} : vector<10x64xf32> to vector<1x1xf32>
    %36 = vector.shape_cast %2 : vector<8x3xf32> to vector<8x1x3xf32>
    %37 = vector.shape_cast %2 : vector<8x3xf32> to vector<1x8x3xf32>
    %38 = vector.broadcast %36 : vector<8x1x3xf32> to vector<8x8x3xf32>
    %39 = vector.broadcast %37 : vector<1x8x3xf32> to vector<8x8x3xf32>
    %40 = arith.subf %38, %39 : vector<8x8x3xf32>
    %41 = arith.mulf %40, %40 : vector<8x8x3xf32>
    %cst_8 = arith.constant dense<0.000000e+00> : vector<8x8xf32>
    %42 = vector.multi_reduction <add>, %41, %cst_8 [2] : vector<8x8x3xf32> to vector<8x8xf32>
    %43 = vector.shape_cast %42 : vector<8x8xf32> to vector<8x8x1xf32>
    %c0_9 = arith.constant 0 : index
    %c0_10 = arith.constant 0 : index
    %c0_11 = arith.constant 0 : index
    %44 = vector.load %arg3[%c0_9, %c0_10, %c0_11] : memref<4x64x256xf32, #tpu.memory_space<vmem>>, vector<1x64x256xf32>
    %45 = vector.shape_cast %44 : vector<1x64x256xf32> to vector<64x256xf32>
    %cst_12 = arith.constant dense<0.000000e+00> : vector<8x256xf32>
    %46 = tpu.matmul %15, %45, %cst_12 {dimension_numbers = #tpu.dot_dimension_numbers<[1], [0], [0], [1], [0, 0, 1, 1], [], []>} : vector<8x64xf32>, vector<64x256xf32>, vector<8x256xf32> -> vector<8x256xf32>
    %47 = vector.extract_strided_slice %46 {offsets = [0, 0], sizes = [8, 64], strides = [1, 1]} : vector<8x256xf32> to vector<8x64xf32>
    %48 = vector.extract_strided_slice %46 {offsets = [0, 64], sizes = [8, 64], strides = [1, 1]} : vector<8x256xf32> to vector<8x64xf32>
    %49 = vector.extract_strided_slice %46 {offsets = [0, 128], sizes = [8, 64], strides = [1, 1]} : vector<8x256xf32> to vector<8x64xf32>
    %50 = vector.broadcast %29 : vector<1x64xf32> to vector<8x64xf32>
    %51 = arith.addf %49, %50 : vector<8x64xf32>
    %52 = vector.extract_strided_slice %46 {offsets = [0, 192], sizes = [8, 64], strides = [1, 1]} : vector<8x256xf32> to vector<8x64xf32>
    %53 = vector.shape_cast %47 : vector<8x64xf32> to vector<8x1x64xf32>
    %54 = vector.shape_cast %48 : vector<8x64xf32> to vector<1x8x64xf32>
    %55 = vector.broadcast %53 : vector<8x1x64xf32> to vector<8x8x64xf32>
    %56 = vector.broadcast %54 : vector<1x8x64xf32> to vector<8x8x64xf32>
    %57 = arith.addf %55, %56 : vector<8x8x64xf32>
    %58 = vector.shape_cast %32 : vector<1x64xf32> to vector<1x1x64xf32>
    %59 = vector.broadcast %43 : vector<8x8x1xf32> to vector<8x8x64xf32>
    %60 = vector.broadcast %58 : vector<1x1x64xf32> to vector<8x8x64xf32>
    %61 = arith.mulf %59, %60 : vector<8x8x64xf32>
    %62 = arith.addf %57, %61 : vector<8x8x64xf32>
    %63 = vector.shape_cast %26 : vector<1x64xf32> to vector<1x1x64xf32>
    %64 = vector.broadcast %63 : vector<1x1x64xf32> to vector<8x8x64xf32>
    %65 = arith.addf %62, %64 : vector<8x8x64xf32>
    %66 = arith.negf %65 : vector<8x8x64xf32>
    %67 = math.exp %66 : vector<8x8x64xf32>
    %cst_13 = arith.constant 1.000000e+00 : f32
    %68 = vector.broadcast %cst_13 : f32 to vector<8x8x64xf32>
    %69 = arith.addf %68, %67 : vector<8x8x64xf32>
    %70 = arith.divf %68, %69 : vector<8x8x64xf32>
    %71 = arith.mulf %65, %70 : vector<8x8x64xf32>
    %72 = vector.shape_cast %71 : vector<8x8x64xf32> to vector<64x64xf32>
    %c0_14 = arith.constant 0 : index
    %c0_15 = arith.constant 0 : index
    %c0_16 = arith.constant 0 : index
    %c0_17 = arith.constant 0 : index
    %73 = vector.load %arg4[%c0_14, %c0_15, %c0_16, %c0_17] : memref<4x4x64x64xf32, #tpu.memory_space<vmem>>, vector<1x1x64x64xf32>
    %74 = vector.shape_cast %73 : vector<1x1x64x64xf32> to vector<64x64xf32>
    %cst_18 = arith.constant dense<0.000000e+00> : vector<64x64xf32>
    %75 = tpu.matmul %72, %74, %cst_18 {dimension_numbers = #tpu.dot_dimension_numbers<[1], [0], [0], [1], [0, 0, 1, 1], [], []>} : vector<64x64xf32>, vector<64x64xf32>, vector<64x64xf32> -> vector<64x64xf32>
    %76 = vector.broadcast %27 : vector<1x64xf32> to vector<64x64xf32>
    %77 = arith.addf %75, %76 : vector<64x64xf32>
    %78 = arith.negf %77 : vector<64x64xf32>
    %79 = math.exp %78 : vector<64x64xf32>
    %cst_19 = arith.constant 1.000000e+00 : f32
    %80 = vector.broadcast %cst_19 : f32 to vector<64x64xf32>
    %81 = arith.addf %80, %79 : vector<64x64xf32>
    %82 = arith.divf %80, %81 : vector<64x64xf32>
    %83 = arith.mulf %77, %82 : vector<64x64xf32>
    %c0_20 = arith.constant 0 : index
    %c1 = arith.constant 1 : index
    %c0_21 = arith.constant 0 : index
    %c0_22 = arith.constant 0 : index
    %84 = vector.load %arg4[%c0_20, %c1, %c0_21, %c0_22] : memref<4x4x64x64xf32, #tpu.memory_space<vmem>>, vector<1x1x64x64xf32>
    %85 = vector.shape_cast %84 : vector<1x1x64x64xf32> to vector<64x64xf32>
    %cst_23 = arith.constant dense<0.000000e+00> : vector<64x64xf32>
    %86 = tpu.matmul %83, %85, %cst_23 {dimension_numbers = #tpu.dot_dimension_numbers<[1], [0], [0], [1], [0, 0, 1, 1], [], []>} : vector<64x64xf32>, vector<64x64xf32>, vector<64x64xf32> -> vector<64x64xf32>
    %87 = vector.broadcast %28 : vector<1x64xf32> to vector<64x64xf32>
    %88 = arith.addf %86, %87 : vector<64x64xf32>
    %89 = arith.negf %88 : vector<64x64xf32>
    %90 = math.exp %89 : vector<64x64xf32>
    %cst_24 = arith.constant 1.000000e+00 : f32
    %91 = vector.broadcast %cst_24 : f32 to vector<64x64xf32>
    %92 = arith.addf %91, %90 : vector<64x64xf32>
    %93 = arith.divf %91, %92 : vector<64x64xf32>
    %94 = arith.mulf %88, %93 : vector<64x64xf32>
    %95 = vector.broadcast %33 : vector<1x64xf32> to vector<64x64xf32>
    %96 = arith.mulf %94, %95 : vector<64x64xf32>
    %cst_25 = arith.constant dense<0.000000e+00> : vector<64xf32>
    %97 = vector.multi_reduction <add>, %96, %cst_25 [1] : vector<64x64xf32> to vector<64xf32>
    %98 = vector.shape_cast %97 : vector<64xf32> to vector<64x1xf32>
    %99 = vector.shape_cast %98 : vector<64x1xf32> to vector<8x8x1xf32>
    %100 = vector.broadcast %99 : vector<8x8x1xf32> to vector<8x8x3xf32>
    %101 = arith.mulf %40, %100 : vector<8x8x3xf32>
    %cst_26 = arith.constant -1.000000e+02 : f32
    %cst_27 = arith.constant 1.000000e+02 : f32
    %102 = vector.broadcast %cst_26 : f32 to vector<8x8x3xf32>
    %103 = arith.maximumf %102, %101 : vector<8x8x3xf32>
    %104 = vector.broadcast %cst_27 : f32 to vector<8x8x3xf32>
    %105 = arith.minimumf %104, %103 : vector<8x8x3xf32>
    %106 = vector.broadcast %23 : vector<8x8x1xf32> to vector<8x8x3xf32>
    %107 = arith.mulf %105, %106 : vector<8x8x3xf32>
    %cst_28 = arith.constant dense<0.000000e+00> : vector<8x3xf32>
    %108 = vector.multi_reduction <add>, %107, %cst_28 [0] : vector<8x8x3xf32> to vector<8x3xf32>
    %109 = arith.negf %51 : vector<8x64xf32>
    %110 = math.exp %109 : vector<8x64xf32>
    %cst_29 = arith.constant 1.000000e+00 : f32
    %111 = vector.broadcast %cst_29 : f32 to vector<8x64xf32>
    %112 = arith.addf %111, %110 : vector<8x64xf32>
    %113 = arith.divf %111, %112 : vector<8x64xf32>
    %114 = arith.mulf %51, %113 : vector<8x64xf32>
    %115 = vector.broadcast %34 : vector<1x64xf32> to vector<8x64xf32>
    %116 = arith.mulf %114, %115 : vector<8x64xf32>
    %cst_30 = arith.constant dense<0.000000e+00> : vector<8xf32>
    %117 = vector.multi_reduction <add>, %116, %cst_30 [1] : vector<8x64xf32> to vector<8xf32>
    %118 = vector.shape_cast %117 : vector<8xf32> to vector<8x1xf32>
    %119 = vector.broadcast %35 : vector<1x1xf32> to vector<8x1xf32>
    %120 = arith.addf %118, %119 : vector<8x1xf32>
    %121 = vector.broadcast %120 : vector<8x1xf32> to vector<8x3xf32>
    %122 = arith.mulf %121, %3 : vector<8x3xf32>
    %123 = arith.addf %108, %122 : vector<8x3xf32>
    %124 = arith.addf %2, %123 : vector<8x3xf32>
    %125 = vector.shape_cast %83 : vector<64x64xf32> to vector<8x8x64xf32>
    %126 = vector.broadcast %21 : vector<8x8x1xf32> to vector<8x8x64xf32>
    %127 = arith.mulf %125, %126 : vector<8x8x64xf32>
    %cst_31 = arith.constant dense<0.000000e+00> : vector<8x64xf32>
    %128 = vector.multi_reduction <add>, %127, %cst_31 [0] : vector<8x8x64xf32> to vector<8x64xf32>
    %c0_32 = arith.constant 0 : index
    %c2 = arith.constant 2 : index
    %c0_33 = arith.constant 0 : index
    %c0_34 = arith.constant 0 : index
    %129 = vector.load %arg4[%c0_32, %c2, %c0_33, %c0_34] : memref<4x4x64x64xf32, #tpu.memory_space<vmem>>, vector<1x1x64x64xf32>
    %130 = vector.shape_cast %129 : vector<1x1x64x64xf32> to vector<64x64xf32>
    %cst_35 = arith.constant dense<0.000000e+00> : vector<8x64xf32>
    %131 = tpu.matmul %128, %130, %cst_35 {dimension_numbers = #tpu.dot_dimension_numbers<[1], [0], [0], [1], [0, 0, 1, 1], [], []>} : vector<8x64xf32>, vector<64x64xf32>, vector<8x64xf32> -> vector<8x64xf32>
    %132 = arith.addf %52, %131 : vector<8x64xf32>
    %133 = vector.broadcast %30 : vector<1x64xf32> to vector<8x64xf32>
    %134 = arith.addf %132, %133 : vector<8x64xf32>
    %135 = arith.negf %134 : vector<8x64xf32>
    %136 = math.exp %135 : vector<8x64xf32>
    %cst_36 = arith.constant 1.000000e+00 : f32
    %137 = vector.broadcast %cst_36 : f32 to vector<8x64xf32>
    %138 = arith.addf %137, %136 : vector<8x64xf32>
    %139 = arith.divf %137, %138 : vector<8x64xf32>
    %140 = arith.mulf %134, %139 : vector<8x64xf32>
    %c0_37 = arith.constant 0 : index
    %c3 = arith.constant 3 : index
    %c0_38 = arith.constant 0 : index
    %c0_39 = arith.constant 0 : index
    %141 = vector.load %arg4[%c0_37, %c3, %c0_38, %c0_39] : memref<4x4x64x64xf32, #tpu.memory_space<vmem>>, vector<1x1x64x64xf32>
    %142 = vector.shape_cast %141 : vector<1x1x64x64xf32> to vector<64x64xf32>
    %cst_40 = arith.constant dense<0.000000e+00> : vector<8x64xf32>
    %143 = tpu.matmul %140, %142, %cst_40 {dimension_numbers = #tpu.dot_dimension_numbers<[1], [0], [0], [1], [0, 0, 1, 1], [], []>} : vector<8x64xf32>, vector<64x64xf32>, vector<8x64xf32> -> vector<8x64xf32>
    %144 = vector.broadcast %31 : vector<1x64xf32> to vector<8x64xf32>
    %145 = arith.addf %143, %144 : vector<8x64xf32>
    %146 = arith.addf %145, %15 : vector<8x64xf32>
    %c1_41 = arith.constant 1 : index
    %c0_42 = arith.constant 0 : index
    %c0_43 = arith.constant 0 : index
    %147 = vector.load %arg5[%c1_41, %c0_42, %c0_43] : memref<4x10x64xf32, #tpu.memory_space<vmem>>, vector<1x10x64xf32>
    %148 = vector.shape_cast %147 : vector<1x10x64xf32> to vector<10x64xf32>
    %149 = vector.extract_strided_slice %148 {offsets = [0, 0], sizes = [1, 64], strides = [1, 1]} : vector<10x64xf32> to vector<1x64xf32>
    %150 = vector.extract_strided_slice %148 {offsets = [1, 0], sizes = [1, 64], strides = [1, 1]} : vector<10x64xf32> to vector<1x64xf32>
    %151 = vector.extract_strided_slice %148 {offsets = [2, 0], sizes = [1, 64], strides = [1, 1]} : vector<10x64xf32> to vector<1x64xf32>
    %152 = vector.extract_strided_slice %148 {offsets = [3, 0], sizes = [1, 64], strides = [1, 1]} : vector<10x64xf32> to vector<1x64xf32>
    %153 = vector.extract_strided_slice %148 {offsets = [4, 0], sizes = [1, 64], strides = [1, 1]} : vector<10x64xf32> to vector<1x64xf32>
    %154 = vector.extract_strided_slice %148 {offsets = [5, 0], sizes = [1, 64], strides = [1, 1]} : vector<10x64xf32> to vector<1x64xf32>
    %155 = vector.extract_strided_slice %148 {offsets = [6, 0], sizes = [1, 64], strides = [1, 1]} : vector<10x64xf32> to vector<1x64xf32>
    %156 = vector.extract_strided_slice %148 {offsets = [7, 0], sizes = [1, 64], strides = [1, 1]} : vector<10x64xf32> to vector<1x64xf32>
    %157 = vector.extract_strided_slice %148 {offsets = [8, 0], sizes = [1, 64], strides = [1, 1]} : vector<10x64xf32> to vector<1x64xf32>
    %158 = vector.extract_strided_slice %148 {offsets = [9, 0], sizes = [1, 1], strides = [1, 1]} : vector<10x64xf32> to vector<1x1xf32>
    %159 = vector.shape_cast %124 : vector<8x3xf32> to vector<8x1x3xf32>
    %160 = vector.shape_cast %124 : vector<8x3xf32> to vector<1x8x3xf32>
    %161 = vector.broadcast %159 : vector<8x1x3xf32> to vector<8x8x3xf32>
    %162 = vector.broadcast %160 : vector<1x8x3xf32> to vector<8x8x3xf32>
    %163 = arith.subf %161, %162 : vector<8x8x3xf32>
    %164 = arith.mulf %163, %163 : vector<8x8x3xf32>
    %cst_44 = arith.constant dense<0.000000e+00> : vector<8x8xf32>
    %165 = vector.multi_reduction <add>, %164, %cst_44 [2] : vector<8x8x3xf32> to vector<8x8xf32>
    %166 = vector.shape_cast %165 : vector<8x8xf32> to vector<8x8x1xf32>
    %c1_45 = arith.constant 1 : index
    %c0_46 = arith.constant 0 : index
    %c0_47 = arith.constant 0 : index
    %167 = vector.load %arg3[%c1_45, %c0_46, %c0_47] : memref<4x64x256xf32, #tpu.memory_space<vmem>>, vector<1x64x256xf32>
    %168 = vector.shape_cast %167 : vector<1x64x256xf32> to vector<64x256xf32>
    %cst_48 = arith.constant dense<0.000000e+00> : vector<8x256xf32>
    %169 = tpu.matmul %146, %168, %cst_48 {dimension_numbers = #tpu.dot_dimension_numbers<[1], [0], [0], [1], [0, 0, 1, 1], [], []>} : vector<8x64xf32>, vector<64x256xf32>, vector<8x256xf32> -> vector<8x256xf32>
    %170 = vector.extract_strided_slice %169 {offsets = [0, 0], sizes = [8, 64], strides = [1, 1]} : vector<8x256xf32> to vector<8x64xf32>
    %171 = vector.extract_strided_slice %169 {offsets = [0, 64], sizes = [8, 64], strides = [1, 1]} : vector<8x256xf32> to vector<8x64xf32>
    %172 = vector.extract_strided_slice %169 {offsets = [0, 128], sizes = [8, 64], strides = [1, 1]} : vector<8x256xf32> to vector<8x64xf32>
    %173 = vector.broadcast %152 : vector<1x64xf32> to vector<8x64xf32>
    %174 = arith.addf %172, %173 : vector<8x64xf32>
    %175 = vector.extract_strided_slice %169 {offsets = [0, 192], sizes = [8, 64], strides = [1, 1]} : vector<8x256xf32> to vector<8x64xf32>
    %176 = vector.shape_cast %170 : vector<8x64xf32> to vector<8x1x64xf32>
    %177 = vector.shape_cast %171 : vector<8x64xf32> to vector<1x8x64xf32>
    %178 = vector.broadcast %176 : vector<8x1x64xf32> to vector<8x8x64xf32>
    %179 = vector.broadcast %177 : vector<1x8x64xf32> to vector<8x8x64xf32>
    %180 = arith.addf %178, %179 : vector<8x8x64xf32>
    %181 = vector.shape_cast %155 : vector<1x64xf32> to vector<1x1x64xf32>
    %182 = vector.broadcast %166 : vector<8x8x1xf32> to vector<8x8x64xf32>
    %183 = vector.broadcast %181 : vector<1x1x64xf32> to vector<8x8x64xf32>
    %184 = arith.mulf %182, %183 : vector<8x8x64xf32>
    %185 = arith.addf %180, %184 : vector<8x8x64xf32>
    %186 = vector.shape_cast %149 : vector<1x64xf32> to vector<1x1x64xf32>
    %187 = vector.broadcast %186 : vector<1x1x64xf32> to vector<8x8x64xf32>
    %188 = arith.addf %185, %187 : vector<8x8x64xf32>
    %189 = arith.negf %188 : vector<8x8x64xf32>
    %190 = math.exp %189 : vector<8x8x64xf32>
    %cst_49 = arith.constant 1.000000e+00 : f32
    %191 = vector.broadcast %cst_49 : f32 to vector<8x8x64xf32>
    %192 = arith.addf %191, %190 : vector<8x8x64xf32>
    %193 = arith.divf %191, %192 : vector<8x8x64xf32>
    %194 = arith.mulf %188, %193 : vector<8x8x64xf32>
    %195 = vector.shape_cast %194 : vector<8x8x64xf32> to vector<64x64xf32>
    %c1_50 = arith.constant 1 : index
    %c0_51 = arith.constant 0 : index
    %c0_52 = arith.constant 0 : index
    %c0_53 = arith.constant 0 : index
    %196 = vector.load %arg4[%c1_50, %c0_51, %c0_52, %c0_53] : memref<4x4x64x64xf32, #tpu.memory_space<vmem>>, vector<1x1x64x64xf32>
    %197 = vector.shape_cast %196 : vector<1x1x64x64xf32> to vector<64x64xf32>
    %cst_54 = arith.constant dense<0.000000e+00> : vector<64x64xf32>
    %198 = tpu.matmul %195, %197, %cst_54 {dimension_numbers = #tpu.dot_dimension_numbers<[1], [0], [0], [1], [0, 0, 1, 1], [], []>} : vector<64x64xf32>, vector<64x64xf32>, vector<64x64xf32> -> vector<64x64xf32>
    %199 = vector.broadcast %150 : vector<1x64xf32> to vector<64x64xf32>
    %200 = arith.addf %198, %199 : vector<64x64xf32>
    %201 = arith.negf %200 : vector<64x64xf32>
    %202 = math.exp %201 : vector<64x64xf32>
    %cst_55 = arith.constant 1.000000e+00 : f32
    %203 = vector.broadcast %cst_55 : f32 to vector<64x64xf32>
    %204 = arith.addf %203, %202 : vector<64x64xf32>
    %205 = arith.divf %203, %204 : vector<64x64xf32>
    %206 = arith.mulf %200, %205 : vector<64x64xf32>
    %c1_56 = arith.constant 1 : index
    %c1_57 = arith.constant 1 : index
    %c0_58 = arith.constant 0 : index
    %c0_59 = arith.constant 0 : index
    %207 = vector.load %arg4[%c1_56, %c1_57, %c0_58, %c0_59] : memref<4x4x64x64xf32, #tpu.memory_space<vmem>>, vector<1x1x64x64xf32>
    %208 = vector.shape_cast %207 : vector<1x1x64x64xf32> to vector<64x64xf32>
    %cst_60 = arith.constant dense<0.000000e+00> : vector<64x64xf32>
    %209 = tpu.matmul %206, %208, %cst_60 {dimension_numbers = #tpu.dot_dimension_numbers<[1], [0], [0], [1], [0, 0, 1, 1], [], []>} : vector<64x64xf32>, vector<64x64xf32>, vector<64x64xf32> -> vector<64x64xf32>
    %210 = vector.broadcast %151 : vector<1x64xf32> to vector<64x64xf32>
    %211 = arith.addf %209, %210 : vector<64x64xf32>
    %212 = arith.negf %211 : vector<64x64xf32>
    %213 = math.exp %212 : vector<64x64xf32>
    %cst_61 = arith.constant 1.000000e+00 : f32
    %214 = vector.broadcast %cst_61 : f32 to vector<64x64xf32>
    %215 = arith.addf %214, %213 : vector<64x64xf32>
    %216 = arith.divf %214, %215 : vector<64x64xf32>
    %217 = arith.mulf %211, %216 : vector<64x64xf32>
    %218 = vector.broadcast %156 : vector<1x64xf32> to vector<64x64xf32>
    %219 = arith.mulf %217, %218 : vector<64x64xf32>
    %cst_62 = arith.constant dense<0.000000e+00> : vector<64xf32>
    %220 = vector.multi_reduction <add>, %219, %cst_62 [1] : vector<64x64xf32> to vector<64xf32>
    %221 = vector.shape_cast %220 : vector<64xf32> to vector<64x1xf32>
    %222 = vector.shape_cast %221 : vector<64x1xf32> to vector<8x8x1xf32>
    %223 = vector.broadcast %222 : vector<8x8x1xf32> to vector<8x8x3xf32>
    %224 = arith.mulf %163, %223 : vector<8x8x3xf32>
    %cst_63 = arith.constant -1.000000e+02 : f32
    %cst_64 = arith.constant 1.000000e+02 : f32
    %225 = vector.broadcast %cst_63 : f32 to vector<8x8x3xf32>
    %226 = arith.maximumf %225, %224 : vector<8x8x3xf32>
    %227 = vector.broadcast %cst_64 : f32 to vector<8x8x3xf32>
    %228 = arith.minimumf %227, %226 : vector<8x8x3xf32>
    %229 = vector.broadcast %23 : vector<8x8x1xf32> to vector<8x8x3xf32>
    %230 = arith.mulf %228, %229 : vector<8x8x3xf32>
    %cst_65 = arith.constant dense<0.000000e+00> : vector<8x3xf32>
    %231 = vector.multi_reduction <add>, %230, %cst_65 [0] : vector<8x8x3xf32> to vector<8x3xf32>
    %232 = arith.negf %174 : vector<8x64xf32>
    %233 = math.exp %232 : vector<8x64xf32>
    %cst_66 = arith.constant 1.000000e+00 : f32
    %234 = vector.broadcast %cst_66 : f32 to vector<8x64xf32>
    %235 = arith.addf %234, %233 : vector<8x64xf32>
    %236 = arith.divf %234, %235 : vector<8x64xf32>
    %237 = arith.mulf %174, %236 : vector<8x64xf32>
    %238 = vector.broadcast %157 : vector<1x64xf32> to vector<8x64xf32>
    %239 = arith.mulf %237, %238 : vector<8x64xf32>
    %cst_67 = arith.constant dense<0.000000e+00> : vector<8xf32>
    %240 = vector.multi_reduction <add>, %239, %cst_67 [1] : vector<8x64xf32> to vector<8xf32>
    %241 = vector.shape_cast %240 : vector<8xf32> to vector<8x1xf32>
    %242 = vector.broadcast %158 : vector<1x1xf32> to vector<8x1xf32>
    %243 = arith.addf %241, %242 : vector<8x1xf32>
    %244 = vector.broadcast %243 : vector<8x1xf32> to vector<8x3xf32>
    %245 = arith.mulf %244, %3 : vector<8x3xf32>
    %246 = arith.addf %231, %245 : vector<8x3xf32>
    %247 = arith.addf %124, %246 : vector<8x3xf32>
    %248 = vector.shape_cast %206 : vector<64x64xf32> to vector<8x8x64xf32>
    %249 = vector.broadcast %21 : vector<8x8x1xf32> to vector<8x8x64xf32>
    %250 = arith.mulf %248, %249 : vector<8x8x64xf32>
    %cst_68 = arith.constant dense<0.000000e+00> : vector<8x64xf32>
    %251 = vector.multi_reduction <add>, %250, %cst_68 [0] : vector<8x8x64xf32> to vector<8x64xf32>
    %c1_69 = arith.constant 1 : index
    %c2_70 = arith.constant 2 : index
    %c0_71 = arith.constant 0 : index
    %c0_72 = arith.constant 0 : index
    %252 = vector.load %arg4[%c1_69, %c2_70, %c0_71, %c0_72] : memref<4x4x64x64xf32, #tpu.memory_space<vmem>>, vector<1x1x64x64xf32>
    %253 = vector.shape_cast %252 : vector<1x1x64x64xf32> to vector<64x64xf32>
    %cst_73 = arith.constant dense<0.000000e+00> : vector<8x64xf32>
    %254 = tpu.matmul %251, %253, %cst_73 {dimension_numbers = #tpu.dot_dimension_numbers<[1], [0], [0], [1], [0, 0, 1, 1], [], []>} : vector<8x64xf32>, vector<64x64xf32>, vector<8x64xf32> -> vector<8x64xf32>
    %255 = arith.addf %175, %254 : vector<8x64xf32>
    %256 = vector.broadcast %153 : vector<1x64xf32> to vector<8x64xf32>
    %257 = arith.addf %255, %256 : vector<8x64xf32>
    %258 = arith.negf %257 : vector<8x64xf32>
    %259 = math.exp %258 : vector<8x64xf32>
    %cst_74 = arith.constant 1.000000e+00 : f32
    %260 = vector.broadcast %cst_74 : f32 to vector<8x64xf32>
    %261 = arith.addf %260, %259 : vector<8x64xf32>
    %262 = arith.divf %260, %261 : vector<8x64xf32>
    %263 = arith.mulf %257, %262 : vector<8x64xf32>
    %c1_75 = arith.constant 1 : index
    %c3_76 = arith.constant 3 : index
    %c0_77 = arith.constant 0 : index
    %c0_78 = arith.constant 0 : index
    %264 = vector.load %arg4[%c1_75, %c3_76, %c0_77, %c0_78] : memref<4x4x64x64xf32, #tpu.memory_space<vmem>>, vector<1x1x64x64xf32>
    %265 = vector.shape_cast %264 : vector<1x1x64x64xf32> to vector<64x64xf32>
    %cst_79 = arith.constant dense<0.000000e+00> : vector<8x64xf32>
    %266 = tpu.matmul %263, %265, %cst_79 {dimension_numbers = #tpu.dot_dimension_numbers<[1], [0], [0], [1], [0, 0, 1, 1], [], []>} : vector<8x64xf32>, vector<64x64xf32>, vector<8x64xf32> -> vector<8x64xf32>
    %267 = vector.broadcast %154 : vector<1x64xf32> to vector<8x64xf32>
    %268 = arith.addf %266, %267 : vector<8x64xf32>
    %269 = arith.addf %268, %146 : vector<8x64xf32>
    %c2_80 = arith.constant 2 : index
    %c0_81 = arith.constant 0 : index
    %c0_82 = arith.constant 0 : index
    %270 = vector.load %arg5[%c2_80, %c0_81, %c0_82] : memref<4x10x64xf32, #tpu.memory_space<vmem>>, vector<1x10x64xf32>
    %271 = vector.shape_cast %270 : vector<1x10x64xf32> to vector<10x64xf32>
    %272 = vector.extract_strided_slice %271 {offsets = [0, 0], sizes = [1, 64], strides = [1, 1]} : vector<10x64xf32> to vector<1x64xf32>
    %273 = vector.extract_strided_slice %271 {offsets = [1, 0], sizes = [1, 64], strides = [1, 1]} : vector<10x64xf32> to vector<1x64xf32>
    %274 = vector.extract_strided_slice %271 {offsets = [2, 0], sizes = [1, 64], strides = [1, 1]} : vector<10x64xf32> to vector<1x64xf32>
    %275 = vector.extract_strided_slice %271 {offsets = [3, 0], sizes = [1, 64], strides = [1, 1]} : vector<10x64xf32> to vector<1x64xf32>
    %276 = vector.extract_strided_slice %271 {offsets = [4, 0], sizes = [1, 64], strides = [1, 1]} : vector<10x64xf32> to vector<1x64xf32>
    %277 = vector.extract_strided_slice %271 {offsets = [5, 0], sizes = [1, 64], strides = [1, 1]} : vector<10x64xf32> to vector<1x64xf32>
    %278 = vector.extract_strided_slice %271 {offsets = [6, 0], sizes = [1, 64], strides = [1, 1]} : vector<10x64xf32> to vector<1x64xf32>
    %279 = vector.extract_strided_slice %271 {offsets = [7, 0], sizes = [1, 64], strides = [1, 1]} : vector<10x64xf32> to vector<1x64xf32>
    %280 = vector.extract_strided_slice %271 {offsets = [8, 0], sizes = [1, 64], strides = [1, 1]} : vector<10x64xf32> to vector<1x64xf32>
    %281 = vector.extract_strided_slice %271 {offsets = [9, 0], sizes = [1, 1], strides = [1, 1]} : vector<10x64xf32> to vector<1x1xf32>
    %282 = vector.shape_cast %247 : vector<8x3xf32> to vector<8x1x3xf32>
    %283 = vector.shape_cast %247 : vector<8x3xf32> to vector<1x8x3xf32>
    %284 = vector.broadcast %282 : vector<8x1x3xf32> to vector<8x8x3xf32>
    %285 = vector.broadcast %283 : vector<1x8x3xf32> to vector<8x8x3xf32>
    %286 = arith.subf %284, %285 : vector<8x8x3xf32>
    %287 = arith.mulf %286, %286 : vector<8x8x3xf32>
    %cst_83 = arith.constant dense<0.000000e+00> : vector<8x8xf32>
    %288 = vector.multi_reduction <add>, %287, %cst_83 [2] : vector<8x8x3xf32> to vector<8x8xf32>
    %289 = vector.shape_cast %288 : vector<8x8xf32> to vector<8x8x1xf32>
    %c2_84 = arith.constant 2 : index
    %c0_85 = arith.constant 0 : index
    %c0_86 = arith.constant 0 : index
    %290 = vector.load %arg3[%c2_84, %c0_85, %c0_86] : memref<4x64x256xf32, #tpu.memory_space<vmem>>, vector<1x64x256xf32>
    %291 = vector.shape_cast %290 : vector<1x64x256xf32> to vector<64x256xf32>
    %cst_87 = arith.constant dense<0.000000e+00> : vector<8x256xf32>
    %292 = tpu.matmul %269, %291, %cst_87 {dimension_numbers = #tpu.dot_dimension_numbers<[1], [0], [0], [1], [0, 0, 1, 1], [], []>} : vector<8x64xf32>, vector<64x256xf32>, vector<8x256xf32> -> vector<8x256xf32>
    %293 = vector.extract_strided_slice %292 {offsets = [0, 0], sizes = [8, 64], strides = [1, 1]} : vector<8x256xf32> to vector<8x64xf32>
    %294 = vector.extract_strided_slice %292 {offsets = [0, 64], sizes = [8, 64], strides = [1, 1]} : vector<8x256xf32> to vector<8x64xf32>
    %295 = vector.extract_strided_slice %292 {offsets = [0, 128], sizes = [8, 64], strides = [1, 1]} : vector<8x256xf32> to vector<8x64xf32>
    %296 = vector.broadcast %275 : vector<1x64xf32> to vector<8x64xf32>
    %297 = arith.addf %295, %296 : vector<8x64xf32>
    %298 = vector.extract_strided_slice %292 {offsets = [0, 192], sizes = [8, 64], strides = [1, 1]} : vector<8x256xf32> to vector<8x64xf32>
    %299 = vector.shape_cast %293 : vector<8x64xf32> to vector<8x1x64xf32>
    %300 = vector.shape_cast %294 : vector<8x64xf32> to vector<1x8x64xf32>
    %301 = vector.broadcast %299 : vector<8x1x64xf32> to vector<8x8x64xf32>
    %302 = vector.broadcast %300 : vector<1x8x64xf32> to vector<8x8x64xf32>
    %303 = arith.addf %301, %302 : vector<8x8x64xf32>
    %304 = vector.shape_cast %278 : vector<1x64xf32> to vector<1x1x64xf32>
    %305 = vector.broadcast %289 : vector<8x8x1xf32> to vector<8x8x64xf32>
    %306 = vector.broadcast %304 : vector<1x1x64xf32> to vector<8x8x64xf32>
    %307 = arith.mulf %305, %306 : vector<8x8x64xf32>
    %308 = arith.addf %303, %307 : vector<8x8x64xf32>
    %309 = vector.shape_cast %272 : vector<1x64xf32> to vector<1x1x64xf32>
    %310 = vector.broadcast %309 : vector<1x1x64xf32> to vector<8x8x64xf32>
    %311 = arith.addf %308, %310 : vector<8x8x64xf32>
    %312 = arith.negf %311 : vector<8x8x64xf32>
    %313 = math.exp %312 : vector<8x8x64xf32>
    %cst_88 = arith.constant 1.000000e+00 : f32
    %314 = vector.broadcast %cst_88 : f32 to vector<8x8x64xf32>
    %315 = arith.addf %314, %313 : vector<8x8x64xf32>
    %316 = arith.divf %314, %315 : vector<8x8x64xf32>
    %317 = arith.mulf %311, %316 : vector<8x8x64xf32>
    %318 = vector.shape_cast %317 : vector<8x8x64xf32> to vector<64x64xf32>
    %c2_89 = arith.constant 2 : index
    %c0_90 = arith.constant 0 : index
    %c0_91 = arith.constant 0 : index
    %c0_92 = arith.constant 0 : index
    %319 = vector.load %arg4[%c2_89, %c0_90, %c0_91, %c0_92] : memref<4x4x64x64xf32, #tpu.memory_space<vmem>>, vector<1x1x64x64xf32>
    %320 = vector.shape_cast %319 : vector<1x1x64x64xf32> to vector<64x64xf32>
    %cst_93 = arith.constant dense<0.000000e+00> : vector<64x64xf32>
    %321 = tpu.matmul %318, %320, %cst_93 {dimension_numbers = #tpu.dot_dimension_numbers<[1], [0], [0], [1], [0, 0, 1, 1], [], []>} : vector<64x64xf32>, vector<64x64xf32>, vector<64x64xf32> -> vector<64x64xf32>
    %322 = vector.broadcast %273 : vector<1x64xf32> to vector<64x64xf32>
    %323 = arith.addf %321, %322 : vector<64x64xf32>
    %324 = arith.negf %323 : vector<64x64xf32>
    %325 = math.exp %324 : vector<64x64xf32>
    %cst_94 = arith.constant 1.000000e+00 : f32
    %326 = vector.broadcast %cst_94 : f32 to vector<64x64xf32>
    %327 = arith.addf %326, %325 : vector<64x64xf32>
    %328 = arith.divf %326, %327 : vector<64x64xf32>
    %329 = arith.mulf %323, %328 : vector<64x64xf32>
    %c2_95 = arith.constant 2 : index
    %c1_96 = arith.constant 1 : index
    %c0_97 = arith.constant 0 : index
    %c0_98 = arith.constant 0 : index
    %330 = vector.load %arg4[%c2_95, %c1_96, %c0_97, %c0_98] : memref<4x4x64x64xf32, #tpu.memory_space<vmem>>, vector<1x1x64x64xf32>
    %331 = vector.shape_cast %330 : vector<1x1x64x64xf32> to vector<64x64xf32>
    %cst_99 = arith.constant dense<0.000000e+00> : vector<64x64xf32>
    %332 = tpu.matmul %329, %331, %cst_99 {dimension_numbers = #tpu.dot_dimension_numbers<[1], [0], [0], [1], [0, 0, 1, 1], [], []>} : vector<64x64xf32>, vector<64x64xf32>, vector<64x64xf32> -> vector<64x64xf32>
    %333 = vector.broadcast %274 : vector<1x64xf32> to vector<64x64xf32>
    %334 = arith.addf %332, %333 : vector<64x64xf32>
    %335 = arith.negf %334 : vector<64x64xf32>
    %336 = math.exp %335 : vector<64x64xf32>
    %cst_100 = arith.constant 1.000000e+00 : f32
    %337 = vector.broadcast %cst_100 : f32 to vector<64x64xf32>
    %338 = arith.addf %337, %336 : vector<64x64xf32>
    %339 = arith.divf %337, %338 : vector<64x64xf32>
    %340 = arith.mulf %334, %339 : vector<64x64xf32>
    %341 = vector.broadcast %279 : vector<1x64xf32> to vector<64x64xf32>
    %342 = arith.mulf %340, %341 : vector<64x64xf32>
    %cst_101 = arith.constant dense<0.000000e+00> : vector<64xf32>
    %343 = vector.multi_reduction <add>, %342, %cst_101 [1] : vector<64x64xf32> to vector<64xf32>
    %344 = vector.shape_cast %343 : vector<64xf32> to vector<64x1xf32>
    %345 = vector.shape_cast %344 : vector<64x1xf32> to vector<8x8x1xf32>
    %346 = vector.broadcast %345 : vector<8x8x1xf32> to vector<8x8x3xf32>
    %347 = arith.mulf %286, %346 : vector<8x8x3xf32>
    %cst_102 = arith.constant -1.000000e+02 : f32
    %cst_103 = arith.constant 1.000000e+02 : f32
    %348 = vector.broadcast %cst_102 : f32 to vector<8x8x3xf32>
    %349 = arith.maximumf %348, %347 : vector<8x8x3xf32>
    %350 = vector.broadcast %cst_103 : f32 to vector<8x8x3xf32>
    %351 = arith.minimumf %350, %349 : vector<8x8x3xf32>
    %352 = vector.broadcast %23 : vector<8x8x1xf32> to vector<8x8x3xf32>
    %353 = arith.mulf %351, %352 : vector<8x8x3xf32>
    %cst_104 = arith.constant dense<0.000000e+00> : vector<8x3xf32>
    %354 = vector.multi_reduction <add>, %353, %cst_104 [0] : vector<8x8x3xf32> to vector<8x3xf32>
    %355 = arith.negf %297 : vector<8x64xf32>
    %356 = math.exp %355 : vector<8x64xf32>
    %cst_105 = arith.constant 1.000000e+00 : f32
    %357 = vector.broadcast %cst_105 : f32 to vector<8x64xf32>
    %358 = arith.addf %357, %356 : vector<8x64xf32>
    %359 = arith.divf %357, %358 : vector<8x64xf32>
    %360 = arith.mulf %297, %359 : vector<8x64xf32>
    %361 = vector.broadcast %280 : vector<1x64xf32> to vector<8x64xf32>
    %362 = arith.mulf %360, %361 : vector<8x64xf32>
    %cst_106 = arith.constant dense<0.000000e+00> : vector<8xf32>
    %363 = vector.multi_reduction <add>, %362, %cst_106 [1] : vector<8x64xf32> to vector<8xf32>
    %364 = vector.shape_cast %363 : vector<8xf32> to vector<8x1xf32>
    %365 = vector.broadcast %281 : vector<1x1xf32> to vector<8x1xf32>
    %366 = arith.addf %364, %365 : vector<8x1xf32>
    %367 = vector.broadcast %366 : vector<8x1xf32> to vector<8x3xf32>
    %368 = arith.mulf %367, %3 : vector<8x3xf32>
    %369 = arith.addf %354, %368 : vector<8x3xf32>
    %370 = arith.addf %247, %369 : vector<8x3xf32>
    %371 = vector.shape_cast %329 : vector<64x64xf32> to vector<8x8x64xf32>
    %372 = vector.broadcast %21 : vector<8x8x1xf32> to vector<8x8x64xf32>
    %373 = arith.mulf %371, %372 : vector<8x8x64xf32>
    %cst_107 = arith.constant dense<0.000000e+00> : vector<8x64xf32>
    %374 = vector.multi_reduction <add>, %373, %cst_107 [0] : vector<8x8x64xf32> to vector<8x64xf32>
    %c2_108 = arith.constant 2 : index
    %c2_109 = arith.constant 2 : index
    %c0_110 = arith.constant 0 : index
    %c0_111 = arith.constant 0 : index
    %375 = vector.load %arg4[%c2_108, %c2_109, %c0_110, %c0_111] : memref<4x4x64x64xf32, #tpu.memory_space<vmem>>, vector<1x1x64x64xf32>
    %376 = vector.shape_cast %375 : vector<1x1x64x64xf32> to vector<64x64xf32>
    %cst_112 = arith.constant dense<0.000000e+00> : vector<8x64xf32>
    %377 = tpu.matmul %374, %376, %cst_112 {dimension_numbers = #tpu.dot_dimension_numbers<[1], [0], [0], [1], [0, 0, 1, 1], [], []>} : vector<8x64xf32>, vector<64x64xf32>, vector<8x64xf32> -> vector<8x64xf32>
    %378 = arith.addf %298, %377 : vector<8x64xf32>
    %379 = vector.broadcast %276 : vector<1x64xf32> to vector<8x64xf32>
    %380 = arith.addf %378, %379 : vector<8x64xf32>
    %381 = arith.negf %380 : vector<8x64xf32>
    %382 = math.exp %381 : vector<8x64xf32>
    %cst_113 = arith.constant 1.000000e+00 : f32
    %383 = vector.broadcast %cst_113 : f32 to vector<8x64xf32>
    %384 = arith.addf %383, %382 : vector<8x64xf32>
    %385 = arith.divf %383, %384 : vector<8x64xf32>
    %386 = arith.mulf %380, %385 : vector<8x64xf32>
    %c2_114 = arith.constant 2 : index
    %c3_115 = arith.constant 3 : index
    %c0_116 = arith.constant 0 : index
    %c0_117 = arith.constant 0 : index
    %387 = vector.load %arg4[%c2_114, %c3_115, %c0_116, %c0_117] : memref<4x4x64x64xf32, #tpu.memory_space<vmem>>, vector<1x1x64x64xf32>
    %388 = vector.shape_cast %387 : vector<1x1x64x64xf32> to vector<64x64xf32>
    %cst_118 = arith.constant dense<0.000000e+00> : vector<8x64xf32>
    %389 = tpu.matmul %386, %388, %cst_118 {dimension_numbers = #tpu.dot_dimension_numbers<[1], [0], [0], [1], [0, 0, 1, 1], [], []>} : vector<8x64xf32>, vector<64x64xf32>, vector<8x64xf32> -> vector<8x64xf32>
    %390 = vector.broadcast %277 : vector<1x64xf32> to vector<8x64xf32>
    %391 = arith.addf %389, %390 : vector<8x64xf32>
    %392 = arith.addf %391, %269 : vector<8x64xf32>
    %c3_119 = arith.constant 3 : index
    %c0_120 = arith.constant 0 : index
    %c0_121 = arith.constant 0 : index
    %393 = vector.load %arg5[%c3_119, %c0_120, %c0_121] : memref<4x10x64xf32, #tpu.memory_space<vmem>>, vector<1x10x64xf32>
    %394 = vector.shape_cast %393 : vector<1x10x64xf32> to vector<10x64xf32>
    %395 = vector.extract_strided_slice %394 {offsets = [0, 0], sizes = [1, 64], strides = [1, 1]} : vector<10x64xf32> to vector<1x64xf32>
    %396 = vector.extract_strided_slice %394 {offsets = [1, 0], sizes = [1, 64], strides = [1, 1]} : vector<10x64xf32> to vector<1x64xf32>
    %397 = vector.extract_strided_slice %394 {offsets = [2, 0], sizes = [1, 64], strides = [1, 1]} : vector<10x64xf32> to vector<1x64xf32>
    %398 = vector.extract_strided_slice %394 {offsets = [3, 0], sizes = [1, 64], strides = [1, 1]} : vector<10x64xf32> to vector<1x64xf32>
    %399 = vector.extract_strided_slice %394 {offsets = [6, 0], sizes = [1, 64], strides = [1, 1]} : vector<10x64xf32> to vector<1x64xf32>
    %400 = vector.extract_strided_slice %394 {offsets = [7, 0], sizes = [1, 64], strides = [1, 1]} : vector<10x64xf32> to vector<1x64xf32>
    %401 = vector.extract_strided_slice %394 {offsets = [8, 0], sizes = [1, 64], strides = [1, 1]} : vector<10x64xf32> to vector<1x64xf32>
    %402 = vector.extract_strided_slice %394 {offsets = [9, 0], sizes = [1, 1], strides = [1, 1]} : vector<10x64xf32> to vector<1x1xf32>
    %403 = vector.shape_cast %370 : vector<8x3xf32> to vector<8x1x3xf32>
    %404 = vector.shape_cast %370 : vector<8x3xf32> to vector<1x8x3xf32>
    %405 = vector.broadcast %403 : vector<8x1x3xf32> to vector<8x8x3xf32>
    %406 = vector.broadcast %404 : vector<1x8x3xf32> to vector<8x8x3xf32>
    %407 = arith.subf %405, %406 : vector<8x8x3xf32>
    %408 = arith.mulf %407, %407 : vector<8x8x3xf32>
    %cst_122 = arith.constant dense<0.000000e+00> : vector<8x8xf32>
    %409 = vector.multi_reduction <add>, %408, %cst_122 [2] : vector<8x8x3xf32> to vector<8x8xf32>
    %410 = vector.shape_cast %409 : vector<8x8xf32> to vector<8x8x1xf32>
    %c3_123 = arith.constant 3 : index
    %c0_124 = arith.constant 0 : index
    %c0_125 = arith.constant 0 : index
    %411 = vector.load %arg3[%c3_123, %c0_124, %c0_125] : memref<4x64x256xf32, #tpu.memory_space<vmem>>, vector<1x64x256xf32>
    %412 = vector.shape_cast %411 : vector<1x64x256xf32> to vector<64x256xf32>
    %cst_126 = arith.constant dense<0.000000e+00> : vector<8x256xf32>
    %413 = tpu.matmul %392, %412, %cst_126 {dimension_numbers = #tpu.dot_dimension_numbers<[1], [0], [0], [1], [0, 0, 1, 1], [], []>} : vector<8x64xf32>, vector<64x256xf32>, vector<8x256xf32> -> vector<8x256xf32>
    %414 = vector.extract_strided_slice %413 {offsets = [0, 0], sizes = [8, 64], strides = [1, 1]} : vector<8x256xf32> to vector<8x64xf32>
    %415 = vector.extract_strided_slice %413 {offsets = [0, 64], sizes = [8, 64], strides = [1, 1]} : vector<8x256xf32> to vector<8x64xf32>
    %416 = vector.extract_strided_slice %413 {offsets = [0, 128], sizes = [8, 64], strides = [1, 1]} : vector<8x256xf32> to vector<8x64xf32>
    %417 = vector.broadcast %398 : vector<1x64xf32> to vector<8x64xf32>
    %418 = arith.addf %416, %417 : vector<8x64xf32>
    %419 = vector.shape_cast %414 : vector<8x64xf32> to vector<8x1x64xf32>
    %420 = vector.shape_cast %415 : vector<8x64xf32> to vector<1x8x64xf32>
    %421 = vector.broadcast %419 : vector<8x1x64xf32> to vector<8x8x64xf32>
    %422 = vector.broadcast %420 : vector<1x8x64xf32> to vector<8x8x64xf32>
    %423 = arith.addf %421, %422 : vector<8x8x64xf32>
    %424 = vector.shape_cast %399 : vector<1x64xf32> to vector<1x1x64xf32>
    %425 = vector.broadcast %410 : vector<8x8x1xf32> to vector<8x8x64xf32>
    %426 = vector.broadcast %424 : vector<1x1x64xf32> to vector<8x8x64xf32>
    %427 = arith.mulf %425, %426 : vector<8x8x64xf32>
    %428 = arith.addf %423, %427 : vector<8x8x64xf32>
    %429 = vector.shape_cast %395 : vector<1x64xf32> to vector<1x1x64xf32>
    %430 = vector.broadcast %429 : vector<1x1x64xf32> to vector<8x8x64xf32>
    %431 = arith.addf %428, %430 : vector<8x8x64xf32>
    %432 = arith.negf %431 : vector<8x8x64xf32>
    %433 = math.exp %432 : vector<8x8x64xf32>
    %cst_127 = arith.constant 1.000000e+00 : f32
    %434 = vector.broadcast %cst_127 : f32 to vector<8x8x64xf32>
    %435 = arith.addf %434, %433 : vector<8x8x64xf32>
    %436 = arith.divf %434, %435 : vector<8x8x64xf32>
    %437 = arith.mulf %431, %436 : vector<8x8x64xf32>
    %438 = vector.shape_cast %437 : vector<8x8x64xf32> to vector<64x64xf32>
    %c3_128 = arith.constant 3 : index
    %c0_129 = arith.constant 0 : index
    %c0_130 = arith.constant 0 : index
    %c0_131 = arith.constant 0 : index
    %439 = vector.load %arg4[%c3_128, %c0_129, %c0_130, %c0_131] : memref<4x4x64x64xf32, #tpu.memory_space<vmem>>, vector<1x1x64x64xf32>
    %440 = vector.shape_cast %439 : vector<1x1x64x64xf32> to vector<64x64xf32>
    %cst_132 = arith.constant dense<0.000000e+00> : vector<64x64xf32>
    %441 = tpu.matmul %438, %440, %cst_132 {dimension_numbers = #tpu.dot_dimension_numbers<[1], [0], [0], [1], [0, 0, 1, 1], [], []>} : vector<64x64xf32>, vector<64x64xf32>, vector<64x64xf32> -> vector<64x64xf32>
    %442 = vector.broadcast %396 : vector<1x64xf32> to vector<64x64xf32>
    %443 = arith.addf %441, %442 : vector<64x64xf32>
    %444 = arith.negf %443 : vector<64x64xf32>
    %445 = math.exp %444 : vector<64x64xf32>
    %cst_133 = arith.constant 1.000000e+00 : f32
    %446 = vector.broadcast %cst_133 : f32 to vector<64x64xf32>
    %447 = arith.addf %446, %445 : vector<64x64xf32>
    %448 = arith.divf %446, %447 : vector<64x64xf32>
    %449 = arith.mulf %443, %448 : vector<64x64xf32>
    %c3_134 = arith.constant 3 : index
    %c1_135 = arith.constant 1 : index
    %c0_136 = arith.constant 0 : index
    %c0_137 = arith.constant 0 : index
    %450 = vector.load %arg4[%c3_134, %c1_135, %c0_136, %c0_137] : memref<4x4x64x64xf32, #tpu.memory_space<vmem>>, vector<1x1x64x64xf32>
    %451 = vector.shape_cast %450 : vector<1x1x64x64xf32> to vector<64x64xf32>
    %cst_138 = arith.constant dense<0.000000e+00> : vector<64x64xf32>
    %452 = tpu.matmul %449, %451, %cst_138 {dimension_numbers = #tpu.dot_dimension_numbers<[1], [0], [0], [1], [0, 0, 1, 1], [], []>} : vector<64x64xf32>, vector<64x64xf32>, vector<64x64xf32> -> vector<64x64xf32>
    %453 = vector.broadcast %397 : vector<1x64xf32> to vector<64x64xf32>
    %454 = arith.addf %452, %453 : vector<64x64xf32>
    %455 = arith.negf %454 : vector<64x64xf32>
    %456 = math.exp %455 : vector<64x64xf32>
    %cst_139 = arith.constant 1.000000e+00 : f32
    %457 = vector.broadcast %cst_139 : f32 to vector<64x64xf32>
    %458 = arith.addf %457, %456 : vector<64x64xf32>
    %459 = arith.divf %457, %458 : vector<64x64xf32>
    %460 = arith.mulf %454, %459 : vector<64x64xf32>
    %461 = vector.broadcast %400 : vector<1x64xf32> to vector<64x64xf32>
    %462 = arith.mulf %460, %461 : vector<64x64xf32>
    %cst_140 = arith.constant dense<0.000000e+00> : vector<64xf32>
    %463 = vector.multi_reduction <add>, %462, %cst_140 [1] : vector<64x64xf32> to vector<64xf32>
    %464 = vector.shape_cast %463 : vector<64xf32> to vector<64x1xf32>
    %465 = vector.shape_cast %464 : vector<64x1xf32> to vector<8x8x1xf32>
    %466 = vector.broadcast %465 : vector<8x8x1xf32> to vector<8x8x3xf32>
    %467 = arith.mulf %407, %466 : vector<8x8x3xf32>
    %cst_141 = arith.constant -1.000000e+02 : f32
    %cst_142 = arith.constant 1.000000e+02 : f32
    %468 = vector.broadcast %cst_141 : f32 to vector<8x8x3xf32>
    %469 = arith.maximumf %468, %467 : vector<8x8x3xf32>
    %470 = vector.broadcast %cst_142 : f32 to vector<8x8x3xf32>
    %471 = arith.minimumf %470, %469 : vector<8x8x3xf32>
    %472 = vector.broadcast %23 : vector<8x8x1xf32> to vector<8x8x3xf32>
    %473 = arith.mulf %471, %472 : vector<8x8x3xf32>
    %cst_143 = arith.constant dense<0.000000e+00> : vector<8x3xf32>
    %474 = vector.multi_reduction <add>, %473, %cst_143 [0] : vector<8x8x3xf32> to vector<8x3xf32>
    %475 = arith.negf %418 : vector<8x64xf32>
    %476 = math.exp %475 : vector<8x64xf32>
    %cst_144 = arith.constant 1.000000e+00 : f32
    %477 = vector.broadcast %cst_144 : f32 to vector<8x64xf32>
    %478 = arith.addf %477, %476 : vector<8x64xf32>
    %479 = arith.divf %477, %478 : vector<8x64xf32>
    %480 = arith.mulf %418, %479 : vector<8x64xf32>
    %481 = vector.broadcast %401 : vector<1x64xf32> to vector<8x64xf32>
    %482 = arith.mulf %480, %481 : vector<8x64xf32>
    %cst_145 = arith.constant dense<0.000000e+00> : vector<8xf32>
    %483 = vector.multi_reduction <add>, %482, %cst_145 [1] : vector<8x64xf32> to vector<8xf32>
    %484 = vector.shape_cast %483 : vector<8xf32> to vector<8x1xf32>
    %485 = vector.broadcast %402 : vector<1x1xf32> to vector<8x1xf32>
    %486 = arith.addf %484, %485 : vector<8x1xf32>
    %487 = vector.broadcast %486 : vector<8x1xf32> to vector<8x3xf32>
    %488 = arith.mulf %487, %3 : vector<8x3xf32>
    %489 = arith.addf %474, %488 : vector<8x3xf32>
    %490 = arith.addf %370, %489 : vector<8x3xf32>
    %491 = tpu.concatenate %490, %489 in 1 : vector<8x3xf32>, vector<8x3xf32> -> vector<8x6xf32>
    %c0_146 = arith.constant 0 : index
    %c0_147 = arith.constant 0 : index
    %c0_148 = arith.constant 0 : index
    %492 = vector.load %arg6[%c0_146, %c0_147, %c0_148] : memref<1x8x6xf32, #tpu.memory_space<vmem>>, vector<1x8x6xf32>
    %493 = vector.shape_cast %492 : vector<1x8x6xf32> to vector<8x6xf32>
    %494 = vector.shape_cast %491 : vector<8x6xf32> to vector<1x8x6xf32>
    tpu.vector_store %arg6[%c0_146, %c0_147, %c0_148], %494 {strides = array<i32>} : memref<1x8x6xf32, #tpu.memory_space<vmem>>, vector<1x8x6xf32>,
    return
  }
  func.func @transform_0(%arg0: i32) -> (i32, i32, i32) {
    %c0_i32 = arith.constant 0 : i32
    %c0_i32_0 = arith.constant 0 : i32
    %c0_i32_1 = arith.constant 0 : i32
    return %arg0, %c0_i32, %c0_i32_0 : i32, i32, i32
  }
  func.func @transform_1(%arg0: i32) -> (i32, i32) {
    %c0_i32 = arith.constant 0 : i32
    %c0_i32_0 = arith.constant 0 : i32
    %c0_i32_1 = arith.constant 0 : i32
    return %c0_i32, %c0_i32_0 : i32, i32
  }
  func.func @transform_2(%arg0: i32) -> (i32, i32, i32) {
    %c0_i32 = arith.constant 0 : i32
    %c0_i32_0 = arith.constant 0 : i32
    %c0_i32_1 = arith.constant 0 : i32
    %c0_i32_2 = arith.constant 0 : i32
    return %c0_i32, %c0_i32_0, %c0_i32_1 : i32, i32, i32
  }
  func.func @transform_3(%arg0: i32) -> (i32, i32, i32, i32) {
    %c0_i32 = arith.constant 0 : i32
    %c0_i32_0 = arith.constant 0 : i32
    %c0_i32_1 = arith.constant 0 : i32
    %c0_i32_2 = arith.constant 0 : i32
    %c0_i32_3 = arith.constant 0 : i32
    return %c0_i32, %c0_i32_0, %c0_i32_1, %c0_i32_2 : i32, i32, i32, i32
  }
  func.func @transform_4(%arg0: i32) -> (i32, i32, i32) {
    %c0_i32 = arith.constant 0 : i32
    %c0_i32_0 = arith.constant 0 : i32
    %c0_i32_1 = arith.constant 0 : i32
    %c0_i32_2 = arith.constant 0 : i32
    return %c0_i32, %c0_i32_0, %c0_i32_1 : i32, i32, i32
  }
  func.func @transform_5(%arg0: i32) -> (i32, i32, i32) {
    %c0_i32 = arith.constant 0 : i32
    %c0_i32_0 = arith.constant 0 : i32
    %c0_i32_1 = arith.constant 0 : i32
    return %arg0, %c0_i32, %c0_i32_0 : i32, i32, i32
  }
}

</mosaic_0001>

<bundles_post_ra>
// kernel: tpu_custom_call.1
= control target key start
LH: loop header
LB: loop body
LE: loop exit
PB: predicated region body
PF: predicated region fallthrough
CT: control target
= control target key end

     0   :  { %10 = vsyncpa [#allocation3], 0  ;;  %s7276_s0 = inlined_call_operand.vmem [shape: f32[2,8,6], index: 0, kind: input, shape index: {}]   ;;  %s7277_s1 = inlined_call_operand.vmem [shape: f32[2,64], index: 1, kind: input, shape index: {}]   ;;  %s7278_s2 = inlined_call_operand.hbm [shape: f32[4,64,256], index: 2, kind: input, shape index: {}]   ;;  %s7279_s3 = inlined_call_operand.hbm [shape: f32[4,4,64,64], index: 3, kind: input, shape index: {}]   ;;  %s7280_s4 = inlined_call_operand.vmem [shape: f32[4,10,64], index: 4, kind: input, shape index: {}]   ;;  %s7281_s5 = inlined_call_operand.vmem [shape: f32[2,8,6], index: 5, kind: output, shape index: {}]  }
   0x1   :  { %11 = vsyncpa [#allocation5], 0  ;;  %s6111_s18 = smov 0  }
   0x2 LB: > { %s6068_s19 = smov [#allocation2]   ;;  %s6117_s21 = sadd.s32 4294967295, %s6066_s18   ;;  %s6066_s18 = sphi %s6111_s18, %s17_s18  }
   0x3   : > { %s173_s20 = sshll.u32 %s6068_s19, 4  ;;  %p4792_p0 = scmp.ge.s32.totalorder %s6066_s18, 1  ;;  %s174_s20 = int_to_ptr.vmem [resolvable:$true] %s173_s20 }
   0x4   : > { %p158_p1 = scmp.lt.s32.totalorder %s6066_s18, 3  ;;  %p5554_p3 = scmp.eq.s32.totalorder %s6117_s21, 0 }
   0x5   : > { %s6069_s23 = smov [#allocation4]   ;;  %s6011_s26 = scalar_lea.vmem %s174_s20, 8192 }
   0x6   : > { %p6121_p2 = pnand %p4792_p0, %p158_p1  ;;  %s186_s24 = sshll.u32 %s6069_s23, 4  ;;  %s187_s24 = int_to_ptr.vmem [resolvable:$true] %s186_s24 }
   0x7   : > { %p6012_p7 = scmp.ne.s32.totalorder %s174_s20, %s6011_s26  ;;  %p6019_p10 = scmp.lt.s32.totalorder %s174_s20, %s174_s20 }
   0x8   : > { %p5547_p4 = pneg %p6121_p2  ;;  %p6020_p11 = scmp.lt.s32.totalorder %s6011_s26, %s6011_s26 }
   0xa   : > { %p6130_p5 = pnand %p5554_p3, %p5547_p4  ;;  %p6021_p12 = por %p6020_p11, %p6019_p10 }
   0xc   : > { %p6002_p6 = pneg %p6130_p5 }
   0xe   : > { %p6014_p8 = pnand %p6012_p7, %p6002_p6 }
  0x10   : > { %p6015_p9 = pneg %p6014_p8 }
  0x12   : > { %p6022_p13 = pnand %p6021_p12, %p6015_p9 }
  0x14   : > { %6025 = shalt.err (!%p6022_p13)
}
  0x15   : > { %s6070_s27 = smov 256   ;;  %s6071_s28 = smov 16  }
  0x16   : > { %5550 = dma.hbm_to_vmem [thread:$0]  (!%p6130_p5), %s7278_s2, 8192, %s174_s20, [#allocation3], %s6070_s27, %s6070_s27, %s6071_s28  }
  0x17   : > { %s6037_s6 = scalar_lea.vmem %s187_s24, 16384  ;;  %p6045_p7 = scmp.lt.s32.totalorder %s187_s24, %s187_s24 }
  0x18   : > { %p6038_p0 = scmp.ne.s32.totalorder %s187_s24, %s6037_s6  ;;  %p6046_p8 = scmp.lt.s32.totalorder %s6037_s6, %s6037_s6 }
  0x1a   : > { %p6040_p1 = pnand %p6038_p0, %p6002_p6  ;;  %p6047_p10 = por %p6046_p8, %p6045_p7 }
  0x1c   : > { %p6041_p4 = pneg %p6040_p1 }
  0x1e   : > { %p6048_p9 = pnand %p6047_p10, %p6041_p4 }
  0x20   : > { %6051 = shalt.err (!%p6048_p9)
}
  0x21   : > { %s6072_s7 = smov 128   ;;  %s6073_s8 = smov 8  }
  0x22   : > { %5553 = dma.hbm_to_vmem [thread:$0]  (!%p6130_p5), %s7279_s3, 16384, %s187_s24, [#allocation5], %s6072_s7, %s6072_s7, %s6073_s8  }
  0x23   : > { %212 = sbr.rel (%p6121_p2) target bundleno = 5279 (0x149f), region = 40 }
  0x28   : > { %6057 = dma.done.wait (%p5554_p3), [#allocation3], 8192  }
  0x29   : > { %6059 = vsyncadd (%p5554_p3), [#allocation3], 4294959104 }
  0x2a   : > { %6061 = dma.done.wait (%p5554_p3), [#allocation5], 16384  }
  0x2b   : > { %6063 = vsyncadd (%p5554_p3), [#allocation5], 4294950912  ;;  %p242_p6 = scmp.lt.s32.totalorder %s6117_s21, 1  ;;  %s6074_s15 = smov 125   ;;  %vm256_vm0 = vcmask 23552   ;;  %v496_v4 = vld [vmem:[#allocation2 + $0x78] sm:$0xff]  ;;  %v268_v21 = vlaneseq }
  0x2c   : > { %517 = vmatprep.subr.mxu0 %v496_v4  ;;  %v495_v5 = vld [vmem:[#allocation2 + $0x70] sm:$0xff]  ;;  %v494_v6 = vld [vmem:[#allocation2 + $0x68] sm:$0xff]  ;;  %v493_v7 = vld [vmem:[#allocation2 + $0x60] sm:$0xff]  ;;  %v7282_v17 = vmov 0.0   ;;  %v6076_v22 = vmov 1966171168  }
  0x2d   : > { %s7335_s21 = smov (!%p242_p6, %s6117_s21), 1  ;;  %518 = vmatpush1.msra.mxu0 %v495_v5  ;;  %v492_v8 = vld [vmem:[#allocation2 + $0x58] sm:$0xff]  ;;  %v491_v9 = vld [vmem:[#allocation2 + $0x50] sm:$0xff]  ;;  %v490_v10 = vld [vmem:[#allocation2 + $0x48] sm:$0xff]  ;;  %565 = vmatprep.mubr.f32.mxu0 %v7282_v17  ;;  %v354_v23 = vunpack.c.l.s4 %v6076_v22  ;;  %v6182_v24 = vshrl.u32 %v268_v21, 7  ;;  %vm497_vm4 = vcmask 523264  }
  0x2e   : > { %s4799_s11 = sshll.u32 %s7335_s21, 3  ;;  %519 = vmatprep.subr.mxu0 %v494_v6  ;;  %v489_v11 = vld [vmem:[#allocation2 + $0x40] sm:$0xff]  ;;  %v488_v12 = vld [vmem:[#allocation2 + $0x38] sm:$0xff]  ;;  %v487_v13 = vld [vmem:[#allocation2 + $0x30] sm:$0xff]  ;;  %s6077_s22 = smov 64   ;;  %vm6078_vm5 = vmmov 0  }
  0x2f   : > { %s6172_s14 = scalar_lea.vmem %s7276_s0, %s4799_s11  ;;  %520 = vmatpush1.msra.mxu0 %v493_v7  ;;  %v486_v14 = vld [vmem:[#allocation2 + $0x28] sm:$0xff]  ;;  %v485_v15 = vld [vmem:[#allocation2 + $0x20] sm:$0xff]  ;;  %v484_v16 = vld [vmem:[#allocation2 + $0x18] sm:$0xff]  ;;  %v355_v25 = vunpack.c.0.s8 %v354_v23  ;;  %v6193_v30 = vsub.s32 0, %v6182_v24  ;;  %v281_v7 = vand.u32 127, %v268_v21  ;;  %s249_s19 = scalar_lea.vmem %s7281_s5, %s4799_s11  ;;  %vm4713_vm6 = vcmask 48128  }
  0x30   : > { %v6175_v0 = vld [vmem:[%s6172_s14] sm:$0xff]  ;;  %521 = vmatprep.subr.mxu0 %v492_v8  ;;  %v483_v18 = vld [vmem:[#allocation2 + $0x10] sm:$0xff]  ;;  %v482_v19 = vld [vmem:[#allocation2 + $0x8] sm:$0xff] }
  0x31   : > { %v251_v1 = vmul.f32 %v6175_v0, %v6175_v0  ;;  %522 = vmatpush1.msra.mxu0 %v491_v9  ;;  %v481_v20 = vld [vmem:[#allocation2] sm:$0xff]  ;;  %v352_v26 = vcombine.high %v6175_v0, %v6175_v0  ;;  %v6187_v27 = vsub.s32 %v355_v25, %v6182_v24  ;;  %vm282_vm1 = vcmp.ne.s32.totalorder %v6182_v24, %v281_v7 }
  0x32   : > { %523 = vmatprep.subr.mxu0 %v490_v10  ;;  %v6256_v10 = vsel %vm282_vm1, 1.0, %v7282_v17  ;;  %v6324_v7 = vsub.s32 6, %v6182_v24 }
  0x33   : > { %253 = vrot.lane.b32.xlu0 %v251_v1, %s6074_s15  ;;  %524 = vmatpush1.msra.mxu0 %v489_v11  ;;  %7306 = vst [vmem:[#allocation8_spill] sm:$0xff] %v6187_v27  ;;  %v359_v28 = vrot.slane %v6175_v0, %v6187_v27  ;;  %v366_v29 = vrot.slane %v352_v26, %v6187_v27  ;;  %v6274_v26 = vsub.s32 5, %v6182_v24 }
  0x34   : > { %525 = vmatprep.subr.mxu0 %v488_v12  ;;  %v288_v12 = vrot.slane %v6256_v10, %v6193_v30  ;;  %7307 = vst [vmem:[#allocation9_spill] sm:$0xff] %v6324_v7 }
  0x35   : > { %526 = vmatpush1.msra.mxu0 %v487_v13  ;;  %v375_v31 = vrot.slane %v359_v28, %v6187_v27  ;;  %v367_v32 = vcombine.high %v359_v28, %v359_v28  ;;  %v368_v33 = vcombine.high %v366_v29, %v366_v29  ;;  %v382_v42 = vrot.slane %v366_v29, %v6187_v27  ;;  %v267_v13 = vld [vmem:[%s7277_s1] sm:$0x3] }
  0x36   : > { %527 = vmatprep.subr.mxu0 %v486_v14  ;;  %v6265_v14 = vsub.s32 1, %v6182_v24  ;;  %v323_v28 = vrot.slane %v6256_v10, %v6274_v26  ;;  %v6279_v29 = vsub.s32 7, %v6182_v24 }
  0x37   : > { %528 = vmatpush1.msra.mxu0 %v485_v15  ;;  %v404_v34 = vrot.slane %v375_v31, %v6193_v30  ;;  %v389_v35 = vrot.slane %v367_v32, %v6187_v27  ;;  %v397_v36 = vcombine.high %v375_v31, %v375_v31  ;;  %v396_v37 = vrot.slane %v368_v33, %v6187_v27  ;;  %v6289_v33 = vld [vmem:[%s7280_s4] sm:$0xff] }
  0x38   : > { %529 = vmatprep.subr.mxu0 %v484_v16  ;;  %v420_v55 = vrot.slane %v382_v42, %v6193_v30  ;;  %v398_v57 = vcombine.high %v382_v42, %v382_v42  ;;  %v276_v21 = vrot.slane %v267_v13, %v6265_v14  ;;  %v337_v31 = vrot.slane %v6256_v10, %v6279_v29  ;;  %v773_v42 = vld [vmem:[#allocation4 + $0x38] sm:$0xff] }
  0x39   : > { %530 = vmatpush1.msra.mxu0 %v483_v18  ;;  %v6200_v38 = vsub.f32 %v404_v34, %v6175_v0  ;;  %v408_v39 = vrot.slane %v389_v35, %v6193_v30  ;;  %v412_v40 = vrot.slane %v397_v36, %v6193_v30  ;;  %v399_v41 = vcombine.high %v389_v35, %v389_v35 }
  0x3a   : > { %531 = vmatprep.subr.mxu0 %v482_v19  ;;  %v400_v43 = vcombine.high %v396_v37, %v396_v37  ;;  %v6235_v61 = vsub.f32 %v420_v55, %v6175_v0  ;;  %v424_v62 = vrot.slane %v396_v37, %v6193_v30  ;;  %v271_v18 = vrot.slane %v267_v13, %v6193_v30  ;;  %v766_v55 = vld [vmem:[#allocation4] sm:$0xff] }
  0x3b   : > { %532 = vmatpush1.msra.mxu0 %v481_v20  ;;  %v449_v44 = vmul.f32 %v6200_v38, %v6200_v38  ;;  %v6208_v45 = vsub.f32 %v408_v39, %v6175_v0  ;;  %v6211_v46 = vsub.f32 %v412_v40, %v6175_v0  ;;  %v416_v47 = vrot.slane %v399_v41, %v6193_v30 }
  0x3c   : > { %v432_v48 = vrot.slane %v400_v43, %v6193_v30  ;;  %v453_v1 = vmul.f32 %v6235_v61, %v6235_v61  ;;  %v6284_v32 = vsub.s32 4, %v6182_v24  ;;  %v6295_v35 = vsub.s32 3, %v6182_v24  ;;  %v772_v43 = vld [vmem:[#allocation4 + $0x30] sm:$0xff]  ;;  %5201 = vmatprep.subr.mxu1 %v773_v42 }
  0x3d   : > { %v457_v49 = vsel %vm256_vm0, %v449_v44, 0.0  ;;  %v450_v50 = vmul.f32 %v6208_v45, %v6208_v45  ;;  %v451_v53 = vmul.f32 %v6211_v46, %v6211_v46  ;;  %v6225_v54 = vsub.f32 %v416_v47, %v6175_v0  ;;  %5202 = vmatpush3.msra.mxu1 %v773_v42  ;;  %v771_v44 = vld [vmem:[#allocation4 + $0x28] sm:$0xff]  ;;  %v770_v47 = vld [vmem:[#allocation4 + $0x20] sm:$0xff] }
  0x3e   : > { %458 = vadd.xlane.f32.xlu1 %v457_v49  ;;  %v6219_v51 = vsub.f32 %v432_v48, %v6175_v0  ;;  %v469_v4 = vsel %vm256_vm0, %v453_v1, 0.0  ;;  %v1389_v34 = vrot.slane %v6289_v33, %v6284_v32  ;;  %v575_v36 = vrot.slane %v6289_v33, %v6295_v35  ;;  %5203 = vmatprep.subr.mxu1 %v772_v43  ;;  %v769_v48 = vld [vmem:[#allocation4 + $0x18] sm:$0xff]  ;;  %v768_v49 = vld [vmem:[#allocation4 + $0x10] sm:$0xff] }
  0x3f   : > { %v460_v52 = vsel %vm256_vm0, %v450_v50, 0.0  ;;  %v463_v59 = vsel %vm256_vm0, %v451_v53, 0.0  ;;  %v452_v60 = vmul.f32 %v6225_v54, %v6225_v54  ;;  %5204 = vmatpush3.msra.mxu1 %v772_v43  ;;  %v767_v53 = vld [vmem:[#allocation4 + $0x8] sm:$0xff]  ;;  %v6315_v1 = vsub.s32 2, %v6182_v24 }
  0x40   : > { %v456_v56 = vmul.f32 %v6219_v51, %v6219_v51  ;;  %5205 = vmatprep.subr.mxu1 %v771_v44  ;;  %v701_v42 = vrot.slane %v6289_v33, %v6193_v30 }
  0x41   : > { %v466_v63 = vsel %vm256_vm0, %v452_v60, 0.0  ;;  %5206 = vmatpush3.msra.mxu1 %v771_v44 }
  0x42   : > { %461 = vadd.xlane.f32.xlu1 %v460_v52  ;;  %v478_v58 = vsel %vm256_vm0, %v456_v56, 0.0  ;;  %5207 = vmatprep.subr.mxu1 %v770_v47  ;;  %v6307_v56 = vld [vmem:[%s7280_s4 + $0x8] sm:$0x3] }
  0x43   : > { %5208 = vmatpush3.msra.mxu1 %v770_v47 }
  0x44   : > { %5209 = vmatprep.subr.mxu1 %v769_v48 }
  0x45   : > { %5210 = vmatpush3.msra.mxu1 %v769_v48 }
  0x46   : > { %464 = vadd.xlane.f32.xlu1 %v463_v59  ;;  %5211 = vmatprep.subr.mxu1 %v768_v49 }
  0x47   : > { %5212 = vmatpush3.msra.mxu1 %v768_v49 }
  0x48   : > { %5213 = vmatprep.subr.mxu1 %v767_v53 }
  0x49   : > { %5214 = vmatpush3.msra.mxu1 %v767_v53 }
  0x4a   : > { %467 = vadd.xlane.f32.xlu1 %v466_v63  ;;  %5215 = vmatprep.subr.mxu1 %v766_v55  ;;  %v295_v63 = vrot.slane %v6256_v10, %v6265_v14 }
  0x4b   : > { %5216 = vmatpush3.msra.mxu1 %v766_v55 }
  0x4c   : > { %5257 = vmatprep.subr.mxu1 %v7282_v17 }
  0x4e   : > { %470 = vadd.xlane.f32.xlu1 %v469_v4  ;;  %v309_v4 = vrot.slane %v6256_v10, %v6295_v35 }
  0xa5   : > { %v254_v2 = vpop.permute.xlu0 %253 }
  0xa6   : > { %v257_v3 = vsel %vm256_vm0, %v254_v2, 0.0  ;;  %v6242_v2 = vsub.f32 %v424_v62, %v6175_v0 }
  0xa7   : > { %258 = vadd.xlane.f32.xlu0 %v257_v3  ;;  %v428_v3 = vrot.slane %v398_v57, %v6193_v30  ;;  %v1254_v57 = vrot.slane %v6307_v56, %v6193_v30 }
  0xa8   : > { %v454_v5 = vmul.f32 %v6242_v2, %v6242_v2 }
  0xa9   : > { %v6249_v6 = vsub.f32 %v428_v3, %v6175_v0  ;;  %v302_v3 = vrot.slane %v6256_v10, %v6315_v1 }
  0xaa   : > { %v472_v8 = vsel %vm256_vm0, %v454_v5, 0.0  ;;  %v316_v5 = vrot.slane %v6256_v10, %v6284_v32 }
  0xab   : > { %479 = vadd.xlane.f32.xlu0 %v478_v58  ;;  %v455_v9 = vmul.f32 %v6249_v6, %v6249_v6  ;;  %473 = vadd.xlane.f32.xlu1 %v472_v8  ;;  %v330_v8 = vrot.slane %v6256_v10, %v6324_v7 }
  0xad   : > { %v475_v11 = vsel %vm256_vm0, %v455_v9, 0.0 }
  0xaf   : > { %476 = vadd.xlane.f32.xlu1 %v475_v11 }
  0xc1   : > { %290 = vbcast.lane.b32.xlu0 %v288_v12, 256 }
  0xc5   : > { %325 = vbcast.lane.b32.xlu0 %v323_v28, 256  ;;  %v681_v28 = vrot.slane %v6289_v33, %v6324_v7 }
  0xc7   : > { %v459_v9 = vpop.xlane.xlu1 %458 }
  0xc8   : > { %v682_v43 = vmul.f32 %v681_v28, %v459_v9 }
  0xc9   : > { %339 = vbcast.lane.b32.xlu0 %v337_v31, 256 }
  0xcb   : > { %v462_v11 = vpop.xlane.xlu1 %461 }
  0xcc   : > { %v683_v44 = vmul.f32 %v681_v28, %v462_v11 }
  0xcd   : > { %1391 = vrot.lane.b32.xlu0 %v1389_v34, %s6077_s22 }
  0xcf   : > { %v465_v12 = vpop.xlane.xlu1 %464 }
  0xd0   : > { %v684_v47 = vmul.f32 %v681_v28, %v465_v12 }
 0x130   : > { %v259_v0 = vpop.xlane.xlu0 %258 }
 0x131   : > { %5582 = vrsqrt.f32 %v259_v0  ;;  %vm262_vm2 = vcmp.eq.f32.partialorder %v259_v0, inf  ;;  %v265_v19 = vand.u32 2147483648, %v259_v0  ;;  %vm264_vm3 = vcmp.eq.f32.partialorder %v259_v0, 0.0 }
 0x13e   : > { %v5583_v15 = vpop.eup %5582 }
 0x13f   : > { %v261_v16 = vmul.f32 %v5583_v15, %v259_v0 }
 0x141   : > { %v263_v20 = vsel %vm262_vm2, %v259_v0, %v261_v16  ;;  %v468_v0 = vpop.xlane.xlu1 %467 }
 0x142   : > { %v266_v22 = vsel %vm264_vm3, %v265_v19, %v263_v20  ;;  %v685_v48 = vmul.f32 %v681_v28, %v468_v0 }
 0x143   : > { %v272_v23 = vmul.f32 %v271_v18, %v266_v22 }
 0x145   : > { %v6269_v25 = vadd.f32 %v276_v21, %v272_v23  ;;  %v471_v15 = vpop.xlane.xlu1 %470 }
 0x146   : > { %v686_v49 = vmul.f32 %v681_v28, %v471_v15 }
 0x147   : > { %4802 = vmatmul.mubr.msk.f32.vlgmr.msra.gmra.mxu0 %vm497_vm4, %v6269_v25 }
 0x149   : > { %v474_v21 = vpop.xlane.xlu1 %473 }
 0x14d   : > { %v477_v31 = vpop.xlane.xlu1 %476 }
 0x207   : > { %v567_v37 = vpop.f32.mrf.mxu0 }
 0x208   : > { %667 = vrot.lane.b32.xlu1 %v567_v37, %s6077_s22  ;;  %v578_v13 = vcombine.high %v567_v37, %v567_v37  ;;  %v585_v18 = vrot.slane %v567_v37, %v6187_v27 }
 0x209   : > { %v6300_v39 = vpop.f32.mrf.mxu0 }
 0x20a   : > { %v576_v40 = vadd.f32 %v575_v36, %v6300_v39  ;;  %v592_v16 = vrot.slane %v578_v13, %v6187_v27  ;;  %v593_v20 = vcombine.high %v585_v18, %v585_v18  ;;  %v601_v24 = vrot.slane %v585_v18, %v6187_v27 }
 0x20c   : > { %v4851_v41 = vmul.f32 -1.442695, %v576_v40  ;;  %297 = vbcast.lane.b32.xlu1 %v295_v63, 256  ;;  %v594_v19 = vcombine.high %v592_v16, %v592_v16  ;;  %v608_v10 = vrot.slane %v592_v16, %v6187_v27  ;;  %v615_v23 = vrot.slane %v593_v20, %v6187_v27 }
 0x20d   : > { %v623_v34 = vcombine.high %v601_v24, %v601_v24  ;;  %v630_v55 = vrot.slane %v601_v24, %v6193_v30 }
 0x20e   : > { %5584 = vpow2.f32 %v4851_v41  ;;  %v622_v22 = vrot.slane %v594_v19, %v6187_v27  ;;  %v624_v41 = vcombine.high %v608_v10, %v608_v10  ;;  %v625_v37 = vcombine.high %v615_v23, %v615_v23 }
 0x210   : > { %304 = vbcast.lane.b32.xlu1 %v302_v3, 256  ;;  %v626_v36 = vcombine.high %v622_v22, %v622_v22  ;;  %v650_v63 = vrot.slane %v622_v22, %v6193_v30  ;;  %v654_v3 = vrot.slane %v624_v41, %v6193_v30 }
 0x214   : > { %311 = vbcast.lane.b32.xlu1 %v309_v4, 256 }
 0x218   : > { %318 = vbcast.lane.b32.xlu1 %v316_v5, 256 }
 0x21b   : > { %v5585_v50 = vpop.eup %5584 }
 0x21c   : > { %v1247_v52 = vadd.f32 1.0, %v5585_v50  ;;  %332 = vbcast.lane.b32.xlu1 %v330_v8, 256  ;;  %v687_v50 = vmul.f32 %v681_v28, %v474_v21 }
 0x21e   : > { %5586 = vrcp.f32 %v1247_v52  ;;  %v688_v52 = vmul.f32 %v681_v28, %v477_v31 }
 0x22b   : > { %v5587_v58 = vpop.eup %5586 }
 0x22c   : > { %v1250_v59 = vmul.f32 %v5587_v58, %v576_v40  ;;  %v480_v40 = vpop.xlane.xlu0 %479  ;;  %v638_v58 = vrot.slane %v623_v34, %v6193_v30 }
 0x22d   : > { %v689_v53 = vmul.f32 %v681_v28, %v480_v40 }
 0x22e   : > { %v1255_v60 = vmul.f32 %v1254_v57, %v1250_v59  ;;  %v634_v57 = vrot.slane %v615_v23, %v6193_v30  ;;  %v658_v59 = vrot.slane %v626_v36, %v6193_v30 }
 0x230   : > { %v1256_v62 = vsel %vm497_vm4, %v1255_v60, 0.0  ;;  %v642_v60 = vrot.slane %v625_v37, %v6193_v30 }
 0x231   : > { %1257 = vadd.xlane.f32.xlu0 %v1256_v62  ;;  %v646_v62 = vrot.slane %v608_v10, %v6193_v30 }
 0x27a   : > { %v668_v4 = vpop.permute.xlu1 %667 }
 0x27b   : > { %v677_v5 = vadd.f32 %v668_v4, %v658_v59  ;;  %v670_v8 = vadd.f32 %v668_v4, %v630_v55  ;;  %v671_v9 = vadd.f32 %v668_v4, %v634_v57  ;;  %v672_v11 = vadd.f32 %v668_v4, %v638_v58 }
 0x27c   : > { %v673_v12 = vadd.f32 %v668_v4, %v642_v60  ;;  %v674_v0 = vadd.f32 %v668_v4, %v646_v62  ;;  %v675_v13 = vadd.f32 %v668_v4, %v650_v63  ;;  %v676_v15 = vadd.f32 %v668_v4, %v654_v3 }
 0x27d   : > { %v690_v16 = vadd.f32 %v682_v43, %v670_v8  ;;  %v691_v18 = vadd.f32 %v683_v44, %v671_v9  ;;  %v692_v19 = vadd.f32 %v684_v47, %v672_v11  ;;  %v697_v23 = vadd.f32 %v689_v53, %v677_v5 }
 0x27e   : > { %v693_v20 = vadd.f32 %v685_v48, %v673_v12  ;;  %v694_v21 = vadd.f32 %v686_v49, %v674_v0  ;;  %v695_v24 = vadd.f32 %v687_v50, %v675_v13  ;;  %v696_v10 = vadd.f32 %v688_v52, %v676_v15 }
 0x27f   : > { %v702_v22 = vadd.f32 %v701_v42, %v690_v16  ;;  %v703_v28 = vadd.f32 %v701_v42, %v691_v18  ;;  %v704_v31 = vadd.f32 %v701_v42, %v692_v19  ;;  %v709_v58 = vadd.f32 %v701_v42, %v697_v23 }
 0x280   : > { %v705_v34 = vadd.f32 %v701_v42, %v693_v20  ;;  %v706_v36 = vadd.f32 %v701_v42, %v694_v21  ;;  %v707_v37 = vadd.f32 %v701_v42, %v695_v24  ;;  %v708_v57 = vadd.f32 %v701_v42, %v696_v10 }
 0x281   : > { %v4803_v40 = vmul.f32 -1.442695, %v702_v22  ;;  %v4804_v41 = vmul.f32 -1.442695, %v703_v28  ;;  %v4805_v55 = vmul.f32 -1.442695, %v704_v31 }
 0x282   : > { %v4806_v59 = vmul.f32 -1.442695, %v705_v34  ;;  %v4807_v43 = vmul.f32 -1.442695, %v706_v36  ;;  %v4808_v44 = vmul.f32 -1.442695, %v707_v37 }
 0x283   : > { %5588 = vpow2.f32 %v4803_v40  ;;  %v4809_v47 = vmul.f32 -1.442695, %v708_v57  ;;  %v4810_v48 = vmul.f32 -1.442695, %v709_v58 }
 0x284   : > { %5590 = vpow2.f32 %v4804_v41 }
 0x285   : > { %5592 = vpow2.f32 %v4805_v55 }
 0x286   : > { %5594 = vpow2.f32 %v4806_v59  ;;  %v971_v59 = vld [vmem:[#allocation4 + $0x78] sm:$0xff] }
 0x287   : > { %5596 = vpow2.f32 %v4807_v43  ;;  %5229 = vmatprep.subr.mxu0 %v971_v59  ;;  %v968_v43 = vld [vmem:[#allocation4 + $0x60] sm:$0xff] }
 0x288   : > { %5598 = vpow2.f32 %v4808_v44  ;;  %5230 = vmatpush3.msra.mxu0 %v971_v59  ;;  %v964_v44 = vld [vmem:[#allocation4 + $0x40] sm:$0xff] }
 0x289   : > { %5600 = vpow2.f32 %v4809_v47  ;;  %v1307_v47 = vld [vmem:[#allocation4 + $0xb8] sm:$0xff] }
 0x28a   : > { %5602 = vpow2.f32 %v4810_v48  ;;  %v1306_v48 = vld [vmem:[#allocation4 + $0xb0] sm:$0xff] }
 0x290   : > { %v5589_v49 = vpop.eup %5588 }
 0x291   : > { %v5591_v50 = vpop.eup %5590  ;;  %v734_v52 = vadd.f32 1.0, %v5589_v49  ;;  %v1305_v49 = vld [vmem:[#allocation4 + $0xa8] sm:$0xff] }
 0x292   : > { %v5593_v53 = vpop.eup %5592  ;;  %v735_v60 = vadd.f32 1.0, %v5591_v50  ;;  %v1304_v50 = vld [vmem:[#allocation4 + $0xa0] sm:$0xff] }
 0x293   : > { %v5595_v62 = vpop.eup %5594  ;;  %5604 = vrcp.f32 %v734_v52  ;;  %v736_v42 = vadd.f32 1.0, %v5593_v53  ;;  %v1303_v52 = vld [vmem:[#allocation4 + $0x98] sm:$0xff]  ;;  %v1302_v53 = vld [vmem:[#allocation4 + $0x90] sm:$0xff] }
 0x294   : > { %v5597_v63 = vpop.eup %5596  ;;  %5606 = vrcp.f32 %v735_v60  ;;  %v737_v3 = vadd.f32 1.0, %v5595_v62  ;;  %v1301_v60 = vld [vmem:[#allocation4 + $0x88] sm:$0xff]  ;;  %v1300_v62 = vld [vmem:[#allocation4 + $0x80] sm:$0xff] }
 0x295   : > { %v5599_v4 = vpop.eup %5598  ;;  %5608 = vrcp.f32 %v736_v42  ;;  %v738_v5 = vadd.f32 1.0, %v5597_v63  ;;  %v777_v42 = vrot.slane %v6289_v33, %v6265_v14 }
 0x296   : > { %v5601_v8 = vpop.eup %5600  ;;  %5610 = vrcp.f32 %v737_v3  ;;  %v739_v9 = vadd.f32 1.0, %v5599_v4 }
 0x297   : > { %v5603_v11 = vpop.eup %5602  ;;  %5612 = vrcp.f32 %v738_v5  ;;  %v740_v12 = vadd.f32 1.0, %v5601_v8 }
 0x298   : > { %v741_v0 = vadd.f32 1.0, %v5603_v11  ;;  %5614 = vrcp.f32 %v739_v9 }
 0x299   : > { %5616 = vrcp.f32 %v740_v12 }
 0x29a   : > { %5618 = vrcp.f32 %v741_v0 }
 0x2a0   : > { %v5605_v13 = vpop.eup %5604 }
 0x2a1   : > { %v5607_v15 = vpop.eup %5606  ;;  %v758_v16 = vmul.f32 %v5605_v13, %v702_v22 }
 0x2a2   : > { %v5609_v18 = vpop.eup %5608  ;;  %v759_v19 = vmul.f32 %v5607_v15, %v703_v28 }
 0x2a3   : > { %v5611_v20 = vpop.eup %5610  ;;  %5217 = vmatprep.mubr.msk.f32.mxu1 %vm497_vm4, %v758_v16  ;;  %v760_v21 = vmul.f32 %v5609_v18, %v704_v31 }
 0x2a4   : > { %v5613_v24 = vpop.eup %5612  ;;  %5218 = vmatmul.mubr.msk.f32.vlgmr.msra.gmra.mxu1 %vm497_vm4, %v759_v19  ;;  %v761_v10 = vmul.f32 %v5611_v20, %v705_v34  ;;  %v970_v34 = vld [vmem:[#allocation4 + $0x70] sm:$0xff] }
 0x2a5   : > { %5220 = vmatprep.mubr.msk.f32.mxu1 %vm497_vm4, %v760_v21  ;;  %v5615_v23 = vpop.eup %5614  ;;  %v762_v40 = vmul.f32 %v5613_v24, %v706_v36  ;;  %5231 = vmatprep.subr.mxu0 %v970_v34  ;;  %v969_v36 = vld [vmem:[#allocation4 + $0x68] sm:$0xff] }
 0x2a6   : > { %v5617_v41 = vpop.eup %5616  ;;  %v763_v22 = vmul.f32 %v5615_v23, %v707_v37  ;;  %5232 = vmatpush3.msra.mxu0 %v970_v34  ;;  %v967_v37 = vld [vmem:[#allocation4 + $0x58] sm:$0xff]  ;;  %5258 = vmatpush3.msra.mxu1 %v1307_v47  ;;  %v6375_v47 = vpop.permute.xlu1 %297 }
 0x2a7   : > { %v5619_v55 = vpop.eup %5618  ;;  %v764_v28 = vmul.f32 %v5617_v41, %v708_v57  ;;  %5233 = vmatprep.subr.mxu0 %v969_v36  ;;  %v966_v57 = vld [vmem:[#allocation4 + $0x50] sm:$0xff]  ;;  %5259 = vmatprep.subr.mxu1 %v7282_v17 }
 0x2a8   : > { %5221 = vmatmul.mubr.msk.f32.gmra.mxu1 %vm497_vm4, %v761_v10  ;;  %v765_v31 = vmul.f32 %v5619_v55, %v709_v58  ;;  %5234 = vmatpush3.msra.mxu0 %v969_v36  ;;  %v965_v58 = vld [vmem:[#allocation4 + $0x48] sm:$0xff] }
 0x2a9   : > { %5223 = vmatprep.mubr.msk.f32.mxu1 %vm497_vm4, %v762_v40  ;;  %5235 = vmatprep.subr.mxu0 %v968_v43 }
 0x2aa   : > { %5236 = vmatpush3.msra.mxu0 %v968_v43  ;;  %5260 = vmatpush3.msra.mxu1 %v1306_v48 }
 0x2ab   : > { %5237 = vmatprep.subr.mxu0 %v967_v37  ;;  %5261 = vmatprep.subr.mxu1 %v7282_v17 }
 0x2ac   : > { %5224 = vmatmul.mubr.msk.f32.gmra.mxu1 %vm497_vm4, %v763_v22  ;;  %5238 = vmatpush3.msra.mxu0 %v967_v37 }
 0x2ad   : > { %5226 = vmatprep.mubr.msk.f32.mxu1 %vm497_vm4, %v764_v28  ;;  %5239 = vmatprep.subr.mxu0 %v966_v57 }
 0x2ae   : > { %5240 = vmatpush3.msra.mxu0 %v966_v57  ;;  %5262 = vmatpush3.msra.mxu1 %v1305_v49 }
 0x2af   : > { %5241 = vmatprep.subr.mxu0 %v965_v58  ;;  %5263 = vmatprep.subr.mxu1 %v7282_v17 }
 0x2b0   : > { %5227 = vmatmul.mubr.msk.f32.gmra.mxu1 %vm497_vm4, %v765_v31  ;;  %5242 = vmatpush3.msra.mxu0 %v965_v58 }
 0x2b1   : > { %5243 = vmatprep.subr.mxu0 %v964_v44  ;;  %5264 = vmatpush3.msra.mxu1 %v1304_v50 }
 0x2b2   : > { %5244 = vmatpush3.msra.mxu0 %v964_v44  ;;  %5265 = vmatprep.subr.mxu1 %v7282_v17 }
 0x2b3   : > { %5276 = vmatprep.subr.mxu0 %v7282_v17  ;;  %5266 = vmatpush3.msra.mxu1 %v1303_v52 }
 0x2b4   : > { %5273 = vmatprep.mubr.msk.f32.mxu1 %vm6078_vm5, %v7282_v17  ;;  %5267 = vmatprep.subr.mxu1 %v7282_v17 }
 0x2b5   : > { %5268 = vmatpush3.msra.mxu1 %v1302_v53 }
 0x2b6   : > { %5269 = vmatprep.subr.mxu1 %v7282_v17 }
 0x2b7   : > { %5270 = vmatpush3.msra.mxu1 %v1301_v60 }
 0x2b8   : > { %5271 = vmatprep.subr.mxu1 %v7282_v17 }
 0x2b9   : > { %5272 = vmatpush3.msra.mxu1 %v1300_v62  ;;  %v6377_v62 = vpop.permute.xlu1 %304 }
 0x364   : > { %v5219_v63 = vpop.f32.mrf.mxu1 }
 0x365   : > { %v874_v3 = vadd.f32 %v5219_v63, %v777_v42 }
 0x366   : > { %v868_v4 = vpop.f32.mrf.mxu1 }
 0x367   : > { %v4820_v5 = vmul.f32 -1.442695, %v874_v3  ;;  %v869_v8 = vadd.f32 %v868_v4, %v777_v42 }
 0x368   : > { %v5222_v9 = vpop.f32.mrf.mxu1 }
 0x369   : > { %5620 = vpow2.f32 %v4820_v5  ;;  %v4819_v11 = vmul.f32 -1.442695, %v869_v8  ;;  %v884_v12 = vadd.f32 %v5222_v9, %v777_v42 }
 0x36a   : > { %v878_v0 = vpop.f32.mrf.mxu1 }
 0x36b   : > { %5622 = vpow2.f32 %v4819_v11  ;;  %v4822_v13 = vmul.f32 -1.442695, %v884_v12  ;;  %v879_v15 = vadd.f32 %v878_v0, %v777_v42  ;;  %v6379_v0 = vpop.permute.xlu0 %290 }
 0x36c   : > { %v5225_v16 = vpop.f32.mrf.mxu1 }
 0x36d   : > { %5624 = vpow2.f32 %v4822_v13  ;;  %v4821_v18 = vmul.f32 -1.442695, %v879_v15  ;;  %v894_v19 = vadd.f32 %v5225_v16, %v777_v42  ;;  %v6381_v13 = vpop.permute.xlu1 %311 }
 0x36e   : > { %v888_v20 = vpop.f32.mrf.mxu1 }
 0x36f   : > { %5626 = vpow2.f32 %v4821_v18  ;;  %v4824_v21 = vmul.f32 -1.442695, %v894_v19  ;;  %v6366_v24 = vadd.f32 %v888_v20, %v777_v42 }
 0x370   : > { %v5228_v10 = vpop.f32.mrf.mxu1 }
 0x371   : > { %5628 = vpow2.f32 %v4824_v21  ;;  %v4823_v23 = vmul.f32 -1.442695, %v6366_v24  ;;  %v6369_v40 = vadd.f32 %v5228_v10, %v777_v42 }
 0x372   : > { %v898_v41 = vpop.f32.mrf.mxu1 }
 0x373   : > { %5630 = vpow2.f32 %v4823_v23  ;;  %v4826_v22 = vmul.f32 -1.442695, %v6369_v40  ;;  %v6372_v55 = vadd.f32 %v898_v41, %v777_v42 }
 0x375   : > { %5632 = vpow2.f32 %v4826_v22  ;;  %v4825_v28 = vmul.f32 -1.442695, %v6372_v55 }
 0x376   : > { %v5621_v31 = vpop.eup %5620 }
 0x377   : > { %v932_v59 = vadd.f32 1.0, %v5621_v31  ;;  %5634 = vpow2.f32 %v4825_v28 }
 0x378   : > { %v5623_v34 = vpop.eup %5622 }
 0x379   : > { %5636 = vrcp.f32 %v932_v59  ;;  %v931_v36 = vadd.f32 1.0, %v5623_v34  ;;  %v6394_v59 = vpop.permute.xlu0 %325 }
 0x37a   : > { %v5625_v43 = vpop.eup %5624 }
 0x37b   : > { %5638 = vrcp.f32 %v931_v36  ;;  %v934_v37 = vadd.f32 1.0, %v5625_v43 }
 0x37c   : > { %v5627_v57 = vpop.eup %5626 }
 0x37d   : > { %5640 = vrcp.f32 %v934_v37  ;;  %v933_v58 = vadd.f32 1.0, %v5627_v57 }
 0x37e   : > { %v5629_v44 = vpop.eup %5628 }
 0x37f   : > { %5642 = vrcp.f32 %v933_v58  ;;  %v936_v48 = vadd.f32 1.0, %v5629_v44 }
 0x380   : > { %v5631_v49 = vpop.eup %5630 }
 0x381   : > { %5644 = vrcp.f32 %v936_v48  ;;  %v935_v50 = vadd.f32 1.0, %v5631_v49 }
 0x382   : > { %v5633_v52 = vpop.eup %5632 }
 0x383   : > { %5646 = vrcp.f32 %v935_v50  ;;  %v938_v53 = vadd.f32 1.0, %v5633_v52 }
 0x384   : > { %v5635_v60 = vpop.eup %5634 }
 0x385   : > { %5648 = vrcp.f32 %v938_v53  ;;  %v937_v42 = vadd.f32 1.0, %v5635_v60  ;;  %v6409_v53 = vpop.permute.xlu0 %339 }
 0x386   : > { %v5637_v63 = vpop.eup %5636 }
 0x387   : > { %v956_v4 = vmul.f32 %v5637_v63, %v874_v3  ;;  %5650 = vrcp.f32 %v937_v42 }
 0x388   : > { %v5639_v5 = vpop.eup %5638 }
 0x389   : > { %v955_v9 = vmul.f32 %v5639_v5, %v869_v8  ;;  %v1277_v20 = vmul.f32 %v956_v4, %v6375_v47  ;;  %v6388_v8 = vpop.permute.xlu1 %318 }
 0x38a   : > { %v5641_v11 = vpop.eup %5640 }
 0x38b   : > { %v1276_v16 = vmul.f32 %v955_v9, %v6379_v0  ;;  %v958_v18 = vmul.f32 %v5641_v11, %v884_v12  ;;  %5245 = vmatprep.mubr.msk.f32.mxu0 %vm497_vm4, %v955_v9  ;;  %v1285_v22 = vsel %vm497_vm4, %v1277_v20, 0.0 }
 0x38c   : > { %v5643_v21 = vpop.eup %5642  ;;  %5246 = vmatmul.mubr.msk.f32.vlgmr.msra.gmra.mxu0 %vm497_vm4, %v956_v4 }
 0x38d   : > { %v1284_v3 = vsel %vm497_vm4, %v1276_v16, 0.0  ;;  %v957_v10 = vmul.f32 %v5643_v21, %v879_v15  ;;  %v1279_v12 = vmul.f32 %v958_v18, %v6381_v13  ;;  %v6405_v50 = vpop.permute.xlu1 %332  ;;  %v975_v16 = vrot.slane %v6289_v33, %v6315_v1 }
 0x38e   : > { %v5645_v23 = vpop.eup %5644  ;;  %v1286_v34 = vadd.f32 %v1285_v22, %v1284_v3 }
 0x38f   : > { %v960_v41 = vmul.f32 %v5645_v23, %v894_v19  ;;  %v1278_v28 = vmul.f32 %v957_v10, %v6377_v62  ;;  %5248 = vmatprep.mubr.msk.f32.mxu0 %vm497_vm4, %v957_v10  ;;  %v1289_v58 = vsel %vm497_vm4, %v1279_v12, 0.0 }
 0x390   : > { %v5647_v31 = vpop.eup %5646  ;;  %5249 = vmatmul.mubr.msk.f32.gmra.mxu0 %vm497_vm4, %v958_v18 }
 0x391   : > { %v959_v15 = vmul.f32 %v5647_v31, %v6366_v24  ;;  %v1287_v36 = vsel %vm497_vm4, %v1278_v28, 0.0  ;;  %v1281_v37 = vmul.f32 %v960_v41, %v6394_v59 }
 0x392   : > { %v5649_v43 = vpop.eup %5648  ;;  %v1288_v19 = vadd.f32 %v1287_v36, %v1286_v34 }
 0x393   : > { %v962_v57 = vmul.f32 %v5649_v43, %v6369_v40  ;;  %v1280_v44 = vmul.f32 %v959_v15, %v6388_v8  ;;  %5251 = vmatprep.mubr.msk.f32.mxu0 %vm497_vm4, %v959_v15  ;;  %v1293_v40 = vsel %vm497_vm4, %v1281_v37, 0.0 }
 0x394   : > { %v5651_v48 = vpop.eup %5650  ;;  %v1290_v49 = vadd.f32 %v1289_v58, %v1288_v19  ;;  %5252 = vmatmul.mubr.msk.f32.gmra.mxu0 %vm497_vm4, %v960_v41 }
 0x395   : > { %v961_v24 = vmul.f32 %v5651_v48, %v6372_v55  ;;  %v1291_v52 = vsel %vm497_vm4, %v1280_v44, 0.0  ;;  %v1283_v42 = vmul.f32 %v962_v57, %v6409_v53 }
 0x396   : > { %v1292_v60 = vadd.f32 %v1291_v52, %v1290_v49 }
 0x397   : > { %v1282_v63 = vmul.f32 %v961_v24, %v6405_v50  ;;  %5254 = vmatprep.mubr.msk.f32.mxu0 %vm497_vm4, %v961_v24  ;;  %v1297_v9 = vsel %vm497_vm4, %v1283_v42, 0.0 }
 0x398   : > { %v1294_v4 = vadd.f32 %v1293_v40, %v1292_v60  ;;  %5255 = vmatmul.mubr.msk.f32.gmra.mxu0 %vm497_vm4, %v962_v57 }
 0x399   : > { %v1295_v5 = vsel %vm497_vm4, %v1282_v63, 0.0  ;;  %5292 = vmatprep.mubr.msk.f32.mxu0 %vm6078_vm5, %v7282_v17 }
 0x39a   : > { %v1296_v55 = vadd.f32 %v1295_v5, %v1294_v4 }
 0x39c   : > { %v1298_v11 = vadd.f32 %v1297_v9, %v1296_v55 }
 0x39e   : > { %5274 = vmatmul.mubr.msk.f32.vlgmr.msra.gmra.mxu1 %vm497_vm4, %v1298_v11 }
 0x39f   : > { %1708 = vmatprep.mubr.f32.mxu1 %v7282_v17 }
 0x44c   : > { %v5247_v18 = vpop.f32.mrf.mxu0 }
 0x44d   : > { %v1072_v20 = vadd.f32 %v5247_v18, %v975_v16 }
 0x44e   : > { %v1066_v21 = vpop.f32.mrf.mxu0 }
 0x44f   : > { %v4836_v3 = vmul.f32 -1.442695, %v1072_v20  ;;  %v1067_v10 = vadd.f32 %v1066_v21, %v975_v16 }
 0x450   : > { %v5250_v23 = vpop.f32.mrf.mxu0 }
 0x451   : > { %5652 = vpow2.f32 %v4836_v3  ;;  %v4835_v41 = vmul.f32 -1.442695, %v1067_v10  ;;  %v1082_v22 = vadd.f32 %v5250_v23, %v975_v16 }
 0x452   : > { %v1076_v28 = vpop.f32.mrf.mxu0 }
 0x453   : > { %5654 = vpow2.f32 %v4835_v41  ;;  %v4838_v12 = vmul.f32 -1.442695, %v1082_v22  ;;  %v1077_v31 = vadd.f32 %v1076_v28, %v975_v16 }
 0x454   : > { %v5253_v34 = vpop.f32.mrf.mxu0 }
 0x455   : > { %5656 = vpow2.f32 %v4838_v12  ;;  %v4837_v15 = vmul.f32 -1.442695, %v1077_v31  ;;  %v1092_v36 = vadd.f32 %v5253_v34, %v975_v16  ;;  %v1164_v34 = vrot.slane %v6289_v33, %v6279_v29 }
 0x456   : > { %v1086_v43 = vpop.f32.mrf.mxu0 }
 0x457   : > { %5658 = vpow2.f32 %v4837_v15  ;;  %v4840_v19 = vmul.f32 -1.442695, %v1092_v36  ;;  %v1087_v37 = vadd.f32 %v1086_v43, %v975_v16 }
 0x458   : > { %v5256_v57 = vpop.f32.mrf.mxu0 }
 0x459   : > { %5660 = vpow2.f32 %v4840_v19  ;;  %v4839_v58 = vmul.f32 -1.442695, %v1087_v37  ;;  %v1102_v44 = vadd.f32 %v5256_v57, %v975_v16 }
 0x45a   : > { %v1096_v48 = vpop.f32.mrf.mxu0 }
 0x45b   : > { %5662 = vpow2.f32 %v4839_v58  ;;  %v4842_v49 = vmul.f32 -1.442695, %v1102_v44  ;;  %v1097_v24 = vadd.f32 %v1096_v48, %v975_v16 }
 0x45d   : > { %5664 = vpow2.f32 %v4842_v49  ;;  %v4841_v52 = vmul.f32 -1.442695, %v1097_v24 }
 0x45e   : > { %v5653_v60 = vpop.eup %5652  ;;  %v1377_v40 = vpop.f32.mrf.mxu1 }
 0x45f   : > { %v1130_v42 = vadd.f32 1.0, %v5653_v60  ;;  %5666 = vpow2.f32 %v4841_v52  ;;  %1382 = vrot.lane.b32.xlu1 %v1377_v40, %s6077_s22 }
 0x460   : > { %v5655_v63 = vpop.eup %5654  ;;  %v5275_v4 = vpop.f32.mrf.mxu1 }
 0x461   : > { %5668 = vrcp.f32 %v1130_v42  ;;  %v1129_v5 = vadd.f32 1.0, %v5655_v63 }
 0x462   : > { %v5657_v55 = vpop.eup %5656 }
 0x463   : > { %5670 = vrcp.f32 %v1129_v5  ;;  %v1132_v9 = vadd.f32 1.0, %v5657_v55 }
 0x464   : > { %v5659_v11 = vpop.eup %5658 }
 0x465   : > { %5672 = vrcp.f32 %v1132_v9  ;;  %v1131_v18 = vadd.f32 1.0, %v5659_v11 }
 0x466   : > { %v5661_v21 = vpop.eup %5660 }
 0x467   : > { %5674 = vrcp.f32 %v1131_v18  ;;  %v1134_v16 = vadd.f32 1.0, %v5661_v21  ;;  %v6079_v18 = vmov 0  }
 0x468   : > { %v5663_v3 = vpop.eup %5662  ;;  %5579 = vset.pattern.permute.xlu1 %v6079_v18  ;;  %5580 = vset.pattern.permute.xlu0 %v6079_v18 }
 0x469   : > { %5676 = vrcp.f32 %v1134_v16  ;;  %v1133_v23 = vadd.f32 1.0, %v5663_v3 }
 0x46a   : > { %v5665_v41 = vpop.eup %5664 }
 0x46b   : > { %5678 = vrcp.f32 %v1133_v23  ;;  %v1136_v28 = vadd.f32 1.0, %v5665_v41 }
 0x46c   : > { %v5667_v12 = vpop.eup %5666 }
 0x46d   : > { %5680 = vrcp.f32 %v1136_v28  ;;  %v1135_v15 = vadd.f32 1.0, %v5667_v12  ;;  %v1410_v12 = vld [vmem:[#allocation4 + $0xf8] sm:$0xff] }
 0x46e   : > { %v5669_v43 = vpop.eup %5668  ;;  %5277 = vmatpush3.msra.mxu0 %v1410_v12  ;;  %v1630_v12 = vld [vmem:[#allocation2 + $0xa8] sm:$0xff] }
 0x46f   : > { %v1154_v19 = vmul.f32 %v5669_v43, %v1072_v20  ;;  %5682 = vrcp.f32 %v1135_v15  ;;  %v1409_v15 = vld [vmem:[#allocation4 + $0xf0] sm:$0xff]  ;;  %5278 = vmatprep.subr.mxu0 %v7282_v17  ;;  %v1408_v43 = vld [vmem:[#allocation4 + $0xe8] sm:$0xff] }
 0x470   : > { %v5671_v57 = vpop.eup %5670  ;;  %5279 = vmatpush3.msra.mxu0 %v1409_v15  ;;  %v1629_v15 = vld [vmem:[#allocation2 + $0xa0] sm:$0xff] }
 0x471   : > { %v1153_v58 = vmul.f32 %v5671_v57, %v1067_v10  ;;  %v1166_v48 = vmul.f32 %v1164_v34, %v1154_v19  ;;  %5280 = vmatprep.subr.mxu0 %v7282_v17  ;;  %v1404_v19 = vld [vmem:[#allocation4 + $0xc8] sm:$0xff]  ;;  %v1403_v57 = vld [vmem:[#allocation4 + $0xc0] sm:$0xff] }
 0x472   : > { %v5673_v49 = vpop.eup %5672  ;;  %5281 = vmatpush3.msra.mxu0 %v1408_v43  ;;  %v1628_v43 = vld [vmem:[#allocation2 + $0x98] sm:$0xff] }
 0x473   : > { %v1176_v52 = vsel %vm497_vm4, %v1166_v48, 0.0  ;;  %v6428_v60 = vmul.f32 %v1164_v34, %v1153_v58  ;;  %v1156_v42 = vmul.f32 %v5673_v49, %v1082_v22  ;;  %5282 = vmatprep.subr.mxu0 %v7282_v17  ;;  %v1392_v49 = vpop.permute.xlu0 %1391 }
 0x474   : > { %v5675_v40 = vpop.eup %5674  ;;  %1177 = vadd.xlane.f32.xlu0 %v1176_v52 }
 0x475   : > { %v1155_v63 = vmul.f32 %v5675_v40, %v1077_v31  ;;  %v1168_v11 = vmul.f32 %v1164_v34, %v1156_v42 }
 0x476   : > { %v5677_v4 = vpop.eup %5676 }
 0x477   : > { %v1167_v5 = vmul.f32 %v1164_v34, %v1155_v63  ;;  %v1158_v55 = vmul.f32 %v5677_v4, %v1092_v36  ;;  %v1182_v22 = vsel %vm497_vm4, %v1168_v11, 0.0 }
 0x478   : > { %v5679_v33 = vpop.eup %5678 }
 0x479   : > { %v1157_v9 = vmul.f32 %v5679_v33, %v1087_v37  ;;  %v1179_v20 = vsel %vm497_vm4, %v1167_v5, 0.0  ;;  %v1170_v31 = vmul.f32 %v1164_v34, %v1158_v55  ;;  %v1262_v5 = vrot.slane %v6307_v56, %v6265_v14  ;;  %v1258_v55 = vpop.xlane.xlu0 %1257 }
 0x47a   : > { %v5681_v10 = vpop.eup %5680  ;;  %1180 = vadd.xlane.f32.xlu0 %v1179_v20 }
 0x47b   : > { %v1169_v21 = vmul.f32 %v1164_v34, %v1157_v9  ;;  %v1160_v3 = vmul.f32 %v5681_v10, %v1102_v44  ;;  %v1188_v36 = vsel %vm497_vm4, %v1170_v31, 0.0  ;;  %v1407_v44 = vld [vmem:[#allocation4 + $0xe0] sm:$0xff]  ;;  %v1263_v9 = vadd.f32 %v1262_v5, %v1258_v55  ;;  %v1635_v31 = vld [vmem:[#allocation2 + $0xd0] sm:$0xff] }
 0x47c   : > { %v5683_v16 = vpop.eup %5682  ;;  %5283 = vmatpush3.msra.mxu0 %v1407_v44  ;;  %v6451_v10 = vld [vmem:[%s6172_s14] sm:$0xff]  ;;  %v1627_v44 = vld [vmem:[#allocation2 + $0x90] sm:$0xff]  ;;  %v6462_v5 = vmul.f32 0.14285715, %v6375_v47 }
 0x47d   : > { %v1159_v23 = vmul.f32 %v5683_v16, %v1097_v24  ;;  %v1172_v37 = vmul.f32 %v1164_v34, %v1160_v3  ;;  %v1406_v24 = vld [vmem:[#allocation4 + $0xd8] sm:$0xff]  ;;  %5284 = vmatprep.subr.mxu0 %v7282_v17  ;;  %v1185_v20 = vsel %vm497_vm4, %v1169_v21, 0.0 }
 0x47e   : > { %1183 = vadd.xlane.f32.xlu0 %v1182_v22  ;;  %5285 = vmatpush3.msra.mxu0 %v1406_v24  ;;  %v1640_v3 = vld [vmem:[#allocation2 + $0xf8] sm:$0xff]  ;;  %v1637_v22 = vld [vmem:[#allocation2 + $0xe0] sm:$0xff]  ;;  %v1626_v24 = vld [vmem:[#allocation2 + $0x88] sm:$0xff] }
 0x47f   : > { %v1171_v41 = vmul.f32 %v1164_v34, %v1159_v23  ;;  %v1194_v28 = vsel %vm497_vm4, %v1172_v37, 0.0  ;;  %v1405_v34 = vld [vmem:[#allocation4 + $0xd0] sm:$0xff]  ;;  %5286 = vmatprep.subr.mxu0 %v7282_v17  ;;  %1660 = vmatprep.subr.mxu1 %v1640_v3  ;;  %v1636_v21 = vld [vmem:[#allocation2 + $0xd8] sm:$0xff] }
 0x480   : > { %5287 = vmatpush3.msra.mxu0 %v1405_v34  ;;  %v1639_v23 = vld [vmem:[#allocation2 + $0xf0] sm:$0xff]  ;;  %v1632_v37 = vld [vmem:[#allocation2 + $0xb8] sm:$0xff]  ;;  %v1625_v34 = vld [vmem:[#allocation2 + $0x80] sm:$0xff] }
 0x481   : > { %5288 = vmatprep.subr.mxu0 %v7282_v17  ;;  %v1191_v11 = vsel %vm497_vm4, %v1171_v41, 0.0  ;;  %1661 = vmatpush1.msra.mxu1 %v1639_v23  ;;  %v1634_v41 = vld [vmem:[#allocation2 + $0xc8] sm:$0xff]  ;;  %v6475_v23 = vmul.f32 0.14285715, %v6381_v13 }
 0x482   : > { %1189 = vadd.xlane.f32.xlu0 %v1188_v36  ;;  %5289 = vmatpush3.msra.mxu0 %v1404_v19  ;;  %v1633_v36 = vld [vmem:[#allocation2 + $0xc0] sm:$0xff] }
 0x483   : > { %5290 = vmatprep.subr.mxu0 %v7282_v17  ;;  %7308 = vst [vmem:[#allocation10_spill] sm:$0xff] %v6475_v23 }
 0x484   : > { %5291 = vmatpush3.msra.mxu0 %v1403_v57 }
 0x486   : > { %1195 = vadd.xlane.f32.xlu0 %v1194_v28  ;;  %v1631_v28 = vld [vmem:[#allocation2 + $0xb0] sm:$0xff] }
 0x4d1   : > { %v1383_v58 = vpop.permute.xlu1 %1382 }
 0x4d2   : > { %v1385_v48 = vadd.f32 %v1383_v58, %v6300_v39  ;;  %v1173_v39 = vsel %vm497_vm4, %v6428_v60, 0.0  ;;  %v1638_v60 = vld [vmem:[#allocation2 + $0xe8] sm:$0xff] }
 0x4d3   : > { %1662 = vmatprep.subr.mxu1 %v1638_v60 }
 0x4d4   : > { %v1394_v52 = vadd.f32 %v1392_v49, %v1385_v48  ;;  %1663 = vmatpush1.msra.mxu1 %v1637_v22 }
 0x4d5   : > { %1664 = vmatprep.subr.mxu1 %v1636_v21 }
 0x4d6   : > { %v4853_v40 = vmul.f32 -1.442695, %v1394_v52  ;;  %1665 = vmatpush1.msra.mxu1 %v1635_v31 }
 0x4d7   : > { %1666 = vmatprep.subr.mxu1 %v1634_v41 }
 0x4d8   : > { %5684 = vpow2.f32 %v4853_v40  ;;  %1667 = vmatpush1.msra.mxu1 %v1633_v36  ;;  %v6458_v40 = vmul.f32 0.14285715, %v6379_v0  ;;  %v6481_v36 = vmul.f32 0.14285715, %v6388_v8 }
 0x4d9   : > { %1668 = vmatprep.subr.mxu1 %v1632_v37 }
 0x4da   : > { %1669 = vmatpush1.msra.mxu1 %v1631_v28  ;;  %7309 = vst [vmem:[#allocation11_spill] sm:$0xff] %v6481_v36 }
 0x4db   : > { %1670 = vmatprep.subr.mxu1 %v1630_v12 }
 0x4dc   : > { %1671 = vmatpush1.msra.mxu1 %v1629_v15 }
 0x4dd   : > { %1672 = vmatprep.subr.mxu1 %v1628_v43 }
 0x4de   : > { %1673 = vmatpush1.msra.mxu1 %v1627_v44  ;;  %v6487_v44 = vmul.f32 0.14285715, %v6394_v59 }
 0x4df   : > { %1674 = vmatprep.subr.mxu1 %v1626_v24 }
 0x4e0   : > { %1675 = vmatpush1.msra.mxu1 %v1625_v34  ;;  %7310 = vst [vmem:[#allocation12_spill] sm:$0xff] %v6487_v44 }
 0x4e5   : > { %v5685_v42 = vpop.eup %5684 }
 0x4e6   : > { %v1398_v63 = vadd.f32 1.0, %v5685_v42 }
 0x4e8   : > { %5686 = vrcp.f32 %v1398_v63 }
 0x4f5   : > { %v5687_v4 = vpop.eup %5686 }
 0x4f6   : > { %v1401_v33 = vmul.f32 %v5687_v4, %v1394_v52 }
 0x4f8   : > { %1416 = vrot.lane.b32.xlu1 %v1401_v33, %s6077_s22 }
 0x4fc   : > { %1266 = vperm.xlu1 %5579, %v1263_v9  }
 0x4fd   : > { %v1178_v19 = vpop.xlane.xlu0 %1177 }
 0x4fe   : > { %v1198_v49 = vmul.f32 %v1178_v19, %v6208_v45  ;;  %v6468_v45 = vmul.f32 0.14285715, %v6377_v62 }
 0x500   : > { %v4844_v42 = vclamps-f32 %v1198_v49, 100.0 }
 0x502   : > { %v1222_v55 = vmul.f32 %v4844_v42, %v6462_v5  ;;  %v6498_v42 = vmul.f32 0.14285715, %v6409_v53 }
 0x503   : > { %v1181_v48 = vpop.xlane.xlu0 %1180 }
 0x504   : > { %v1199_v63 = vmul.f32 %v1181_v48, %v6211_v46  ;;  %7312 = vst [vmem:[#allocation14_spill] sm:$0xff] %v6498_v42 }
 0x506   : > { %v4845_v9 = vclamps-f32 %v1199_v63, 100.0 }
 0x507   : > { %v1184_v4 = vpop.xlane.xlu0 %1183 }
 0x508   : > { %v1223_v46 = vmul.f32 %v4845_v9, %v6468_v45 }
 0x520   : > { %1174 = vadd.xlane.f32.xlu1 %v1173_v39 }
 0x524   : > { %1186 = vadd.xlane.f32.xlu1 %v1185_v20 }
 0x528   : > { %1192 = vadd.xlane.f32.xlu1 %v1191_v11  ;;  %v1230_v11 = vsel %vm256_vm0, %v1222_v55, 0.0 }
 0x56a   : > { %v1417_v18 = vpop.permute.xlu1 %1416 }
 0x56b   : > { %5293 = vmatmul.mubr.msk.f32.vlgmr.msra.gmra.mxu0 %vm497_vm4, %v1417_v18 }
 0x577   : > { %v1267_v56 = vpop.permute.xlu1 %1266 }
 0x578   : > { %v1269_v16 = vmul.f32 %v6451_v10, %v1267_v56 }
 0x57a   : > { %1271 = vrot.lane.b32.xlu1 %v1269_v16, %s6074_s15  ;;  %v1190_v16 = vpop.xlane.xlu0 %1189 }
 0x57b   : > { %v1202_v22 = vmul.f32 %v1190_v16, %v6242_v2 }
 0x57e   : > { %v1196_v15 = vpop.xlane.xlu0 %1195 }
 0x57f   : > { %v1204_v24 = vmul.f32 %v1196_v15, %v6219_v51 }
 0x581   : > { %v4850_v49 = vclamps-f32 %v1204_v24, 100.0 }
 0x583   : > { %v1228_v63 = vmul.f32 %v4850_v49, %v6498_v42 }
 0x5a9   : > { %v1175_v57 = vpop.xlane.xlu1 %1174 }
 0x5aa   : > { %v1197_v58 = vmul.f32 %v1175_v57, %v6200_v38  ;;  %v1200_v38 = vmul.f32 %v1184_v4, %v6225_v54  ;;  %v1232_v54 = vsel %vm256_vm0, %v1223_v46, 0.0 }
 0x5ac   : > { %v4843_v52 = vclamps-f32 %v1197_v58, 100.0  ;;  %v4846_v18 = vclamps-f32 %v1200_v38, 100.0  ;;  %v6493_v58 = vmul.f32 0.14285715, %v6405_v50 }
 0x5ad   : > { %v1187_v39 = vpop.xlane.xlu1 %1186 }
 0x5ae   : > { %v1221_v33 = vmul.f32 %v4843_v52, %v6458_v40  ;;  %v1201_v56 = vmul.f32 %v1187_v39, %v6235_v61  ;;  %v1224_v60 = vmul.f32 %v4846_v18, %v6475_v23  ;;  %v4848_v61 = vclamps-f32 %v1202_v22, 100.0  ;;  %7311 = vst [vmem:[#allocation13_spill] sm:$0xff] %v6493_v58 }
 0x5b0   : > { %v1229_v20 = vsel %vm256_vm0, %v1221_v33, 0.0  ;;  %v4847_v21 = vclamps-f32 %v1201_v56, 100.0  ;;  %v1234_v37 = vsel %vm256_vm0, %v1224_v60, 0.0  ;;  %v1226_v2 = vmul.f32 %v4848_v61, %v6487_v44 }
 0x5b1   : > { %v1231_v3 = vadd.f32 %v1230_v11, %v1229_v20  ;;  %v1193_v41 = vpop.xlane.xlu1 %1192  ;;  %v1242_v33 = vsel %vm256_vm0, %v1228_v63, 0.0 }
 0x5b2   : > { %v1225_v28 = vmul.f32 %v4847_v21, %v6481_v36  ;;  %v1203_v12 = vmul.f32 %v1193_v41, %v6249_v6  ;;  %v1238_v48 = vsel %vm256_vm0, %v1226_v2, 0.0 }
 0x5b3   : > { %v1233_v31 = vadd.f32 %v1232_v54, %v1231_v3 }
 0x5b4   : > { %v1236_v34 = vsel %vm256_vm0, %v1225_v28, 0.0  ;;  %v4849_v19 = vclamps-f32 %v1203_v12, 100.0 }
 0x5b5   : > { %v1235_v43 = vadd.f32 %v1234_v37, %v1233_v31 }
 0x5b6   : > { %v1227_v6 = vmul.f32 %v4849_v19, %v6493_v58 }
 0x5b7   : > { %v1237_v57 = vadd.f32 %v1236_v34, %v1235_v43 }
 0x5b8   : > { %v1240_v51 = vsel %vm256_vm0, %v1227_v6, 0.0 }
 0x5b9   : > { %v1239_v52 = vadd.f32 %v1238_v48, %v1237_v57 }
 0x5bb   : > { %v1241_v4 = vadd.f32 %v1240_v51, %v1239_v52 }
 0x5bd   : > { %v1243_v55 = vadd.f32 %v1242_v33, %v1241_v4 }
 0x5ec   : > { %v1272_v9 = vpop.permute.xlu1 %1271 }
 0x5ed   : > { %v1274_v38 = vadd.f32 %v1272_v9, %v1243_v55 }
 0x5ef   : > { %v6504_v39 = vadd.f32 %v6451_v10, %v1274_v38 }
 0x5f1   : > { %7313 = vst [vmem:[#allocation15_spill] sm:$0xff] %v6504_v39  ;;  %v1502_v20 = vrot.slane %v6504_v39, %v6187_v27  ;;  %v1495_v11 = vcombine.high %v6504_v39, %v6504_v39 }
 0x5f3   : > { %v1518_v46 = vrot.slane %v1502_v20, %v6187_v27  ;;  %v1509_v18 = vrot.slane %v1495_v11, %v6187_v27  ;;  %v1510_v56 = vcombine.high %v1502_v20, %v1502_v20 }
 0x5f5   : > { %v1547_v16 = vrot.slane %v1518_v46, %v6193_v30  ;;  %v1525_v3 = vrot.slane %v1509_v18, %v6187_v27  ;;  %v1532_v54 = vrot.slane %v1510_v56, %v6187_v27  ;;  %v1540_v60 = vcombine.high %v1518_v46, %v1518_v46  ;;  %v5997_v56 = vld [vmem:[%s7280_s4] sm:$0xff] }
 0x5f6   : > { %v1511_v10 = vcombine.high %v1509_v18, %v1509_v18 }
 0x5f7   : > { %v6516_v22 = vsub.f32 %v1547_v16, %v6504_v39  ;;  %v1563_v21 = vrot.slane %v1525_v3, %v6193_v30  ;;  %v1551_v31 = vrot.slane %v1532_v54, %v6193_v30  ;;  %v1555_v41 = vrot.slane %v1540_v60, %v6193_v30 }
 0x5f8   : > { %v1542_v37 = vcombine.high %v1532_v54, %v1532_v54  ;;  %v6533_v43 = vrot.slane %v1511_v10, %v6187_v27  ;;  %v1541_v48 = vcombine.high %v1525_v3, %v1525_v3  ;;  %v1414_v16 = vrot.slane %v5997_v56, %v6274_v26 }
 0x5f9   : > { %v1592_v61 = vmul.f32 %v6516_v22, %v6516_v22  ;;  %v6524_v28 = vsub.f32 %v1563_v21, %v6504_v39  ;;  %v6527_v12 = vsub.f32 %v1551_v31, %v6504_v39  ;;  %v6530_v15 = vsub.f32 %v1555_v41, %v6504_v39  ;;  %v1917_v21 = vld [vmem:[#allocation4 + $0x138] sm:$0xff]  ;;  %v1916_v31 = vld [vmem:[#allocation4 + $0x130] sm:$0xff]  ;;  %v1915_v41 = vld [vmem:[#allocation4 + $0x128] sm:$0xff] }
 0x5fa   : > { %v1559_v19 = vrot.slane %v1542_v37, %v6193_v30  ;;  %v1567_v63 = vrot.slane %v6533_v43, %v6193_v30  ;;  %v1571_v55 = vrot.slane %v1541_v48, %v6193_v30  ;;  %5295 = vmatprep.subr.mxu0 %v1917_v21  ;;  %v1914_v37 = vld [vmem:[#allocation4 + $0x120] sm:$0xff] }
 0x5fb   : > { %v1600_v2 = vsel %vm256_vm0, %v1592_v61, 0.0  ;;  %v1596_v24 = vmul.f32 %v6524_v28, %v6524_v28  ;;  %v1593_v34 = vmul.f32 %v6527_v12, %v6527_v12  ;;  %v1594_v6 = vmul.f32 %v6530_v15, %v6530_v15  ;;  %5296 = vmatpush3.msra.mxu0 %v1917_v21  ;;  %v1913_v61 = vld [vmem:[#allocation4 + $0x118] sm:$0xff] }
 0x5fc   : > { %1601 = vadd.xlane.f32.xlu0 %v1600_v2  ;;  %v6546_v52 = vsub.f32 %v1559_v19, %v6504_v39  ;;  %v6554_v33 = vsub.f32 %v1567_v63, %v6504_v39  ;;  %v6561_v20 = vsub.f32 %v1571_v55, %v6504_v39  ;;  %5297 = vmatprep.subr.mxu0 %v1916_v31  ;;  %v1912_v2 = vld [vmem:[#allocation4 + $0x110] sm:$0xff] }
 0x5fd   : > { %v1612_v57 = vsel %vm256_vm0, %v1596_v24, 0.0  ;;  %v1603_v49 = vsel %vm256_vm0, %v1593_v34, 0.0  ;;  %v1606_v51 = vsel %vm256_vm0, %v1594_v6, 0.0  ;;  %5298 = vmatpush3.msra.mxu0 %v1916_v31  ;;  %v1910_v24 = vld [vmem:[#allocation4 + $0x100] sm:$0xff]  ;;  %v1543_v19 = vcombine.high %v6533_v43, %v6533_v43 }
 0x5fe   : > { %1613 = vadd.xlane.f32.xlu1 %v1612_v57  ;;  %v1595_v4 = vmul.f32 %v6546_v52, %v6546_v52  ;;  %v1597_v38 = vmul.f32 %v6554_v33, %v6554_v33  ;;  %v1598_v46 = vmul.f32 %v6561_v20, %v6561_v20  ;;  %5299 = vmatprep.subr.mxu0 %v1915_v41 }
 0x5ff   : > { %5300 = vmatpush3.msra.mxu0 %v1915_v41  ;;  %v1575_v57 = vrot.slane %v1543_v19, %v6193_v30 }
 0x600   : > { %1604 = vadd.xlane.f32.xlu0 %v1603_v49  ;;  %v1609_v9 = vsel %vm256_vm0, %v1595_v4, 0.0  ;;  %v1615_v11 = vsel %vm256_vm0, %v1597_v38, 0.0  ;;  %v1618_v18 = vsel %vm256_vm0, %v1598_v46, 0.0  ;;  %5301 = vmatprep.subr.mxu0 %v1914_v37  ;;  %v6592_v46 = vld [vmem:[%s7280_s4 + $0x10] sm:$0xff] }
 0x601   : > { %5302 = vmatpush3.msra.mxu0 %v1914_v37  ;;  %v6582_v48 = vsub.f32 %v1575_v57, %v6504_v39 }
 0x602   : > { %5303 = vmatprep.subr.mxu0 %v1913_v61 }
 0x603   : > { %5304 = vmatpush3.msra.mxu0 %v1913_v61  ;;  %v1599_v49 = vmul.f32 %v6582_v48, %v6582_v48 }
 0x604   : > { %1607 = vadd.xlane.f32.xlu0 %v1606_v51  ;;  %5305 = vmatprep.subr.mxu0 %v1912_v2 }
 0x605   : > { %5306 = vmatpush3.msra.mxu0 %v1912_v2  ;;  %v1621_v6 = vsel %vm256_vm0, %v1599_v49, 0.0 }
 0x608   : > { %1610 = vadd.xlane.f32.xlu0 %v1609_v9 }
 0x60c   : > { %1616 = vadd.xlane.f32.xlu0 %v1615_v11 }
 0x610   : > { %1619 = vadd.xlane.f32.xlu0 %v1618_v18 }
 0x62b   : > { %v1486_v3 = vpop.f32.mrf.mxu0 }
 0x62c   : > { %v1487_v54 = vadd.f32 %v1486_v3, %v1414_v16 }
 0x62d   : > { %v5294_v60 = vpop.f32.mrf.mxu0 }
 0x62e   : > { %v6572_v10 = vadd.f32 %v1487_v54, %v6269_v25  ;;  %v1911_v25 = vld [vmem:[#allocation4 + $0x108] sm:$0xff]  ;;  %v6599_v60 = vrot.slane %v6592_v46, %v6324_v7 }
 0x62f   : > { %5307 = vmatprep.subr.mxu0 %v1911_v25 }
 0x630   : > { %4857 = vmatmul.mubr.msk.f32.vlgmr.msra.gmra.mxu1 %vm497_vm4, %v6572_v10  ;;  %5308 = vmatpush3.msra.mxu0 %v1911_v25 }
 0x631   : > { %5309 = vmatprep.subr.mxu0 %v1910_v24 }
 0x632   : > { %5310 = vmatpush3.msra.mxu0 %v1910_v24 }
 0x633   : > { %5351 = vmatprep.subr.mxu0 %v7282_v17 }
 0x685   : > { %v1602_v63 = vpop.xlane.xlu0 %1601 }
 0x686   : > { %v1825_v25 = vmul.f32 %v6599_v60, %v1602_v63 }
 0x687   : > { %v1614_v21 = vpop.xlane.xlu1 %1613 }
 0x688   : > { %v1829_v24 = vmul.f32 %v6599_v60, %v1614_v21 }
 0x689   : > { %v1605_v51 = vpop.xlane.xlu0 %1604 }
 0x68d   : > { %v1608_v4 = vpop.xlane.xlu0 %1607 }
 0x68e   : > { %v1827_v19 = vmul.f32 %v6599_v60, %v1608_v4 }
 0x691   : > { %v1611_v9 = vpop.xlane.xlu0 %1610 }
 0x692   : > { %v1828_v57 = vmul.f32 %v6599_v60, %v1611_v9  ;;  %v6622_v9 = vrot.slane %v6592_v46, %v6193_v30 }
 0x695   : > { %v1617_v18 = vpop.xlane.xlu0 %1616 }
 0x696   : > { %v1830_v49 = vmul.f32 %v6599_v60, %v1617_v18 }
 0x699   : > { %v1620_v37 = vpop.xlane.xlu0 %1619 }
 0x6f0   : > { %v1710_v34 = vpop.f32.mrf.mxu1 }
 0x6f1   : > { %1810 = vrot.lane.b32.xlu0 %v1710_v34, %s6077_s22  ;;  %v1728_v55 = vrot.slane %v1710_v34, %v6187_v27  ;;  %v1721_v38 = vcombine.high %v1710_v34, %v1710_v34  ;;  %v1826_v34 = vmul.f32 %v6599_v60, %v1605_v51 }
 0x6f3   : > { %v1736_v11 = vcombine.high %v1728_v55, %v1728_v55  ;;  %v1735_v43 = vrot.slane %v1721_v38, %v6187_v27  ;;  %v1744_v56 = vrot.slane %v1728_v55, %v6187_v27 }
 0x6f5   : > { %v1758_v16 = vrot.slane %v1736_v11, %v6187_v27  ;;  %v1737_v3 = vcombine.high %v1735_v43, %v1735_v43  ;;  %v1751_v54 = vrot.slane %v1735_v43, %v6187_v27  ;;  %v1766_v31 = vcombine.high %v1744_v56, %v1744_v56 }
 0x6f7   : > { %v1768_v41 = vcombine.high %v1758_v16, %v1758_v16  ;;  %v6602_v61 = vrot.slane %v1737_v3, %v6187_v27  ;;  %v1767_v2 = vcombine.high %v1751_v54, %v1751_v54  ;;  %v1777_v55 = vrot.slane %v1758_v16, %v6193_v30 }
 0x6f8   : > { %v1781_v38 = vrot.slane %v1766_v31, %v6193_v30  ;;  %v1789_v63 = vrot.slane %v1751_v54, %v6193_v30  ;;  %v1831_v54 = vmul.f32 %v6599_v60, %v1620_v37 }
 0x6f9   : > { %v1785_v11 = vrot.slane %v1768_v41, %v6193_v30  ;;  %v1793_v43 = vrot.slane %v6602_v61, %v6193_v30  ;;  %v1797_v51 = vrot.slane %v1767_v2, %v6193_v30 }
 0x710   : > { %1622 = vadd.xlane.f32.xlu0 %v1621_v6  ;;  %v1773_v6 = vrot.slane %v1744_v56, %v6193_v30 }
 0x763   : > { %v6618_v4 = vpop.permute.xlu0 %1810 }
 0x764   : > { %v1813_v18 = vadd.f32 %v6618_v4, %v1773_v6  ;;  %v1814_v56 = vadd.f32 %v6618_v4, %v1777_v55  ;;  %v1815_v16 = vadd.f32 %v6618_v4, %v1781_v38  ;;  %v1816_v3 = vadd.f32 %v6618_v4, %v1785_v11 }
 0x765   : > { %v1817_v21 = vadd.f32 %v6618_v4, %v1789_v63  ;;  %v1818_v31 = vadd.f32 %v6618_v4, %v1793_v43  ;;  %v1819_v41 = vadd.f32 %v6618_v4, %v1797_v51 }
 0x766   : > { %v1833_v2 = vadd.f32 %v1825_v25, %v1813_v18  ;;  %v1834_v17 = vadd.f32 %v1826_v34, %v1814_v56  ;;  %v1835_v7 = vadd.f32 %v1827_v19, %v1815_v16  ;;  %v1836_v27 = vadd.f32 %v1828_v57, %v1816_v3 }
 0x767   : > { %v1837_v39 = vadd.f32 %v1829_v24, %v1817_v21  ;;  %v1838_v6 = vadd.f32 %v1830_v49, %v1818_v31  ;;  %v1839_v42 = vadd.f32 %v1831_v54, %v1819_v41 }
 0x768   : > { %v1845_v55 = vadd.f32 %v6622_v9, %v1833_v2  ;;  %v1846_v38 = vadd.f32 %v6622_v9, %v1834_v17  ;;  %v1847_v11 = vadd.f32 %v6622_v9, %v1835_v7  ;;  %v1848_v37 = vadd.f32 %v6622_v9, %v1836_v27 }
 0x769   : > { %v1849_v63 = vadd.f32 %v6622_v9, %v1837_v39  ;;  %v1850_v43 = vadd.f32 %v6622_v9, %v1838_v6  ;;  %v1851_v19 = vadd.f32 %v6622_v9, %v1839_v42 }
 0x76a   : > { %v4858_v51 = vmul.f32 -1.442695, %v1845_v55  ;;  %v4859_v25 = vmul.f32 -1.442695, %v1846_v38  ;;  %v4860_v34 = vmul.f32 -1.442695, %v1847_v11 }
 0x76b   : > { %v4861_v24 = vmul.f32 -1.442695, %v1848_v37  ;;  %v4862_v57 = vmul.f32 -1.442695, %v1849_v63  ;;  %v4863_v49 = vmul.f32 -1.442695, %v1850_v43 }
 0x76c   : > { %5688 = vpow2.f32 %v4858_v51  ;;  %v4864_v17 = vmul.f32 -1.442695, %v1851_v19 }
 0x76d   : > { %5690 = vpow2.f32 %v4859_v25 }
 0x76e   : > { %5692 = vpow2.f32 %v4860_v34 }
 0x76f   : > { %5694 = vpow2.f32 %v4861_v24 }
 0x770   : > { %5696 = vpow2.f32 %v4862_v57 }
 0x771   : > { %5698 = vpow2.f32 %v4863_v49 }
 0x772   : > { %5700 = vpow2.f32 %v4864_v17 }
 0x779   : > { %v5689_v27 = vpop.eup %5688 }
 0x77a   : > { %v5691_v7 = vpop.eup %5690  ;;  %v1877_v39 = vadd.f32 1.0, %v5689_v27 }
 0x77b   : > { %v5693_v18 = vpop.eup %5692  ;;  %v1878_v56 = vadd.f32 1.0, %v5691_v7 }
 0x77c   : > { %v5695_v16 = vpop.eup %5694  ;;  %5702 = vrcp.f32 %v1877_v39  ;;  %v1879_v3 = vadd.f32 1.0, %v5693_v18 }
 0x77d   : > { %v5697_v42 = vpop.eup %5696  ;;  %5704 = vrcp.f32 %v1878_v56  ;;  %v1880_v54 = vadd.f32 1.0, %v5695_v16 }
 0x77e   : > { %v5699_v21 = vpop.eup %5698  ;;  %5706 = vrcp.f32 %v1879_v3  ;;  %v1881_v31 = vadd.f32 1.0, %v5697_v42 }
 0x77f   : > { %v5701_v41 = vpop.eup %5700  ;;  %5708 = vrcp.f32 %v1880_v54  ;;  %v1882_v2 = vadd.f32 1.0, %v5699_v21 }
 0x780   : > { %5710 = vrcp.f32 %v1881_v31  ;;  %v1883_v6 = vadd.f32 1.0, %v5701_v41  ;;  %v7314_v41 = vmov 0.0  }
 0x781   : > { %5712 = vrcp.f32 %v1882_v2  ;;  %v2115_v2 = vld [vmem:[#allocation4 + $0x178] sm:$0xff] }
 0x782   : > { %5714 = vrcp.f32 %v1883_v6  ;;  %5323 = vmatprep.subr.mxu1 %v2115_v2  ;;  %v2111_v6 = vld [vmem:[#allocation4 + $0x158] sm:$0xff] }
 0x783   : > { %5324 = vmatpush3.msra.mxu1 %v2115_v2 }
 0x789   : > { %v5703_v51 = vpop.eup %5702 }
 0x78a   : > { %v5705_v25 = vpop.eup %5704  ;;  %v1901_v34 = vmul.f32 %v5703_v51, %v1845_v55  ;;  %v2110_v51 = vld [vmem:[#allocation4 + $0x150] sm:$0xff] }
 0x78b   : > { %v5707_v24 = vpop.eup %5706  ;;  %v1902_v57 = vmul.f32 %v5705_v25, %v1846_v38  ;;  %v1769_v38 = vcombine.high %v6602_v61, %v6602_v61  ;;  %v2109_v25 = vld [vmem:[#allocation4 + $0x148] sm:$0xff] }
 0x78c   : > { %v5709_v49 = vpop.eup %5708  ;;  %5311 = vmatprep.mubr.msk.f32.mxu0 %vm497_vm4, %v1901_v34  ;;  %v1903_v17 = vmul.f32 %v5707_v24, %v1847_v11  ;;  %v2108_v34 = vld [vmem:[#allocation4 + $0x140] sm:$0xff]  ;;  %v2451_v24 = vld [vmem:[#allocation4 + $0x1b8] sm:$0xff] }
 0x78d   : > { %v5711_v27 = vpop.eup %5710  ;;  %5312 = vmatmul.mubr.msk.f32.vlgmr.msra.gmra.mxu0 %vm497_vm4, %v1902_v57  ;;  %v1904_v7 = vmul.f32 %v5709_v49, %v1848_v37  ;;  %v1801_v11 = vrot.slane %v1769_v38, %v6193_v30  ;;  %v2450_v57 = vld [vmem:[#allocation4 + $0x1b0] sm:$0xff]  ;;  %v2449_v49 = vld [vmem:[#allocation4 + $0x1a8] sm:$0xff] }
 0x78e   : > { %5314 = vmatprep.mubr.msk.f32.mxu0 %vm497_vm4, %v1903_v17  ;;  %v5713_v39 = vpop.eup %5712  ;;  %v1905_v18 = vmul.f32 %v5711_v27, %v1849_v63  ;;  %5352 = vmatpush3.msra.mxu0 %v2451_v24  ;;  %v2448_v17 = vld [vmem:[#allocation4 + $0x1a0] sm:$0xff]  ;;  %v2447_v27 = vld [vmem:[#allocation4 + $0x198] sm:$0xff] }
 0x78f   : > { %v5715_v56 = vpop.eup %5714  ;;  %v1906_v55 = vmul.f32 %v5713_v39, %v1850_v43  ;;  %v1820_v37 = vadd.f32 %v6618_v4, %v1801_v11  ;;  %v2114_v4 = vld [vmem:[#allocation4 + $0x170] sm:$0xff]  ;;  %5353 = vmatprep.subr.mxu0 %v7314_v41  ;;  %v2445_v39 = vld [vmem:[#allocation4 + $0x188] sm:$0xff] }
 0x790   : > { %v1907_v16 = vmul.f32 %v5715_v56, %v1851_v19  ;;  %5325 = vmatprep.subr.mxu1 %v2114_v4  ;;  %5354 = vmatpush3.msra.mxu0 %v2450_v57  ;;  %v6665_v56 = vrot.slane %v6592_v46, %v6265_v14 }
 0x791   : > { %5315 = vmatmul.mubr.msk.f32.gmra.mxu0 %vm497_vm4, %v1904_v7  ;;  %5326 = vmatpush3.msra.mxu1 %v2114_v4  ;;  %v2446_v7 = vld [vmem:[#allocation4 + $0x190] sm:$0xff] }
 0x792   : > { %5317 = vmatprep.mubr.msk.f32.mxu0 %vm497_vm4, %v1905_v18  ;;  %5355 = vmatprep.subr.mxu0 %v7314_v41  ;;  %v2444_v18 = vld [vmem:[#allocation4 + $0x180] sm:$0xff] }
 0x793   : > { %5356 = vmatpush3.msra.mxu0 %v2449_v49 }
 0x794   : > { %5357 = vmatprep.subr.mxu0 %v7314_v41 }
 0x795   : > { %5318 = vmatmul.mubr.msk.f32.gmra.mxu0 %vm497_vm4, %v1906_v55 }
 0x796   : > { %5320 = vmatprep.mubr.msk.f32.mxu0 %vm497_vm4, %v1907_v16  ;;  %5358 = vmatpush3.msra.mxu0 %v2448_v17 }
 0x797   : > { %5359 = vmatprep.subr.mxu0 %v7314_v41 }
 0x798   : > { %5360 = vmatpush3.msra.mxu0 %v2447_v27 }
 0x799   : > { %v1623_v3 = vpop.xlane.xlu0 %1622  ;;  %5361 = vmatprep.subr.mxu0 %v7314_v41 }
 0x79a   : > { %v1832_v63 = vmul.f32 %v6599_v60, %v1623_v3  ;;  %v2113_v60 = vld [vmem:[#allocation4 + $0x168] sm:$0xff]  ;;  %5362 = vmatpush3.msra.mxu0 %v2446_v7 }
 0x79b   : > { %5327 = vmatprep.subr.mxu1 %v2113_v60  ;;  %5363 = vmatprep.subr.mxu0 %v7314_v41 }
 0x79c   : > { %v1840_v42 = vadd.f32 %v1832_v63, %v1820_v37  ;;  %5328 = vmatpush3.msra.mxu1 %v2113_v60  ;;  %5364 = vmatpush3.msra.mxu0 %v2445_v39 }
 0x79d   : > { %5365 = vmatprep.subr.mxu0 %v7314_v41 }
 0x79e   : > { %v1852_v54 = vadd.f32 %v6622_v9, %v1840_v42  ;;  %v2112_v9 = vld [vmem:[#allocation4 + $0x160] sm:$0xff]  ;;  %5366 = vmatpush3.msra.mxu0 %v2444_v18 }
 0x79f   : > { %5329 = vmatprep.subr.mxu1 %v2112_v9 }
 0x7a0   : > { %v4865_v21 = vmul.f32 -1.442695, %v1852_v54  ;;  %5330 = vmatpush3.msra.mxu1 %v2112_v9 }
 0x7a1   : > { %5331 = vmatprep.subr.mxu1 %v2111_v6 }
 0x7a2   : > { %5716 = vpow2.f32 %v4865_v21  ;;  %5332 = vmatpush3.msra.mxu1 %v2111_v6 }
 0x7a3   : > { %5333 = vmatprep.subr.mxu1 %v2110_v51 }
 0x7a4   : > { %5334 = vmatpush3.msra.mxu1 %v2110_v51 }
 0x7a5   : > { %5335 = vmatprep.subr.mxu1 %v2109_v25 }
 0x7a6   : > { %5336 = vmatpush3.msra.mxu1 %v2109_v25 }
 0x7a7   : > { %5337 = vmatprep.subr.mxu1 %v2108_v34 }
 0x7a8   : > { %5338 = vmatpush3.msra.mxu1 %v2108_v34 }
 0x7a9   : > { %5370 = vmatprep.subr.mxu1 %v7314_v41 }
 0x7af   : > { %v5717_v43 = vpop.eup %5716 }
 0x7b0   : > { %v1884_v19 = vadd.f32 1.0, %v5717_v43 }
 0x7b2   : > { %5718 = vrcp.f32 %v1884_v19 }
 0x7bf   : > { %v5719_v61 = vpop.eup %5718 }
 0x7c0   : > { %v1908_v31 = vmul.f32 %v5719_v61, %v1852_v54 }
 0x7c2   : > { %5321 = vmatmul.mubr.msk.f32.gmra.mxu0 %vm497_vm4, %v1908_v31 }
 0x7c3   : > { %5367 = vmatprep.mubr.msk.f32.mxu0 %vm6078_vm5, %v7314_v41 }
 0x84d   : > { %v5313_v55 = vpop.f32.mrf.mxu0 }
 0x84e   : > { %v2018_v16 = vadd.f32 %v5313_v55, %v6665_v56 }
 0x84f   : > { %v2012_v38 = vpop.f32.mrf.mxu0 }
 0x850   : > { %v4875_v11 = vmul.f32 -1.442695, %v2018_v16  ;;  %v2013_v3 = vadd.f32 %v2012_v38, %v6665_v56 }
 0x851   : > { %v5316_v37 = vpop.f32.mrf.mxu0 }
 0x852   : > { %5720 = vpow2.f32 %v4875_v11  ;;  %v4874_v63 = vmul.f32 -1.442695, %v2013_v3  ;;  %v2028_v42 = vadd.f32 %v5316_v37, %v6665_v56 }
 0x853   : > { %v2022_v54 = vpop.f32.mrf.mxu0 }
 0x854   : > { %5722 = vpow2.f32 %v4874_v63  ;;  %v4877_v21 = vmul.f32 -1.442695, %v2028_v42  ;;  %v2023_v43 = vadd.f32 %v2022_v54, %v6665_v56 }
 0x855   : > { %v5319_v19 = vpop.f32.mrf.mxu0 }
 0x856   : > { %5724 = vpow2.f32 %v4877_v21  ;;  %v4876_v61 = vmul.f32 -1.442695, %v2023_v43  ;;  %v2038_v31 = vadd.f32 %v5319_v19, %v6665_v56 }
 0x857   : > { %v2032_v2 = vpop.f32.mrf.mxu0 }
 0x858   : > { %5726 = vpow2.f32 %v4876_v61  ;;  %v4879_v4 = vmul.f32 -1.442695, %v2038_v31  ;;  %v2033_v60 = vadd.f32 %v2032_v2, %v6665_v56 }
 0x85a   : > { %5728 = vpow2.f32 %v4879_v4  ;;  %v4878_v9 = vmul.f32 -1.442695, %v2033_v60 }
 0x85c   : > { %5730 = vpow2.f32 %v4878_v9 }
 0x85f   : > { %v5721_v6 = vpop.eup %5720 }
 0x860   : > { %v2076_v51 = vadd.f32 1.0, %v5721_v6 }
 0x861   : > { %v5723_v25 = vpop.eup %5722 }
 0x862   : > { %v2075_v34 = vadd.f32 1.0, %v5723_v25  ;;  %5732 = vrcp.f32 %v2076_v51 }
 0x863   : > { %v5725_v24 = vpop.eup %5724 }
 0x864   : > { %5734 = vrcp.f32 %v2075_v34  ;;  %v2078_v57 = vadd.f32 1.0, %v5725_v24 }
 0x865   : > { %v5727_v49 = vpop.eup %5726 }
 0x866   : > { %v2077_v17 = vadd.f32 1.0, %v5727_v49  ;;  %5736 = vrcp.f32 %v2078_v57 }
 0x867   : > { %v5729_v27 = vpop.eup %5728 }
 0x868   : > { %5738 = vrcp.f32 %v2077_v17  ;;  %v2080_v7 = vadd.f32 1.0, %v5729_v27 }
 0x869   : > { %v5731_v39 = vpop.eup %5730 }
 0x86a   : > { %v2079_v18 = vadd.f32 1.0, %v5731_v39  ;;  %5740 = vrcp.f32 %v2080_v7 }
 0x86c   : > { %5742 = vrcp.f32 %v2079_v18 }
 0x86f   : > { %v5733_v55 = vpop.eup %5732 }
 0x870   : > { %v2100_v37 = vmul.f32 %v5733_v55, %v2018_v16 }
 0x871   : > { %v5735_v38 = vpop.eup %5734 }
 0x872   : > { %v2099_v11 = vmul.f32 %v5735_v38, %v2013_v3 }
 0x873   : > { %v5737_v63 = vpop.eup %5736 }
 0x874   : > { %5339 = vmatprep.mubr.msk.f32.mxu1 %vm497_vm4, %v2099_v11  ;;  %v2102_v19 = vmul.f32 %v5737_v63, %v2028_v42  ;;  %v2420_v34 = vmul.f32 %v2099_v11, %v6379_v0 }
 0x875   : > { %v5739_v54 = vpop.eup %5738  ;;  %5340 = vmatmul.mubr.msk.f32.vlgmr.msra.gmra.mxu1 %vm497_vm4, %v2100_v37 }
 0x876   : > { %v2101_v21 = vmul.f32 %v5739_v54, %v2023_v43  ;;  %v2428_v17 = vsel %vm497_vm4, %v2420_v34, 0.0  ;;  %v2423_v39 = vmul.f32 %v2102_v19, %v6381_v13 }
 0x877   : > { %v5741_v61 = vpop.eup %5740 }
 0x878   : > { %5342 = vmatprep.mubr.msk.f32.mxu1 %vm497_vm4, %v2101_v21  ;;  %v2104_v9 = vmul.f32 %v5741_v61, %v2038_v31  ;;  %v2421_v31 = vmul.f32 %v2100_v37, %v6375_v47  ;;  %v2422_v57 = vmul.f32 %v2101_v21, %v6377_v62  ;;  %v2433_v38 = vsel %vm497_vm4, %v2423_v39, 0.0 }
 0x879   : > { %v5743_v2 = vpop.eup %5742  ;;  %5343 = vmatmul.mubr.msk.f32.gmra.mxu1 %vm497_vm4, %v2102_v19 }
 0x87a   : > { %v2103_v4 = vmul.f32 %v5743_v2, %v2033_v60  ;;  %v2429_v27 = vsel %vm497_vm4, %v2421_v31, 0.0  ;;  %v2425_v54 = vmul.f32 %v2104_v9, %v6394_v59 }
 0x87b   : > { %v2430_v7 = vadd.f32 %v2429_v27, %v2428_v17 }
 0x87c   : > { %5345 = vmatprep.mubr.msk.f32.mxu1 %vm497_vm4, %v2103_v4  ;;  %v2424_v55 = vmul.f32 %v2103_v4, %v6388_v8 }
 0x87d   : > { %5346 = vmatmul.mubr.msk.f32.gmra.mxu1 %vm497_vm4, %v2104_v9 }
 0x87e   : > { %v2435_v37 = vsel %vm497_vm4, %v2424_v55, 0.0 }
 0x882   : > { %v5322_v16 = vpop.f32.mrf.mxu0 }
 0x883   : > { %v2048_v3 = vadd.f32 %v5322_v16, %v6665_v56 }
 0x884   : > { %v2042_v6 = vpop.f32.mrf.mxu0 }
 0x885   : > { %v4881_v51 = vmul.f32 -1.442695, %v2048_v3  ;;  %v2043_v43 = vadd.f32 %v2042_v6, %v6665_v56  ;;  %v2431_v56 = vsel %vm497_vm4, %v2422_v57, 0.0  ;;  %v2437_v6 = vsel %vm497_vm4, %v2425_v54, 0.0  ;;  %v2552_v54 = vld [vmem:[#allocation4 + $0x1e8] sm:$0xff] }
 0x886   : > { %v2432_v18 = vadd.f32 %v2431_v56, %v2430_v7  ;;  %v6710_v7 = vrot.slane %v6592_v46, %v6279_v29 }
 0x887   : > { %5744 = vpow2.f32 %v4881_v51  ;;  %v4880_v42 = vmul.f32 -1.442695, %v2043_v43 }
 0x888   : > { %v2434_v11 = vadd.f32 %v2433_v38, %v2432_v18  ;;  %v2533_v38 = vrot.slane %v6592_v46, %v6284_v32 }
 0x889   : > { %5746 = vpow2.f32 %v4880_v42 }
 0x88a   : > { %v2436_v2 = vadd.f32 %v2435_v37, %v2434_v11  ;;  %v2554_v37 = vld [vmem:[#allocation4 + $0x1f8] sm:$0xff] }
 0x88b   : > { %5371 = vmatpush3.msra.mxu1 %v2554_v37 }
 0x88c   : > { %v2438_v4 = vadd.f32 %v2437_v6, %v2436_v2  ;;  %5372 = vmatprep.subr.mxu1 %v7314_v41  ;;  %v2549_v2 = vld [vmem:[#allocation4 + $0x1d0] sm:$0xff]  ;;  %v2547_v6 = vld [vmem:[#allocation4 + $0x1c0] sm:$0xff] }
 0x894   : > { %v5745_v25 = vpop.eup %5744 }
 0x895   : > { %v2082_v24 = vadd.f32 1.0, %v5745_v25  ;;  %v1712_v25 = vpop.f32.mrf.mxu1 }
 0x896   : > { %v5747_v60 = vpop.eup %5746 }
 0x897   : > { %5748 = vrcp.f32 %v2082_v24  ;;  %v2081_v49 = vadd.f32 1.0, %v5747_v60  ;;  %v6705_v60 = vrot.slane %v6592_v46, %v6315_v1 }
 0x899   : > { %5750 = vrcp.f32 %v2081_v49 }
 0x8a4   : > { %v5749_v63 = vpop.eup %5748 }
 0x8a5   : > { %v2106_v21 = vmul.f32 %v5749_v63, %v2048_v3  ;;  %v2553_v63 = vld [vmem:[#allocation4 + $0x1f0] sm:$0xff] }
 0x8a6   : > { %v5751_v61 = vpop.eup %5750  ;;  %5373 = vmatpush3.msra.mxu1 %v2553_v63 }
 0x8a7   : > { %v2105_v16 = vmul.f32 %v5751_v61, %v2043_v43  ;;  %v2427_v51 = vmul.f32 %v2106_v21, %v6409_v53  ;;  %5374 = vmatprep.subr.mxu1 %v7314_v41  ;;  %v2550_v61 = vld [vmem:[#allocation4 + $0x1d8] sm:$0xff] }
 0x8a8   : > { %5375 = vmatpush3.msra.mxu1 %v2552_v54 }
 0x8a9   : > { %v2426_v19 = vmul.f32 %v2105_v16, %v6405_v50  ;;  %5348 = vmatprep.mubr.msk.f32.mxu1 %vm497_vm4, %v2105_v16  ;;  %v2441_v3 = vsel %vm497_vm4, %v2427_v51, 0.0  ;;  %5376 = vmatprep.subr.mxu1 %v7314_v41  ;;  %v2548_v16 = vld [vmem:[#allocation4 + $0x1c8] sm:$0xff] }
 0x8aa   : > { %5349 = vmatmul.mubr.msk.f32.gmra.mxu1 %vm497_vm4, %v2106_v21  ;;  %v2551_v21 = vld [vmem:[#allocation4 + $0x1e0] sm:$0xff] }
 0x8ab   : > { %v2439_v42 = vsel %vm497_vm4, %v2426_v19, 0.0  ;;  %5386 = vmatprep.mubr.msk.f32.mxu1 %vm6078_vm5, %v7314_v41  ;;  %5377 = vmatpush3.msra.mxu1 %v2551_v21 }
 0x8ac   : > { %v2440_v9 = vadd.f32 %v2439_v42, %v2438_v4  ;;  %5378 = vmatprep.subr.mxu1 %v7314_v41 }
 0x8ad   : > { %5379 = vmatpush3.msra.mxu1 %v2550_v61 }
 0x8ae   : > { %v2442_v43 = vadd.f32 %v2441_v3, %v2440_v9  ;;  %5380 = vmatprep.subr.mxu1 %v7314_v41  ;;  %v1718_v3 = vrot.slane %v6592_v46, %v6295_v35 }
 0x8af   : > { %5381 = vmatpush3.msra.mxu1 %v2549_v2 }
 0x8b0   : > { %5368 = vmatmul.mubr.msk.f32.vlgmr.msra.gmra.mxu0 %vm497_vm4, %v2442_v43  ;;  %5382 = vmatprep.subr.mxu1 %v7314_v41 }
 0x8b1   : > { %2852 = vmatprep.mubr.f32.mxu0 %v7314_v41  ;;  %5383 = vmatpush3.msra.mxu1 %v2548_v16 }
 0x8b2   : > { %5384 = vmatprep.subr.mxu1 %v7314_v41 }
 0x8b3   : > { %5385 = vmatpush3.msra.mxu1 %v2547_v6 }
 0x935   : > { %v5341_v34 = vpop.f32.mrf.mxu1 }
 0x937   : > { %v2210_v24 = vpop.f32.mrf.mxu1 }
 0x939   : > { %v5344_v31 = vpop.f32.mrf.mxu1 }
 0x93a   : > { %v2226_v57 = vadd.f32 %v5344_v31, %v6705_v60  ;;  %v1719_v31 = vadd.f32 %v1718_v3, %v1712_v25 }
 0x93c   : > { %v4893_v49 = vmul.f32 -1.442695, %v2226_v57 }
 0x93e   : > { %5752 = vpow2.f32 %v4893_v49  ;;  %v4906_v49 = vmul.f32 -1.442695, %v1719_v31 }
 0x94b   : > { %v5753_v17 = vpop.eup %5752 }
 0x94c   : > { %v2276_v27 = vadd.f32 1.0, %v5753_v17  ;;  %v2211_v17 = vadd.f32 %v2210_v24, %v6705_v60 }
 0x94e   : > { %5754 = vrcp.f32 %v2276_v27  ;;  %v2220_v27 = vpop.f32.mrf.mxu1 }
 0x95b   : > { %v5755_v56 = vpop.eup %5754 }
 0x95c   : > { %v2300_v39 = vmul.f32 %v5755_v56, %v2226_v57  ;;  %v2216_v56 = vadd.f32 %v5341_v34, %v6705_v60 }
 0x95e   : > { %v6713_v18 = vmul.f32 %v6710_v7, %v2300_v39  ;;  %v4890_v39 = vmul.f32 -1.442695, %v2211_v17 }
 0x970   : > { %v2521_v55 = vpop.f32.mrf.mxu0 }
 0x971   : > { %2526 = vrot.lane.b32.xlu1 %v2521_v55, %s6077_s22  ;;  %v5347_v55 = vpop.f32.mrf.mxu1 }
 0x972   : > { %v5369_v11 = vpop.f32.mrf.mxu0  ;;  %v2236_v34 = vadd.f32 %v5347_v55, %v6705_v60 }
 0x973   : > { %v2221_v11 = vadd.f32 %v2220_v27, %v6705_v60  ;;  %v2230_v37 = vpop.f32.mrf.mxu1 }
 0x974   : > { %v2231_v21 = vadd.f32 %v2230_v37, %v6705_v60 }
 0x975   : > { %2535 = vrot.lane.b32.xlu1 %v2533_v38, %s6077_s22  ;;  %v4891_v38 = vmul.f32 -1.442695, %v2216_v56  ;;  %v5350_v61 = vpop.f32.mrf.mxu1 }
 0x976   : > { %v4894_v2 = vmul.f32 -1.442695, %v2231_v21  ;;  %v2246_v3 = vadd.f32 %v5350_v61, %v6705_v60 }
 0x977   : > { %v2240_v16 = vpop.f32.mrf.mxu1 }
 0x9e3   : > { %v2527_v51 = vpop.permute.xlu1 %2526 }
 0x9e4   : > { %v2529_v19 = vadd.f32 %v2527_v51, %v1712_v25  ;;  %v4892_v25 = vmul.f32 -1.442695, %v2221_v11 }
 0x9e7   : > { %v2536_v4 = vpop.permute.xlu1 %2535 }
 0x9e8   : > { %v2538_v42 = vadd.f32 %v2536_v4, %v2529_v19  ;;  %v4895_v19 = vmul.f32 -1.442695, %v2236_v34  ;;  %v2241_v4 = vadd.f32 %v2240_v16, %v6705_v60 }
 0x9ea   : > { %v4908_v9 = vmul.f32 -1.442695, %v2538_v42 }
 0x9ec   : > { %5756 = vpow2.f32 %v4908_v9 }
 0x9f9   : > { %v5757_v43 = vpop.eup %5756 }
 0x9fa   : > { %v2542_v57 = vadd.f32 1.0, %v5757_v43  ;;  %v4896_v43 = vmul.f32 -1.442695, %v2241_v4 }
 0x9fc   : > { %5758 = vrcp.f32 %v2542_v57 }
 0x9fd   : > { %5760 = vpow2.f32 %v4906_v49  ;;  %v4897_v49 = vmul.f32 -1.442695, %v2246_v3 }
 0x9fe   : > { %5762 = vpow2.f32 %v4890_v39 }
 0x9ff   : > { %5764 = vpow2.f32 %v4891_v38 }
 0xa00   : > { %5766 = vpow2.f32 %v4892_v25 }
 0xa01   : > { %5768 = vpow2.f32 %v4894_v2 }
 0xa09   : > { %v5759_v63 = vpop.eup %5758 }
 0xa0a   : > { %v2545_v54 = vmul.f32 %v5759_v63, %v2538_v42  ;;  %v5761_v24 = vpop.eup %5760  ;;  %v6739_v63 = vld [vmem:[%s7280_s4 + $0x18] sm:$0x3] }
 0xa0b   : > { %v2391_v6 = vadd.f32 1.0, %v5761_v24  ;;  %v5763_v51 = vpop.eup %5762  ;;  %v2398_v25 = vrot.slane %v6739_v63, %v6193_v30 }
 0xa0c   : > { %2560 = vrot.lane.b32.xlu1 %v2545_v54, %s6077_s22  ;;  %v2273_v42 = vadd.f32 1.0, %v5763_v51  ;;  %v5765_v9 = vpop.eup %5764 }
 0xa0d   : > { %5770 = vrcp.f32 %v2391_v6  ;;  %v2274_v57 = vadd.f32 1.0, %v5765_v9  ;;  %v5767_v27 = vpop.eup %5766 }
 0xa0e   : > { %5772 = vpow2.f32 %v4895_v19  ;;  %v2275_v39 = vadd.f32 1.0, %v5767_v27  ;;  %v5769_v55 = vpop.eup %5768 }
 0xa0f   : > { %5774 = vrcp.f32 %v2273_v42  ;;  %v2277_v37 = vadd.f32 1.0, %v5769_v55 }
 0xa10   : > { %5776 = vpow2.f32 %v4896_v43 }
 0xa11   : > { %5778 = vrcp.f32 %v2274_v57 }
 0xa12   : > { %5780 = vpow2.f32 %v4897_v49 }
 0xa13   : > { %5782 = vrcp.f32 %v2275_v39 }
 0xa14   : > { %5784 = vrcp.f32 %v2277_v37 }
 0xa1a   : > { %v5771_v38 = vpop.eup %5770 }
 0xa1b   : > { %v5773_v54 = vpop.eup %5772  ;;  %v2394_v60 = vmul.f32 %v5771_v38, %v1719_v31 }
 0xa1c   : > { %v5775_v61 = vpop.eup %5774  ;;  %v2278_v24 = vadd.f32 1.0, %v5773_v54 }
 0xa1d   : > { %v5777_v2 = vpop.eup %5776  ;;  %v2399_v16 = vmul.f32 %v2398_v25, %v2394_v60  ;;  %v2297_v51 = vmul.f32 %v5775_v61, %v2211_v17 }
 0xa1e   : > { %v5779_v6 = vpop.eup %5778  ;;  %5786 = vrcp.f32 %v2278_v24  ;;  %v2279_v19 = vadd.f32 1.0, %v5777_v2 }
 0xa1f   : > { %v5781_v42 = vpop.eup %5780  ;;  %v2400_v9 = vsel %vm497_vm4, %v2399_v16, 0.0  ;;  %v2298_v43 = vmul.f32 %v5779_v6, %v2216_v56  ;;  %v2309_v31 = vmul.f32 %v6710_v7, %v2297_v51 }
 0xa20   : > { %v2280_v57 = vadd.f32 1.0, %v5781_v42  ;;  %5788 = vrcp.f32 %v2279_v19  ;;  %v5783_v49 = vpop.eup %5782 }
 0xa21   : > { %v2299_v27 = vmul.f32 %v5783_v49, %v2221_v11  ;;  %v2317_v39 = vsel %vm497_vm4, %v2309_v31, 0.0  ;;  %v2310_v55 = vmul.f32 %v6710_v7, %v2298_v43  ;;  %v5785_v38 = vpop.eup %5784  ;;  %v2783_v43 = vld [vmem:[#allocation2 + $0x170] sm:$0xff]  ;;  %v2781_v31 = vld [vmem:[#allocation2 + $0x160] sm:$0xff]  ;;  %v2406_v49 = vrot.slane %v6739_v63, %v6265_v14  ;;  %v2772_v63 = vld [vmem:[#allocation2 + $0x118] sm:$0xff] }
 0xa22   : > { %5790 = vrcp.f32 %v2280_v57  ;;  %v2301_v17 = vmul.f32 %v5785_v38, %v2231_v21  ;;  %v2782_v57 = vld [vmem:[#allocation2 + $0x168] sm:$0xff] }
 0xa23   : > { %v2320_v37 = vsel %vm497_vm4, %v2310_v55, 0.0  ;;  %v2311_v54 = vmul.f32 %v6710_v7, %v2299_v27  ;;  %v2780_v27 = vld [vmem:[#allocation2 + $0x158] sm:$0xff] }
 0xa24   : > { %v2313_v61 = vmul.f32 %v6710_v7, %v2301_v17  ;;  %v2777_v17 = vld [vmem:[#allocation2 + $0x140] sm:$0xff] }
 0xa25   : > { %v2323_v25 = vsel %vm497_vm4, %v2311_v54, 0.0  ;;  %v2775_v54 = vld [vmem:[#allocation2 + $0x130] sm:$0xff] }
 0xa26   : > { %v2329_v2 = vsel %vm497_vm4, %v2313_v61, 0.0  ;;  %v2770_v61 = vld [vmem:[#allocation2 + $0x108] sm:$0xff] }
 0xa2b   : > { %v5787_v56 = vpop.eup %5786 }
 0xa2c   : > { %v2302_v60 = vmul.f32 %v5787_v56, %v2236_v34  ;;  %v2774_v56 = vld [vmem:[#allocation2 + $0x128] sm:$0xff] }
 0xa2d   : > { %v5789_v11 = vpop.eup %5788 }
 0xa2e   : > { %v2303_v24 = vmul.f32 %v5789_v11, %v2241_v4  ;;  %v2314_v16 = vmul.f32 %v6710_v7, %v2302_v60  ;;  %v2784_v4 = vld [vmem:[#allocation2 + $0x178] sm:$0xff]  ;;  %v2773_v60 = vld [vmem:[#allocation2 + $0x120] sm:$0xff] }
 0xa2f   : > { %v5791_v6 = vpop.eup %5790  ;;  %2804 = vmatprep.subr.mxu0 %v2784_v4  ;;  %v2769_v11 = vld [vmem:[#allocation2 + $0x100] sm:$0xff] }
 0xa30   : > { %2401 = vadd.xlane.f32.xlu1 %v2400_v9  ;;  %v2304_v21 = vmul.f32 %v5791_v6, %v2246_v3  ;;  %v2332_v51 = vsel %vm497_vm4, %v2314_v16, 0.0  ;;  %v2315_v19 = vmul.f32 %v6710_v7, %v2303_v24  ;;  %2805 = vmatpush1.msra.mxu0 %v2783_v43  ;;  %v2326_v24 = vsel %vm497_vm4, %v6713_v18, 0.0  ;;  %v5998_v16 = vld [vmem:[%s6172_s14] sm:$0xff] }
 0xa31   : > { %2806 = vmatprep.subr.mxu0 %v2782_v57 }
 0xa32   : > { %v2335_v34 = vsel %vm497_vm4, %v2315_v19, 0.0  ;;  %v2316_v42 = vmul.f32 %v6710_v7, %v2304_v21  ;;  %2807 = vmatpush1.msra.mxu0 %v2781_v31  ;;  %v2779_v7 = vld [vmem:[#allocation2 + $0x150] sm:$0xff]  ;;  %v2558_v21 = vrot.slane %v6592_v46, %v6274_v26 }
 0xa33   : > { %2808 = vmatprep.subr.mxu0 %v2780_v27 }
 0xa34   : > { %2318 = vadd.xlane.f32.xlu1 %v2317_v39  ;;  %v2338_v9 = vsel %vm497_vm4, %v2316_v42, 0.0  ;;  %v2778_v39 = vld [vmem:[#allocation2 + $0x148] sm:$0xff]  ;;  %2809 = vmatpush1.msra.mxu0 %v2779_v7 }
 0xa35   : > { %2810 = vmatprep.subr.mxu0 %v2778_v39 }
 0xa36   : > { %2811 = vmatpush1.msra.mxu0 %v2777_v17 }
 0xa38   : > { %2321 = vadd.xlane.f32.xlu1 %v2320_v37  ;;  %v2776_v37 = vld [vmem:[#allocation2 + $0x138] sm:$0xff] }
 0xa39   : > { %2812 = vmatprep.subr.mxu0 %v2776_v37 }
 0xa3a   : > { %2813 = vmatpush1.msra.mxu0 %v2775_v54 }
 0xa3b   : > { %2814 = vmatprep.subr.mxu0 %v2774_v56 }
 0xa3c   : > { %2324 = vadd.xlane.f32.xlu1 %v2323_v25  ;;  %v2771_v25 = vld [vmem:[#allocation2 + $0x110] sm:$0xff]  ;;  %2815 = vmatpush1.msra.mxu0 %v2773_v60 }
 0xa3d   : > { %2816 = vmatprep.subr.mxu0 %v2772_v63 }
 0xa3e   : > { %2817 = vmatpush1.msra.mxu0 %v2771_v25 }
 0xa3f   : > { %2818 = vmatprep.subr.mxu0 %v2770_v61 }
 0xa40   : > { %2330 = vadd.xlane.f32.xlu1 %v2329_v2  ;;  %2819 = vmatpush1.msra.mxu0 %v2769_v11 }
 0xa44   : > { %2333 = vadd.xlane.f32.xlu1 %v2332_v51 }
 0xa48   : > { %2336 = vadd.xlane.f32.xlu1 %v2335_v34 }
 0xa4c   : > { %2339 = vadd.xlane.f32.xlu1 %v2338_v9 }
 0xa7e   : > { %v2561_v3 = vpop.permute.xlu1 %2560 }
 0xa7f   : > { %5387 = vmatmul.mubr.msk.f32.vlgmr.msra.gmra.mxu1 %vm497_vm4, %v2561_v3 }
 0xab9   : > { %v2402_v55 = vpop.xlane.xlu1 %2401 }
 0xaba   : > { %v2407_v38 = vadd.f32 %v2406_v49, %v2402_v55 }
 0xabc   : > { %2410 = vperm.xlu0 %5580, %v2407_v38  }
 0xabd   : > { %v2319_v9 = vpop.xlane.xlu1 %2318 }
 0xabe   : > { %v2341_v3 = vmul.f32 %v2319_v9, %v6516_v22 }
 0xac0   : > { %v4898_v7 = vclamps-f32 %v2341_v3, 100.0 }
 0xac1   : > { %v2322_v18 = vpop.xlane.xlu1 %2321 }
 0xac2   : > { %v2342_v43 = vmul.f32 %v2322_v18, %v6527_v12  ;;  %v2365_v17 = vmul.f32 %v4898_v7, %v6458_v40 }
 0xac4   : > { %v4899_v49 = vclamps-f32 %v2342_v43, 100.0  ;;  %v2373_v56 = vsel %vm256_vm0, %v2365_v17, 0.0 }
 0xac5   : > { %v2325_v4 = vpop.xlane.xlu1 %2324 }
 0xac6   : > { %v2343_v46 = vmul.f32 %v2325_v4, %v6530_v15  ;;  %v2366_v55 = vmul.f32 %v4899_v49, %v6462_v5 }
 0xac8   : > { %v2374_v54 = vsel %vm256_vm0, %v2366_v55, 0.0 }
 0xac9   : > { %v2331_v57 = vpop.xlane.xlu1 %2330  ;;  %v2375_v25 = vadd.f32 %v2374_v54, %v2373_v56 }
 0xaca   : > { %v2345_v12 = vmul.f32 %v2331_v57, %v6524_v28 }
 0xacc   : > { %v4902_v60 = vclamps-f32 %v2345_v12, 100.0 }
 0xacd   : > { %v2334_v39 = vpop.xlane.xlu1 %2333 }
 0xace   : > { %v2346_v63 = vmul.f32 %v2334_v39, %v6554_v33 }
 0xad1   : > { %v2337_v15 = vpop.xlane.xlu1 %2336 }
 0xad2   : > { %v2347_v28 = vmul.f32 %v2337_v15, %v6561_v20 }
 0xadb   : > { %2327 = vadd.xlane.f32.xlu0 %v2326_v24  ;;  %v2369_v24 = vmul.f32 %v4902_v60, %v6481_v36 }
 0xb37   : > { %v2411_v2 = vpop.permute.xlu0 %2410 }
 0xb38   : > { %v2413_v6 = vmul.f32 %v5998_v16, %v2411_v2  ;;  %v4903_v2 = vclamps-f32 %v2346_v63, 100.0  ;;  %v2340_v16 = vpop.xlane.xlu1 %2339 }
 0xb3a   : > { %2415 = vrot.lane.b32.xlu1 %v2413_v6, %s6074_s15 }
 0xb3f   : > { %v2630_v51 = vpop.f32.mrf.mxu1 }
 0xb40   : > { %v2631_v19 = vadd.f32 %v2630_v51, %v2558_v21  ;;  %v2380_v21 = vsel %vm256_vm0, %v2369_v24, 0.0  ;;  %v2370_v51 = vmul.f32 %v4903_v2, %v6487_v44 }
 0xb41   : > { %v5388_v34 = vpop.f32.mrf.mxu1 }
 0xb42   : > { %v6768_v42 = vadd.f32 %v2631_v19, %v6572_v10  ;;  %v4900_v10 = vclamps-f32 %v2343_v46, 100.0  ;;  %v4904_v19 = vclamps-f32 %v2347_v28, 100.0  ;;  %v2348_v34 = vmul.f32 %v2340_v16, %v6582_v48  ;;  %v7318_v48 = vld [vmem:[#allocation8_spill] sm:$0xff] }
 0xb43   : > { %v2382_v33 = vsel %vm256_vm0, %v2370_v51, 0.0 }
 0xb44   : > { %4912 = vmatmul.mubr.msk.f32.vlgmr.msra.gmra.mxu0 %vm497_vm4, %v6768_v42  ;;  %v2367_v37 = vmul.f32 %v4900_v10, %v6468_v45  ;;  %v2371_v18 = vmul.f32 %v4904_v19, %v6493_v58  ;;  %v4905_v4 = vclamps-f32 %v2348_v34, 100.0  ;;  %v7316_v10 = vld [vmem:[#allocation15_spill] sm:$0xff] }
 0xb46   : > { %v2384_v57 = vsel %vm256_vm0, %v2371_v18, 0.0 }
 0xb64   : > { %v2328_v31 = vpop.xlane.xlu0 %2327 }
 0xb65   : > { %v2344_v27 = vmul.f32 %v2328_v31, %v6546_v52  ;;  %v2376_v52 = vsel %vm256_vm0, %v2367_v37, 0.0  ;;  %v7315_v31 = vld [vmem:[#allocation14_spill] sm:$0xff] }
 0xb66   : > { %v2377_v11 = vadd.f32 %v2376_v52, %v2375_v25  ;;  %v2372_v20 = vmul.f32 %v4905_v4, %v7315_v31 }
 0xb67   : > { %v4901_v38 = vclamps-f32 %v2344_v27, 100.0 }
 0xb68   : > { %v2386_v46 = vsel %vm256_vm0, %v2372_v20, 0.0 }
 0xb69   : > { %v2368_v22 = vmul.f32 %v4901_v38, %v6475_v23 }
 0xb6b   : > { %v2378_v61 = vsel %vm256_vm0, %v2368_v22, 0.0 }
 0xb6c   : > { %v2379_v6 = vadd.f32 %v2378_v61, %v2377_v11 }
 0xb6e   : > { %v2381_v9 = vadd.f32 %v2380_v21, %v2379_v6 }
 0xb70   : > { %v2383_v43 = vadd.f32 %v2382_v33, %v2381_v9 }
 0xb72   : > { %v2385_v3 = vadd.f32 %v2384_v57, %v2383_v43 }
 0xb74   : > { %v2387_v49 = vadd.f32 %v2386_v46, %v2385_v3 }
 0xbac   : > { %v2416_v27 = vpop.permute.xlu1 %2415 }
 0xbad   : > { %v2418_v7 = vadd.f32 %v2416_v27, %v2387_v49 }
 0xbaf   : > { %v6797_v39 = vadd.f32 %v2418_v7, %v7316_v10 }
 0xbb1   : > { %7317 = vst [vmem:[#allocation15_spill] sm:$0xff] %v6797_v39  ;;  %v2646_v55 = vrot.slane %v6797_v39, %v7318_v48  ;;  %v2639_v38 = vcombine.high %v6797_v39, %v6797_v39 }
 0xbb3   : > { %v2662_v17 = vrot.slane %v2646_v55, %v7318_v48  ;;  %v2654_v37 = vcombine.high %v2646_v55, %v2646_v55  ;;  %v2653_v12 = vrot.slane %v2639_v38, %v7318_v48 }
 0xbb5   : > { %v2691_v54 = vrot.slane %v2662_v17, %v6193_v30  ;;  %v2684_v22 = vcombine.high %v2662_v17, %v2662_v17  ;;  %v2676_v15 = vrot.slane %v2654_v37, %v7318_v48  ;;  %v2655_v56 = vcombine.high %v2653_v12, %v2653_v12 }
 0xbb6   : > { %v2669_v52 = vrot.slane %v2653_v12, %v7318_v48 }
 0xbb7   : > { %v6809_v60 = vsub.f32 %v2691_v54, %v6797_v39  ;;  %v2699_v63 = vrot.slane %v2684_v22, %v6193_v30  ;;  %v2695_v25 = vrot.slane %v2676_v15, %v6193_v30  ;;  %v2683_v61 = vrot.slane %v2655_v56, %v7318_v48  ;;  %v3061_v56 = vld [vmem:[#allocation4 + $0x238] sm:$0xff] }
 0xbb8   : > { %v2707_v11 = vrot.slane %v2669_v52, %v6193_v30  ;;  %v2686_v24 = vcombine.high %v2676_v15, %v2676_v15  ;;  %v2685_v57 = vcombine.high %v2669_v52, %v2669_v52  ;;  %v3060_v52 = vld [vmem:[#allocation4 + $0x230] sm:$0xff]  ;;  %5389 = vmatprep.subr.mxu1 %v3061_v56 }
 0xbb9   : > { %v2736_v2 = vmul.f32 %v6809_v60, %v6809_v60  ;;  %v6818_v28 = vsub.f32 %v2699_v63, %v6797_v39  ;;  %v6821_v16 = vsub.f32 %v2695_v25, %v6797_v39  ;;  %v2687_v6 = vcombine.high %v2683_v61, %v2683_v61  ;;  %5390 = vmatpush3.msra.mxu1 %v3061_v56  ;;  %v3059_v63 = vld [vmem:[#allocation4 + $0x228] sm:$0xff]  ;;  %v3058_v25 = vld [vmem:[#allocation4 + $0x220] sm:$0xff] }
 0xbba   : > { %v6824_v21 = vsub.f32 %v2707_v11, %v6797_v39  ;;  %v2703_v51 = vrot.slane %v2686_v24, %v6193_v30  ;;  %v2711_v43 = vrot.slane %v2683_v61, %v6193_v30  ;;  %v2715_v38 = vrot.slane %v2685_v57, %v6193_v30  ;;  %5391 = vmatprep.subr.mxu1 %v3060_v52  ;;  %v3057_v61 = vld [vmem:[#allocation4 + $0x218] sm:$0xff]  ;;  %v3056_v11 = vld [vmem:[#allocation4 + $0x210] sm:$0xff]  ;;  %v3055_v24 = vld [vmem:[#allocation4 + $0x208] sm:$0xff] }
 0xbbb   : > { %v2744_v19 = vsel %vm256_vm0, %v2736_v2, 0.0  ;;  %v2738_v34 = vmul.f32 %v6818_v28, %v6818_v28  ;;  %v2737_v9 = vmul.f32 %v6821_v16, %v6821_v16  ;;  %v2719_v33 = vrot.slane %v2687_v6, %v6193_v30  ;;  %5392 = vmatpush3.msra.mxu1 %v3060_v52  ;;  %v3054_v2 = vld [vmem:[#allocation4 + $0x200] sm:$0xff]  ;;  %v7322_v56 = vld [vmem:[#allocation9_spill] sm:$0xff] }
 0xbbc   : > { %2745 = vadd.xlane.f32.xlu0 %v2744_v19  ;;  %v2740_v46 = vmul.f32 %v6824_v21, %v6824_v21  ;;  %v6844_v49 = vsub.f32 %v2703_v51, %v6797_v39  ;;  %v6851_v55 = vsub.f32 %v2711_v43, %v6797_v39  ;;  %v6858_v12 = vsub.f32 %v2715_v38, %v6797_v39 }
 0xbbd   : > { %v2750_v18 = vsel %vm256_vm0, %v2738_v34, 0.0  ;;  %v6835_v4 = vsub.f32 %v2719_v33, %v6797_v39  ;;  %v2747_v20 = vsel %vm256_vm0, %v2737_v9, 0.0  ;;  %5393 = vmatprep.subr.mxu1 %v3059_v63 }
 0xbbe   : > { %2751 = vadd.xlane.f32.xlu1 %v2750_v18  ;;  %v2756_v7 = vsel %vm256_vm0, %v2740_v46, 0.0  ;;  %v2739_v10 = vmul.f32 %v6844_v49, %v6844_v49  ;;  %7320 = vst [vmem:[#allocation17_spill] sm:$0xff] %v6851_v55  ;;  %v2741_v37 = vmul.f32 %v6851_v55, %v6851_v55  ;;  %7321 = vst [vmem:[#allocation18_spill] sm:$0xff] %v6858_v12  ;;  %5394 = vmatpush3.msra.mxu1 %v3059_v63 }
 0xbbf   : > { %7319 = vst [vmem:[#allocation16_spill] sm:$0xff] %v6835_v4  ;;  %v2743_v3 = vmul.f32 %v6835_v4, %v6835_v4  ;;  %v2742_v22 = vmul.f32 %v6858_v12, %v6858_v12  ;;  %5395 = vmatprep.subr.mxu1 %v3058_v25 }
 0xbc0   : > { %2748 = vadd.xlane.f32.xlu0 %v2747_v20  ;;  %v2753_v17 = vsel %vm256_vm0, %v2739_v10, 0.0  ;;  %v2759_v54 = vsel %vm256_vm0, %v2741_v37, 0.0  ;;  %5396 = vmatpush3.msra.mxu1 %v3058_v25 }
 0xbc1   : > { %v2765_v27 = vsel %vm256_vm0, %v2743_v3, 0.0  ;;  %v2762_v15 = vsel %vm256_vm0, %v2742_v22, 0.0  ;;  %5397 = vmatprep.subr.mxu1 %v3057_v61 }
 0xbc2   : > { %2766 = vadd.xlane.f32.xlu1 %v2765_v27  ;;  %5398 = vmatpush3.msra.mxu1 %v3057_v61 }
 0xbc3   : > { %5399 = vmatprep.subr.mxu1 %v3056_v11 }
 0xbc4   : > { %2757 = vadd.xlane.f32.xlu0 %v2756_v7  ;;  %5400 = vmatpush3.msra.mxu1 %v3056_v11 }
 0xbc5   : > { %5401 = vmatprep.subr.mxu1 %v3055_v24 }
 0xbc6   : > { %5402 = vmatpush3.msra.mxu1 %v3055_v24 }
 0xbc7   : > { %5403 = vmatprep.subr.mxu1 %v3054_v2 }
 0xbc8   : > { %2754 = vadd.xlane.f32.xlu0 %v2753_v17  ;;  %5404 = vmatpush3.msra.mxu1 %v3054_v2 }
 0xbc9   : > { %5445 = vmatprep.subr.mxu1 %v7314_v41 }
 0xbcc   : > { %2760 = vadd.xlane.f32.xlu0 %v2759_v54 }
 0xbd0   : > { %2763 = vadd.xlane.f32.xlu0 %v2762_v15  ;;  %v6875_v15 = vld [vmem:[%s7280_s4 + $0x20] sm:$0xff] }
 0xbd1   : > { %v2968_v52 = vrot.slane %v6875_v15, %v7322_v56  ;;  %v2988_v63 = vrot.slane %v6875_v15, %v6193_v30 }
 0xc04   : > { %v2854_v6 = vpop.f32.mrf.mxu0 }
 0xc05   : > { %2954 = vrot.lane.b32.xlu0 %v2854_v6, %s6077_s22  ;;  %v2865_v34 = vcombine.high %v2854_v6, %v2854_v6  ;;  %v2872_v33 = vrot.slane %v2854_v6, %v7318_v48 }
 0xc07   : > { %v2879_v18 = vrot.slane %v2865_v34, %v7318_v48  ;;  %v2880_v57 = vcombine.high %v2872_v33, %v2872_v33  ;;  %v2888_v3 = vrot.slane %v2872_v33, %v7318_v48 }
 0xc09   : > { %v2881_v20 = vcombine.high %v2879_v18, %v2879_v18  ;;  %v2895_v46 = vrot.slane %v2879_v18, %v7318_v48  ;;  %v2902_v27 = vrot.slane %v2880_v57, %v7318_v48  ;;  %v2910_v17 = vcombine.high %v2888_v3, %v2888_v3 }
 0xc0a   : > { %v2917_v11 = vrot.slane %v2888_v3, %v6193_v30 }
 0xc0b   : > { %v2909_v7 = vrot.slane %v2881_v20, %v7318_v48  ;;  %v2911_v37 = vcombine.high %v2895_v46, %v2895_v46  ;;  %v2912_v54 = vcombine.high %v2902_v27, %v2902_v27  ;;  %v2921_v24 = vrot.slane %v2902_v27, %v6193_v30 }
 0xc0c   : > { %v2925_v2 = vrot.slane %v2910_v17, %v6193_v30  ;;  %v2933_v6 = vrot.slane %v2895_v46, %v6193_v30 }
 0xc0d   : > { %v2913_v22 = vcombine.high %v2909_v7, %v2909_v7  ;;  %v2929_v34 = vrot.slane %v2912_v54, %v6193_v30  ;;  %v2937_v33 = vrot.slane %v2909_v7, %v6193_v30  ;;  %v2941_v18 = vrot.slane %v2911_v37, %v6193_v30 }
 0xc0f   : > { %v2945_v57 = vrot.slane %v2913_v22, %v6193_v30 }
 0xc45   : > { %v2746_v51 = vpop.xlane.xlu0 %2745 }
 0xc46   : > { %v2969_v20 = vmul.f32 %v2968_v52, %v2746_v51 }
 0xc47   : > { %v2752_v10 = vpop.xlane.xlu1 %2751 }
 0xc48   : > { %v2971_v56 = vmul.f32 %v2968_v52, %v2752_v10 }
 0xc49   : > { %v2749_v19 = vpop.xlane.xlu0 %2748 }
 0xc4a   : > { %v2970_v48 = vmul.f32 %v2968_v52, %v2749_v19 }
 0xc4b   : > { %v2767_v25 = vpop.xlane.xlu1 %2766 }
 0xc4c   : > { %v2976_v39 = vmul.f32 %v2968_v52, %v2767_v25 }
 0xc4d   : > { %v2758_v9 = vpop.xlane.xlu0 %2757 }
 0xc4e   : > { %v2973_v31 = vmul.f32 %v2968_v52, %v2758_v9 }
 0xc51   : > { %v2755_v43 = vpop.xlane.xlu0 %2754 }
 0xc52   : > { %v2972_v3 = vmul.f32 %v2968_v52, %v2755_v43 }
 0xc55   : > { %v2761_v38 = vpop.xlane.xlu0 %2760 }
 0xc56   : > { %v2974_v58 = vmul.f32 %v2968_v52, %v2761_v38 }
 0xc59   : > { %v2764_v61 = vpop.xlane.xlu0 %2763 }
 0xc5a   : > { %v2975_v27 = vmul.f32 %v2968_v52, %v2764_v61 }
 0xc77   : > { %v2955_v4 = vpop.permute.xlu0 %2954 }
 0xc78   : > { %v2957_v17 = vadd.f32 %v2955_v4, %v2917_v11  ;;  %v2958_v44 = vadd.f32 %v2955_v4, %v2921_v24  ;;  %v2959_v46 = vadd.f32 %v2955_v4, %v2925_v2  ;;  %v2960_v12 = vadd.f32 %v2955_v4, %v2929_v34 }
 0xc79   : > { %v2961_v54 = vadd.f32 %v2955_v4, %v2933_v6  ;;  %v2962_v36 = vadd.f32 %v2955_v4, %v2937_v33  ;;  %v2963_v7 = vadd.f32 %v2955_v4, %v2941_v18  ;;  %v2964_v55 = vadd.f32 %v2955_v4, %v2945_v57 }
 0xc7a   : > { %v2977_v37 = vadd.f32 %v2969_v20, %v2957_v17  ;;  %v2978_v23 = vadd.f32 %v2970_v48, %v2958_v44  ;;  %v2979_v22 = vadd.f32 %v2971_v56, %v2959_v46  ;;  %v2980_v51 = vadd.f32 %v2972_v3, %v2960_v12 }
 0xc7b   : > { %v2981_v10 = vadd.f32 %v2973_v31, %v2961_v54  ;;  %v2982_v19 = vadd.f32 %v2974_v58, %v2962_v36  ;;  %v2983_v25 = vadd.f32 %v2975_v27, %v2963_v7  ;;  %v2984_v9 = vadd.f32 %v2976_v39, %v2964_v55 }
 0xc7c   : > { %v2989_v43 = vadd.f32 %v2988_v63, %v2977_v37  ;;  %v2990_v38 = vadd.f32 %v2988_v63, %v2978_v23  ;;  %v2991_v52 = vadd.f32 %v2988_v63, %v2979_v22  ;;  %v2992_v61 = vadd.f32 %v2988_v63, %v2980_v51 }
 0xc7d   : > { %v2993_v11 = vadd.f32 %v2988_v63, %v2981_v10  ;;  %v2994_v24 = vadd.f32 %v2988_v63, %v2982_v19  ;;  %v2995_v33 = vadd.f32 %v2988_v63, %v2983_v25  ;;  %v2996_v4 = vadd.f32 %v2988_v63, %v2984_v9 }
 0xc7e   : > { %v4913_v2 = vmul.f32 -1.442695, %v2989_v43  ;;  %v4914_v34 = vmul.f32 -1.442695, %v2990_v38  ;;  %v4915_v6 = vmul.f32 -1.442695, %v2991_v52 }
 0xc7f   : > { %v4916_v18 = vmul.f32 -1.442695, %v2992_v61  ;;  %v4917_v44 = vmul.f32 -1.442695, %v2993_v11  ;;  %v4918_v48 = vmul.f32 -1.442695, %v2994_v24 }
 0xc80   : > { %5792 = vpow2.f32 %v4913_v2  ;;  %v4919_v36 = vmul.f32 -1.442695, %v2995_v33  ;;  %v4920_v58 = vmul.f32 -1.442695, %v2996_v4 }
 0xc81   : > { %5794 = vpow2.f32 %v4914_v34 }
 0xc82   : > { %5796 = vpow2.f32 %v4915_v6 }
 0xc83   : > { %5798 = vpow2.f32 %v4916_v18 }
 0xc84   : > { %5800 = vpow2.f32 %v4917_v44 }
 0xc85   : > { %5802 = vpow2.f32 %v4918_v48 }
 0xc86   : > { %5804 = vpow2.f32 %v4919_v36 }
 0xc87   : > { %5806 = vpow2.f32 %v4920_v58  ;;  %v3257_v58 = vld [vmem:[#allocation4 + $0x268] sm:$0xff] }
 0xc8d   : > { %v5793_v23 = vpop.eup %5792 }
 0xc8e   : > { %v5795_v31 = vpop.eup %5794  ;;  %v3021_v39 = vadd.f32 1.0, %v5793_v23  ;;  %v3253_v23 = vld [vmem:[#allocation4 + $0x248] sm:$0xff] }
 0xc8f   : > { %v5797_v55 = vpop.eup %5796  ;;  %v3022_v12 = vadd.f32 1.0, %v5795_v31  ;;  %v3252_v31 = vld [vmem:[#allocation4 + $0x240] sm:$0xff] }
 0xc90   : > { %v5799_v56 = vpop.eup %5798  ;;  %5808 = vrcp.f32 %v3021_v39  ;;  %v3023_v63 = vadd.f32 1.0, %v5797_v55  ;;  %v3595_v39 = vld [vmem:[#allocation4 + $0x2b8] sm:$0xff]  ;;  %v3594_v55 = vld [vmem:[#allocation4 + $0x2b0] sm:$0xff] }
 0xc91   : > { %v5801_v57 = vpop.eup %5800  ;;  %5810 = vrcp.f32 %v3022_v12  ;;  %v3024_v20 = vadd.f32 1.0, %v5799_v56  ;;  %v3593_v12 = vld [vmem:[#allocation4 + $0x2a8] sm:$0xff]  ;;  %v3592_v56 = vld [vmem:[#allocation4 + $0x2a0] sm:$0xff] }
 0xc92   : > { %v5803_v3 = vpop.eup %5802  ;;  %5812 = vrcp.f32 %v3023_v63  ;;  %v3025_v27 = vadd.f32 1.0, %v5801_v57  ;;  %v3591_v63 = vld [vmem:[#allocation4 + $0x298] sm:$0xff]  ;;  %v3590_v57 = vld [vmem:[#allocation4 + $0x290] sm:$0xff] }
 0xc93   : > { %v5805_v17 = vpop.eup %5804  ;;  %5814 = vrcp.f32 %v3024_v20  ;;  %v3026_v46 = vadd.f32 1.0, %v5803_v3  ;;  %v3589_v20 = vld [vmem:[#allocation4 + $0x288] sm:$0xff]  ;;  %v3588_v3 = vld [vmem:[#allocation4 + $0x280] sm:$0xff] }
 0xc94   : > { %v5807_v54 = vpop.eup %5806  ;;  %5816 = vrcp.f32 %v3025_v27  ;;  %v3027_v7 = vadd.f32 1.0, %v5805_v17  ;;  %v3065_v27 = vrot.slane %v6875_v15, %v6265_v14 }
 0xc95   : > { %5818 = vrcp.f32 %v3026_v46  ;;  %v3028_v37 = vadd.f32 1.0, %v5807_v54 }
 0xc96   : > { %5820 = vrcp.f32 %v3027_v7 }
 0xc97   : > { %5822 = vrcp.f32 %v3028_v37 }
 0xc9d   : > { %v5809_v22 = vpop.eup %5808 }
 0xc9e   : > { %v5811_v51 = vpop.eup %5810  ;;  %v3045_v10 = vmul.f32 %v5809_v22, %v2989_v43 }
 0xc9f   : > { %v5813_v19 = vpop.eup %5812  ;;  %v3046_v25 = vmul.f32 %v5811_v51, %v2990_v38 }
 0xca0   : > { %v5815_v9 = vpop.eup %5814  ;;  %5405 = vmatprep.mubr.msk.f32.mxu1 %vm497_vm4, %v3045_v10  ;;  %v3047_v2 = vmul.f32 %v5813_v19, %v2991_v52 }
 0xca1   : > { %v5817_v34 = vpop.eup %5816  ;;  %5406 = vmatmul.mubr.msk.f32.vlgmr.msra.gmra.mxu1 %vm497_vm4, %v3046_v25  ;;  %v3048_v6 = vmul.f32 %v5815_v9, %v2992_v61  ;;  %v3259_v61 = vld [vmem:[#allocation4 + $0x278] sm:$0xff] }
 0xca2   : > { %5408 = vmatprep.mubr.msk.f32.mxu1 %vm497_vm4, %v3047_v2  ;;  %v5819_v18 = vpop.eup %5818  ;;  %v3049_v44 = vmul.f32 %v5817_v34, %v2993_v11  ;;  %5417 = vmatprep.subr.mxu0 %v3259_v61  ;;  %v3258_v11 = vld [vmem:[#allocation4 + $0x270] sm:$0xff] }
 0xca3   : > { %v5821_v48 = vpop.eup %5820  ;;  %v3050_v43 = vmul.f32 %v5819_v18, %v2994_v24  ;;  %5418 = vmatpush3.msra.mxu0 %v3259_v61  ;;  %v3256_v24 = vld [vmem:[#allocation4 + $0x260] sm:$0xff]  ;;  %5446 = vmatpush3.msra.mxu1 %v3595_v39 }
 0xca4   : > { %v5823_v36 = vpop.eup %5822  ;;  %v3051_v38 = vmul.f32 %v5821_v48, %v2995_v33  ;;  %5419 = vmatprep.subr.mxu0 %v3258_v11  ;;  %v3255_v33 = vld [vmem:[#allocation4 + $0x258] sm:$0xff]  ;;  %5447 = vmatprep.subr.mxu1 %v7314_v41 }
 0xca5   : > { %5409 = vmatmul.mubr.msk.f32.gmra.mxu1 %vm497_vm4, %v3048_v6  ;;  %v3052_v52 = vmul.f32 %v5823_v36, %v2996_v4  ;;  %5420 = vmatpush3.msra.mxu0 %v3258_v11  ;;  %v3254_v4 = vld [vmem:[#allocation4 + $0x250] sm:$0xff] }
 0xca6   : > { %5411 = vmatprep.mubr.msk.f32.mxu1 %vm497_vm4, %v3049_v44  ;;  %5421 = vmatprep.subr.mxu0 %v3257_v58 }
 0xca7   : > { %5422 = vmatpush3.msra.mxu0 %v3257_v58  ;;  %5448 = vmatpush3.msra.mxu1 %v3594_v55 }
 0xca8   : > { %5423 = vmatprep.subr.mxu0 %v3256_v24  ;;  %5449 = vmatprep.subr.mxu1 %v7314_v41 }
 0xca9   : > { %5412 = vmatmul.mubr.msk.f32.gmra.mxu1 %vm497_vm4, %v3050_v43  ;;  %5424 = vmatpush3.msra.mxu0 %v3256_v24 }
 0xcaa   : > { %5414 = vmatprep.mubr.msk.f32.mxu1 %vm497_vm4, %v3051_v38  ;;  %5425 = vmatprep.subr.mxu0 %v3255_v33 }
 0xcab   : > { %5426 = vmatpush3.msra.mxu0 %v3255_v33  ;;  %5450 = vmatpush3.msra.mxu1 %v3593_v12 }
 0xcac   : > { %5427 = vmatprep.subr.mxu0 %v3254_v4  ;;  %5451 = vmatprep.subr.mxu1 %v7314_v41 }
 0xcad   : > { %5415 = vmatmul.mubr.msk.f32.gmra.mxu1 %vm497_vm4, %v3052_v52  ;;  %5428 = vmatpush3.msra.mxu0 %v3254_v4 }
 0xcae   : > { %5461 = vmatprep.mubr.msk.f32.mxu1 %vm6078_vm5, %v7314_v41  ;;  %5429 = vmatprep.subr.mxu0 %v3253_v23 }
 0xcaf   : > { %5430 = vmatpush3.msra.mxu0 %v3253_v23  ;;  %5452 = vmatpush3.msra.mxu1 %v3592_v56 }
 0xcb0   : > { %5431 = vmatprep.subr.mxu0 %v3252_v31  ;;  %5453 = vmatprep.subr.mxu1 %v7314_v41 }
 0xcb1   : > { %5432 = vmatpush3.msra.mxu0 %v3252_v31  ;;  %5454 = vmatpush3.msra.mxu1 %v3591_v63 }
 0xcb2   : > { %5464 = vmatprep.subr.mxu0 %v7314_v41  ;;  %5455 = vmatprep.subr.mxu1 %v7314_v41 }
 0xcb3   : > { %5456 = vmatpush3.msra.mxu1 %v3590_v57 }
 0xcb4   : > { %5457 = vmatprep.subr.mxu1 %v7314_v41 }
 0xcb5   : > { %5458 = vmatpush3.msra.mxu1 %v3589_v20 }
 0xcb6   : > { %5459 = vmatprep.subr.mxu1 %v7314_v41 }
 0xcb7   : > { %5460 = vmatpush3.msra.mxu1 %v3588_v3 }
 0xd61   : > { %v5407_v17 = vpop.f32.mrf.mxu1 }
 0xd62   : > { %v3162_v46 = vadd.f32 %v5407_v17, %v3065_v27 }
 0xd63   : > { %v3156_v54 = vpop.f32.mrf.mxu1 }
 0xd64   : > { %v4930_v7 = vmul.f32 -1.442695, %v3162_v46  ;;  %v3157_v37 = vadd.f32 %v3156_v54, %v3065_v27 }
 0xd65   : > { %v5410_v22 = vpop.f32.mrf.mxu1 }
 0xd66   : > { %5824 = vpow2.f32 %v4930_v7  ;;  %v4929_v51 = vmul.f32 -1.442695, %v3157_v37  ;;  %v3172_v10 = vadd.f32 %v5410_v22, %v3065_v27 }
 0xd67   : > { %v3166_v19 = vpop.f32.mrf.mxu1 }
 0xd68   : > { %5826 = vpow2.f32 %v4929_v51  ;;  %v4932_v25 = vmul.f32 -1.442695, %v3172_v10  ;;  %v3167_v9 = vadd.f32 %v3166_v19, %v3065_v27 }
 0xd69   : > { %v5413_v2 = vpop.f32.mrf.mxu1 }
 0xd6a   : > { %5828 = vpow2.f32 %v4932_v25  ;;  %v4931_v34 = vmul.f32 -1.442695, %v3167_v9  ;;  %v3182_v6 = vadd.f32 %v5413_v2, %v3065_v27 }
 0xd6b   : > { %v3176_v18 = vpop.f32.mrf.mxu1 }
 0xd6c   : > { %5830 = vpow2.f32 %v4931_v34  ;;  %v4934_v44 = vmul.f32 -1.442695, %v3182_v6  ;;  %v3177_v48 = vadd.f32 %v3176_v18, %v3065_v27 }
 0xd6d   : > { %v5416_v43 = vpop.f32.mrf.mxu1 }
 0xd6e   : > { %5832 = vpow2.f32 %v4934_v44  ;;  %v4933_v36 = vmul.f32 -1.442695, %v3177_v48  ;;  %v3192_v38 = vadd.f32 %v5416_v43, %v3065_v27 }
 0xd6f   : > { %v3186_v52 = vpop.f32.mrf.mxu1 }
 0xd70   : > { %5834 = vpow2.f32 %v4933_v36  ;;  %v4936_v61 = vmul.f32 -1.442695, %v3192_v38  ;;  %v6909_v11 = vadd.f32 %v3186_v52, %v3065_v27 }
 0xd72   : > { %5836 = vpow2.f32 %v4936_v61  ;;  %v4935_v58 = vmul.f32 -1.442695, %v6909_v11 }
 0xd73   : > { %v5825_v24 = vpop.eup %5824 }
 0xd74   : > { %v3220_v33 = vadd.f32 1.0, %v5825_v24  ;;  %5838 = vpow2.f32 %v4935_v58 }
 0xd75   : > { %v5827_v4 = vpop.eup %5826 }
 0xd76   : > { %5840 = vrcp.f32 %v3220_v33  ;;  %v3219_v23 = vadd.f32 1.0, %v5827_v4 }
 0xd77   : > { %v5829_v31 = vpop.eup %5828 }
 0xd78   : > { %5842 = vrcp.f32 %v3219_v23  ;;  %v3222_v39 = vadd.f32 1.0, %v5829_v31 }
 0xd79   : > { %v5831_v55 = vpop.eup %5830 }
 0xd7a   : > { %5844 = vrcp.f32 %v3222_v39  ;;  %v3221_v12 = vadd.f32 1.0, %v5831_v55 }
 0xd7b   : > { %v5833_v56 = vpop.eup %5832 }
 0xd7c   : > { %5846 = vrcp.f32 %v3221_v12  ;;  %v3224_v63 = vadd.f32 1.0, %v5833_v56 }
 0xd7d   : > { %v5835_v57 = vpop.eup %5834 }
 0xd7e   : > { %5848 = vrcp.f32 %v3224_v63  ;;  %v3223_v20 = vadd.f32 1.0, %v5835_v57 }
 0xd7f   : > { %v5837_v3 = vpop.eup %5836 }
 0xd80   : > { %5850 = vrcp.f32 %v3223_v20  ;;  %v3226_v27 = vadd.f32 1.0, %v5837_v3  ;;  %v6948_v3 = vrot.slane %v6875_v15, %v6315_v1 }
 0xd81   : > { %v5839_v17 = vpop.eup %5838 }
 0xd82   : > { %5852 = vrcp.f32 %v3226_v27  ;;  %v3225_v54 = vadd.f32 1.0, %v5839_v17 }
 0xd83   : > { %v5841_v7 = vpop.eup %5840 }
 0xd84   : > { %v3244_v22 = vmul.f32 %v5841_v7, %v3162_v46  ;;  %5854 = vrcp.f32 %v3225_v54 }
 0xd85   : > { %v5843_v51 = vpop.eup %5842 }
 0xd86   : > { %v3243_v19 = vmul.f32 %v5843_v51, %v3157_v37  ;;  %v3565_v2 = vmul.f32 %v3244_v22, %v6375_v47 }
 0xd87   : > { %v5845_v25 = vpop.eup %5844 }
 0xd88   : > { %v3564_v34 = vmul.f32 %v3243_v19, %v6379_v0  ;;  %v3246_v18 = vmul.f32 %v5845_v25, %v3172_v10  ;;  %5433 = vmatprep.mubr.msk.f32.mxu0 %vm497_vm4, %v3243_v19  ;;  %v3573_v46 = vsel %vm497_vm4, %v3565_v2, 0.0 }
 0xd89   : > { %v5847_v44 = vpop.eup %5846  ;;  %5434 = vmatmul.mubr.msk.f32.vlgmr.msra.gmra.mxu0 %vm497_vm4, %v3244_v22 }
 0xd8a   : > { %v3572_v43 = vsel %vm497_vm4, %v3564_v34, 0.0  ;;  %v3245_v36 = vmul.f32 %v5847_v44, %v3167_v9  ;;  %v3567_v61 = vmul.f32 %v3246_v18, %v6381_v13 }
 0xd8b   : > { %v5849_v52 = vpop.eup %5848  ;;  %v3574_v0 = vadd.f32 %v3573_v46, %v3572_v43 }
 0xd8c   : > { %v3566_v37 = vmul.f32 %v3245_v36, %v6377_v62  ;;  %v3248_v58 = vmul.f32 %v5849_v52, %v3182_v6  ;;  %5436 = vmatprep.mubr.msk.f32.mxu0 %vm497_vm4, %v3245_v36  ;;  %v3577_v9 = vsel %vm497_vm4, %v3567_v61, 0.0 }
 0xd8d   : > { %v5851_v47 = vpop.eup %5850  ;;  %5437 = vmatmul.mubr.msk.f32.gmra.mxu0 %vm497_vm4, %v3246_v18 }
 0xd8e   : > { %v3575_v10 = vsel %vm497_vm4, %v3566_v37, 0.0  ;;  %v3247_v24 = vmul.f32 %v5851_v47, %v3177_v48  ;;  %v3569_v23 = vmul.f32 %v3248_v58, %v6394_v59 }
 0xd8f   : > { %v5853_v33 = vpop.eup %5852  ;;  %v3576_v4 = vadd.f32 %v3575_v10, %v3574_v0 }
 0xd90   : > { %v3568_v13 = vmul.f32 %v3247_v24, %v6388_v8  ;;  %v3250_v31 = vmul.f32 %v5853_v33, %v3192_v38  ;;  %5439 = vmatprep.mubr.msk.f32.mxu0 %vm497_vm4, %v3247_v24  ;;  %v3581_v12 = vsel %vm497_vm4, %v3569_v23, 0.0  ;;  %v3698_v33 = vld [vmem:[#allocation4 + $0x2f8] sm:$0xff]  ;;  %v3695_v23 = vld [vmem:[#allocation4 + $0x2e0] sm:$0xff] }
 0xd91   : > { %v5855_v62 = vpop.eup %5854  ;;  %v3578_v6 = vadd.f32 %v3577_v9, %v3576_v4  ;;  %5440 = vmatmul.mubr.msk.f32.gmra.mxu0 %vm497_vm4, %v3248_v58  ;;  %v6965_v58 = vrot.slane %v6875_v15, %v6279_v29  ;;  %v3697_v4 = vld [vmem:[#allocation4 + $0x2f0] sm:$0xff]  ;;  %v3696_v9 = vld [vmem:[#allocation4 + $0x2e8] sm:$0xff] }
 0xd92   : > { %v3579_v39 = vsel %vm497_vm4, %v3568_v13, 0.0  ;;  %v3249_v55 = vmul.f32 %v5855_v62, %v6909_v11  ;;  %v3571_v56 = vmul.f32 %v3250_v31, %v6409_v53  ;;  %v2856_v53 = vpop.f32.mrf.mxu0  ;;  %5465 = vmatpush3.msra.mxu0 %v3698_v33  ;;  %v3694_v13 = vld [vmem:[#allocation4 + $0x2d8] sm:$0xff]  ;;  %v3692_v62 = vld [vmem:[#allocation4 + $0x2c8] sm:$0xff] }
 0xd93   : > { %v3580_v48 = vadd.f32 %v3579_v39, %v3578_v6  ;;  %5466 = vmatprep.subr.mxu0 %v7314_v41  ;;  %v3691_v6 = vld [vmem:[#allocation4 + $0x2c0] sm:$0xff] }
 0xd94   : > { %v3570_v59 = vmul.f32 %v3249_v55, %v6405_v50  ;;  %5442 = vmatprep.mubr.msk.f32.mxu0 %vm497_vm4, %v3249_v55  ;;  %v3585_v11 = vsel %vm497_vm4, %v3571_v56, 0.0  ;;  %v3677_v50 = vrot.slane %v6875_v15, %v6284_v32  ;;  %5467 = vmatpush3.msra.mxu0 %v3697_v4 }
 0xd95   : > { %v3582_v8 = vadd.f32 %v3581_v12, %v3580_v48  ;;  %5443 = vmatmul.mubr.msk.f32.gmra.mxu0 %vm497_vm4, %v3250_v31  ;;  %5468 = vmatprep.subr.mxu0 %v7314_v41  ;;  %v3693_v31 = vld [vmem:[#allocation4 + $0x2d0] sm:$0xff] }
 0xd96   : > { %v3583_v38 = vsel %vm497_vm4, %v3570_v59, 0.0  ;;  %5480 = vmatprep.mubr.msk.f32.mxu0 %vm6078_vm5, %v7314_v41  ;;  %3679 = vrot.lane.b32.xlu0 %v3677_v50, %s6077_s22  ;;  %v2862_v59 = vrot.slane %v6875_v15, %v6295_v35 }
 0xd97   : > { %v3584_v63 = vadd.f32 %v3583_v38, %v3582_v8  ;;  %5469 = vmatpush3.msra.mxu0 %v3696_v9 }
 0xd98   : > { %5470 = vmatprep.subr.mxu0 %v7314_v41  ;;  %v2863_v8 = vadd.f32 %v2862_v59, %v2856_v53 }
 0xd99   : > { %v3586_v57 = vadd.f32 %v3585_v11, %v3584_v63  ;;  %5471 = vmatpush3.msra.mxu0 %v3695_v23 }
 0xd9a   : > { %5472 = vmatprep.subr.mxu0 %v7314_v41  ;;  %v4961_v63 = vmul.f32 -1.442695, %v2863_v8 }
 0xd9b   : > { %5462 = vmatmul.mubr.msk.f32.vlgmr.msra.gmra.mxu1 %vm497_vm4, %v3586_v57  ;;  %5473 = vmatpush3.msra.mxu0 %v3694_v13 }
 0xd9c   : > { %3996 = vmatprep.mubr.f32.mxu1 %v7314_v41  ;;  %5474 = vmatprep.subr.mxu0 %v7314_v41 }
 0xd9d   : > { %5475 = vmatpush3.msra.mxu0 %v3693_v31 }
 0xd9e   : > { %5476 = vmatprep.subr.mxu0 %v7314_v41 }
 0xd9f   : > { %5477 = vmatpush3.msra.mxu0 %v3692_v62 }
 0xda0   : > { %5478 = vmatprep.subr.mxu0 %v7314_v41 }
 0xda1   : > { %5479 = vmatpush3.msra.mxu0 %v3691_v6 }
 0xe08   : > { %v3680_v55 = vpop.permute.xlu0 %3679 }
 0xe49   : > { %v6944_v20 = vpop.f32.mrf.mxu0 }
 0xe4a   : > { %v3360_v11 = vadd.f32 %v6944_v20, %v6948_v3 }
 0xe4b   : > { %v3354_v27 = vpop.f32.mrf.mxu0 }
 0xe4c   : > { %v3355_v17 = vadd.f32 %v3354_v27, %v6948_v3  ;;  %v4946_v41 = vmul.f32 -1.442695, %v3360_v11 }
 0xe4d   : > { %v6951_v54 = vpop.f32.mrf.mxu0 }
 0xe4e   : > { %v4945_v7 = vmul.f32 -1.442695, %v3355_v17  ;;  %v3370_v27 = vadd.f32 %v6951_v54, %v6948_v3 }
 0xe4f   : > { %v6953_v22 = vpop.f32.mrf.mxu0 }
 0xe50   : > { %5856 = vpow2.f32 %v4945_v7  ;;  %v3365_v50 = vadd.f32 %v6953_v22, %v6948_v3  ;;  %v4948_v7 = vmul.f32 -1.442695, %v3370_v27 }
 0xe51   : > { %v6955_v51 = vpop.f32.mrf.mxu0 }
 0xe52   : > { %v3380_v20 = vadd.f32 %v6955_v51, %v6948_v3 }
 0xe53   : > { %v6957_v32 = vpop.f32.mrf.mxu0 }
 0xe55   : > { %v6959_v19 = vpop.f32.mrf.mxu0 }
 0xe56   : > { %v3390_v54 = vadd.f32 %v6959_v19, %v6948_v3 }
 0xe57   : > { %v3384_v25 = vpop.f32.mrf.mxu0 }
 0xe58   : > { %v3385_v2 = vadd.f32 %v3384_v25, %v6948_v3 }
 0xe5a   : > { %v4951_v34 = vmul.f32 -1.442695, %v3385_v2 }
 0xe5b   : > { %v3665_v18 = vpop.f32.mrf.mxu1 }
 0xe5c   : > { %5858 = vpow2.f32 %v4951_v34  ;;  %3670 = vrot.lane.b32.xlu1 %v3665_v18, %s6077_s22 }
 0xe5d   : > { %v5857_v44 = vpop.eup %5856  ;;  %v5463_v43 = vpop.f32.mrf.mxu1 }
 0xe5e   : > { %v3417_v36 = vadd.f32 1.0, %v5857_v44  ;;  %v4950_v44 = vmul.f32 -1.442695, %v3380_v20 }
 0xe60   : > { %5860 = vrcp.f32 %v3417_v36  ;;  %v4952_v36 = vmul.f32 -1.442695, %v3390_v54 }
 0xe69   : > { %v5859_v52 = vpop.eup %5858 }
 0xe6a   : > { %v3423_v46 = vadd.f32 1.0, %v5859_v52 }
 0xe6c   : > { %5862 = vrcp.f32 %v3423_v46 }
 0xe6d   : > { %v5861_v61 = vpop.eup %5860 }
 0xe6e   : > { %v3441_v37 = vmul.f32 %v5861_v61, %v3355_v17  ;;  %v4947_v17 = vmul.f32 -1.442695, %v3365_v50 }
 0xe70   : > { %v6968_v47 = vmul.f32 %v6965_v58, %v3441_v37 }
 0xe79   : > { %v5863_v0 = vpop.eup %5862 }
 0xe7a   : > { %v3447_v10 = vmul.f32 %v5863_v0, %v3385_v2 }
 0xe7c   : > { %v6971_v24 = vmul.f32 %v6965_v58, %v3447_v10 }
 0xece   : > { %v3671_v39 = vpop.permute.xlu1 %3670 }
 0xecf   : > { %v3673_v48 = vadd.f32 %v3671_v39, %v2856_v53  ;;  %v3375_v53 = vadd.f32 %v6957_v32, %v6948_v3  ;;  %v4911_v3 = vld [vmem:[%s7280_s4 + $0x28] sm:$0x3] }
 0xed0   : > { %v3542_v23 = vrot.slane %v4911_v3, %v6193_v30 }
 0xed1   : > { %v3682_v12 = vadd.f32 %v3680_v55, %v3673_v48  ;;  %v4949_v34 = vmul.f32 -1.442695, %v3375_v53 }
 0xed3   : > { %v4963_v56 = vmul.f32 -1.442695, %v3682_v12 }
 0xed5   : > { %5864 = vpow2.f32 %v4963_v56 }
 0xee2   : > { %v5865_v38 = vpop.eup %5864 }
 0xee3   : > { %v3686_v57 = vadd.f32 1.0, %v5865_v38 }
 0xee5   : > { %5866 = vrcp.f32 %v3686_v57 }
 0xee6   : > { %5868 = vpow2.f32 %v4961_v63 }
 0xee7   : > { %5870 = vpow2.f32 %v4946_v41 }
 0xee8   : > { %5872 = vpow2.f32 %v4947_v17 }
 0xee9   : > { %5874 = vpow2.f32 %v4948_v7 }
 0xeea   : > { %5876 = vpow2.f32 %v4949_v34 }
 0xef2   : > { %v5867_v25 = vpop.eup %5866 }
 0xef3   : > { %v5869_v2 = vpop.eup %5868  ;;  %v3689_v18 = vmul.f32 %v5867_v25, %v3682_v12 }
 0xef4   : > { %v3535_v22 = vadd.f32 1.0, %v5869_v2  ;;  %v5871_v43 = vpop.eup %5870 }
 0xef5   : > { %3704 = vrot.lane.b32.xlu0 %v3689_v18, %s6077_s22  ;;  %v3418_v32 = vadd.f32 1.0, %v5871_v43  ;;  %v5873_v52 = vpop.eup %5872  ;;  %v3550_v43 = vrot.slane %v4911_v3, %v6265_v14  ;;  %v3918_v3 = vld [vmem:[#allocation2 + $0x1a8] sm:$0xff] }
 0xef6   : > { %5878 = vrcp.f32 %v3535_v22  ;;  %v3419_v46 = vadd.f32 1.0, %v5873_v52  ;;  %v5875_v51 = vpop.eup %5874 }
 0xef7   : > { %5880 = vpow2.f32 %v4950_v44  ;;  %v3420_v61 = vadd.f32 1.0, %v5875_v51  ;;  %v5877_v37 = vpop.eup %5876  ;;  %v3925_v51 = vld [vmem:[#allocation2 + $0x1e0] sm:$0xff] }
 0xef8   : > { %5882 = vpow2.f32 %v4952_v36  ;;  %v3421_v10 = vadd.f32 1.0, %v5877_v37  ;;  %v3928_v36 = vld [vmem:[#allocation2 + $0x1f8] sm:$0xff]  ;;  %v3922_v37 = vld [vmem:[#allocation2 + $0x1c8] sm:$0xff] }
 0xef9   : > { %5884 = vrcp.f32 %v3418_v32  ;;  %3948 = vmatprep.subr.mxu1 %v3928_v36 }
 0xefa   : > { %5886 = vrcp.f32 %v3419_v46  ;;  %v3926_v46 = vld [vmem:[#allocation2 + $0x1e8] sm:$0xff] }
 0xefb   : > { %5888 = vrcp.f32 %v3420_v61  ;;  %v3924_v61 = vld [vmem:[#allocation2 + $0x1d8] sm:$0xff] }
 0xefc   : > { %5890 = vrcp.f32 %v3421_v10  ;;  %v3920_v10 = vld [vmem:[#allocation2 + $0x1b8] sm:$0xff] }
 0xf03   : > { %v5879_v0 = vpop.eup %5878 }
 0xf04   : > { %v5881_v33 = vpop.eup %5880  ;;  %v3538_v4 = vmul.f32 %v5879_v0, %v2863_v8  ;;  %v3921_v0 = vld [vmem:[#allocation2 + $0x1c0] sm:$0xff] }
 0xf05   : > { %v5883_v19 = vpop.eup %5882  ;;  %v3422_v9 = vadd.f32 1.0, %v5881_v33  ;;  %v3919_v33 = vld [vmem:[#allocation2 + $0x1b0] sm:$0xff] }
 0xf06   : > { %v5885_v13 = vpop.eup %5884  ;;  %v3424_v62 = vadd.f32 1.0, %v5883_v19  ;;  %v3543_v6 = vmul.f32 %v3542_v23, %v3538_v4  ;;  %v3917_v19 = vld [vmem:[#allocation2 + $0x1a0] sm:$0xff]  ;;  %v3916_v4 = vld [vmem:[#allocation2 + $0x198] sm:$0xff]  ;;  %v3914_v23 = vld [vmem:[#allocation2 + $0x188] sm:$0xff] }
 0xf07   : > { %v3442_v31 = vmul.f32 %v5885_v13, %v3360_v11  ;;  %5892 = vrcp.f32 %v3422_v9  ;;  %v5887_v39 = vpop.eup %5886  ;;  %v3915_v9 = vld [vmem:[#allocation2 + $0x190] sm:$0xff]  ;;  %v3913_v13 = vld [vmem:[#allocation2 + $0x180] sm:$0xff] }
 0xf08   : > { %v3443_v55 = vmul.f32 %v5887_v39, %v3365_v50  ;;  %5894 = vrcp.f32 %v3424_v62  ;;  %v3544_v48 = vsel %vm497_vm4, %v3543_v6, 0.0  ;;  %v5889_v56 = vpop.eup %5888  ;;  %v3479_v62 = vsel %vm497_vm4, %v6971_v24, 0.0  ;;  %v7019_v39 = vld [vmem:[%s6172_s14] sm:$0xff] }
 0xf09   : > { %v3454_v12 = vmul.f32 %v6965_v58, %v3442_v31  ;;  %v3444_v59 = vmul.f32 %v5889_v56, %v3370_v27  ;;  %v5891_v63 = vpop.eup %5890  ;;  %v3461_v31 = vsel %vm497_vm4, %v6968_v47, 0.0 }
 0xf0a   : > { %v3455_v38 = vmul.f32 %v6965_v58, %v3443_v55  ;;  %v3445_v11 = vmul.f32 %v5891_v63, %v3375_v53 }
 0xf0b   : > { %v3464_v8 = vsel %vm497_vm4, %v3454_v12, 0.0  ;;  %v3456_v41 = vmul.f32 %v6965_v58, %v3444_v59 }
 0xf0c   : > { %v3467_v57 = vsel %vm497_vm4, %v3455_v38, 0.0  ;;  %v3457_v25 = vmul.f32 %v6965_v58, %v3445_v11 }
 0xf0d   : > { %v3470_v7 = vsel %vm497_vm4, %v3456_v41, 0.0 }
 0xf0e   : > { %v3473_v34 = vsel %vm497_vm4, %v3457_v25, 0.0 }
 0xf14   : > { %3545 = vadd.xlane.f32.xlu0 %v3544_v48  ;;  %v5893_v50 = vpop.eup %5892  ;;  %v3702_v48 = vrot.slane %v6875_v15, %v6274_v26 }
 0xf15   : > { %v3446_v17 = vmul.f32 %v5893_v50, %v3380_v20  ;;  %v5895_v2 = vpop.eup %5894 }
 0xf16   : > { %v3448_v27 = vmul.f32 %v5895_v2, %v3390_v54  ;;  %v3927_v54 = vld [vmem:[#allocation2 + $0x1f0] sm:$0xff] }
 0xf17   : > { %v3458_v18 = vmul.f32 %v6965_v58, %v3446_v17  ;;  %3949 = vmatpush1.msra.mxu1 %v3927_v54 }
 0xf18   : > { %3465 = vadd.xlane.f32.xlu0 %v3464_v8  ;;  %v3460_v22 = vmul.f32 %v6965_v58, %v3448_v27  ;;  %3950 = vmatprep.subr.mxu1 %v3926_v46  ;;  %v3923_v58 = vld [vmem:[#allocation2 + $0x1d0] sm:$0xff] }
 0xf19   : > { %v3476_v53 = vsel %vm497_vm4, %v3458_v18, 0.0  ;;  %3951 = vmatpush1.msra.mxu1 %v3925_v51 }
 0xf1a   : > { %v3482_v44 = vsel %vm497_vm4, %v3460_v22, 0.0  ;;  %3952 = vmatprep.subr.mxu1 %v3924_v61  ;;  %v7323_v22 = vld [vmem:[#allocation10_spill] sm:$0xff] }
 0xf1b   : > { %3953 = vmatpush1.msra.mxu1 %v3923_v58  ;;  %v7326_v61 = vld [vmem:[#allocation18_spill] sm:$0xff] }
 0xf1c   : > { %3468 = vadd.xlane.f32.xlu0 %v3467_v57  ;;  %3954 = vmatprep.subr.mxu1 %v3922_v37 }
 0xf1d   : > { %3955 = vmatpush1.msra.mxu1 %v3921_v0 }
 0xf1e   : > { %3956 = vmatprep.subr.mxu1 %v3920_v10  ;;  %v7327_v10 = vld [vmem:[#allocation12_spill] sm:$0xff] }
 0xf1f   : > { %3957 = vmatpush1.msra.mxu1 %v3919_v33 }
 0xf20   : > { %3471 = vadd.xlane.f32.xlu0 %v3470_v7  ;;  %3958 = vmatprep.subr.mxu1 %v3918_v3  ;;  %v7328_v3 = vld [vmem:[#allocation16_spill] sm:$0xff] }
 0xf21   : > { %3959 = vmatpush1.msra.mxu1 %v3917_v19 }
 0xf22   : > { %3960 = vmatprep.subr.mxu1 %v3916_v4 }
 0xf23   : > { %3961 = vmatpush1.msra.mxu1 %v3915_v9 }
 0xf24   : > { %3474 = vadd.xlane.f32.xlu0 %v3473_v34  ;;  %3962 = vmatprep.subr.mxu1 %v3914_v23 }
 0xf25   : > { %3963 = vmatpush1.msra.mxu1 %v3913_v13 }
 0xf28   : > { %3477 = vadd.xlane.f32.xlu0 %v3476_v53 }
 0xf2c   : > { %3483 = vadd.xlane.f32.xlu0 %v3482_v44 }
 0xf67   : > { %v3705_v20 = vpop.permute.xlu0 %3704 }
 0xf68   : > { %5481 = vmatmul.mubr.msk.f32.vlgmr.msra.gmra.mxu0 %vm497_vm4, %v3705_v20 }
 0xf9d   : > { %v3546_v32 = vpop.xlane.xlu0 %3545 }
 0xf9e   : > { %v3551_v52 = vadd.f32 %v3550_v43, %v3546_v32  ;;  %v7324_v43 = vld [vmem:[#allocation17_spill] sm:$0xff] }
 0xfa0   : > { %3554 = vperm.xlu1 %5579, %v3551_v52   ;;  %v7325_v52 = vld [vmem:[#allocation11_spill] sm:$0xff] }
 0xfa1   : > { %v3466_v8 = vpop.xlane.xlu0 %3465 }
 0xfa2   : > { %v3486_v11 = vmul.f32 %v3466_v8, %v6821_v16 }
 0xfa4   : > { %v4954_v50 = vclamps-f32 %v3486_v11, 100.0  ;;  %v7332_v11 = vld [vmem:[#allocation8_spill] sm:$0xff] }
 0xfa5   : > { %v3469_v24 = vpop.xlane.xlu0 %3468 }
 0xfa6   : > { %v3487_v17 = vmul.f32 %v3469_v24, %v6818_v28  ;;  %v3510_v7 = vmul.f32 %v4954_v50, %v6462_v5 }
 0xfa8   : > { %v3518_v27 = vsel %vm256_vm0, %v3510_v7, 0.0 }
 0xfa9   : > { %v3472_v57 = vpop.xlane.xlu0 %3471 }
 0xfaa   : > { %v3488_v25 = vmul.f32 %v3472_v57, %v6844_v49 }
 0xfac   : > { %v4956_v16 = vclamps-f32 %v3488_v25, 100.0 }
 0xfad   : > { %v3475_v15 = vpop.xlane.xlu0 %3474 }
 0xfae   : > { %v3489_v34 = vmul.f32 %v3475_v15, %v6824_v21  ;;  %v3512_v44 = vmul.f32 %v4956_v16, %v7323_v22 }
 0xfb0   : > { %v4957_v20 = vclamps-f32 %v3489_v34, 100.0  ;;  %v3522_v32 = vsel %vm256_vm0, %v3512_v44, 0.0 }
 0xfb1   : > { %v3478_v18 = vpop.xlane.xlu0 %3477 }
 0xfb2   : > { %v3490_v36 = vmul.f32 %v3478_v18, %v7324_v43  ;;  %v3513_v46 = vmul.f32 %v4957_v20, %v7325_v52 }
 0xfb4   : > { %v4958_v51 = vclamps-f32 %v3490_v36, 100.0  ;;  %v3524_v0 = vsel %vm256_vm0, %v3513_v46, 0.0 }
 0xfb5   : > { %v3484_v37 = vpop.xlane.xlu0 %3483 }
 0xfb6   : > { %v3514_v33 = vmul.f32 %v4958_v51, %v7327_v10  ;;  %v3492_v19 = vmul.f32 %v3484_v37, %v7328_v3 }
 0xfb8   : > { %v3526_v23 = vsel %vm256_vm0, %v3514_v33, 0.0  ;;  %v4960_v13 = vclamps-f32 %v3492_v19, 100.0 }
 0xfc4   : > { %3462 = vadd.xlane.f32.xlu1 %v3461_v31  ;;  %v7329_v31 = vld [vmem:[#allocation13_spill] sm:$0xff] }
 0xfc8   : > { %3480 = vadd.xlane.f32.xlu1 %v3479_v62 }
0x101b   : > { %v3555_v6 = vpop.permute.xlu1 %3554 }
0x101c   : > { %v3557_v55 = vmul.f32 %v7019_v39, %v3555_v6 }
0x101e   : > { %3559 = vrot.lane.b32.xlu1 %v3557_v55, %s6074_s15  ;;  %v7330_v55 = vld [vmem:[#allocation14_spill] sm:$0xff] }
0x1028   : > { %v3774_v12 = vpop.f32.mrf.mxu0 }
0x1029   : > { %v3775_v56 = vadd.f32 %v3774_v12, %v3702_v48  ;;  %v3516_v48 = vmul.f32 %v4960_v13, %v7330_v55 }
0x102a   : > { %v5482_v59 = vpop.f32.mrf.mxu0 }
0x102b   : > { %v3778_v47 = vadd.f32 %v3775_v56, %v6768_v42  ;;  %v4955_v42 = vclamps-f32 %v3487_v17, 100.0  ;;  %v3530_v59 = vsel %vm256_vm0, %v3516_v48, 0.0  ;;  %v4205_v48 = vld [vmem:[#allocation4 + $0x338] sm:$0xff] }
0x102c   : > { %5483 = vmatprep.subr.mxu0 %v4205_v48 }
0x102d   : > { %4967 = vmatmul.mubr.msk.f32.vlgmr.msra.gmra.mxu1 %vm497_vm4, %v3778_v47  ;;  %5484 = vmatpush3.msra.mxu0 %v4205_v48 }
0x104d   : > { %v3463_v38 = vpop.xlane.xlu1 %3462 }
0x104e   : > { %v3485_v63 = vmul.f32 %v3463_v38, %v6809_v60  ;;  %v3511_v60 = vmul.f32 %v4955_v42, %v6468_v45  ;;  %v7331_v38 = vld [vmem:[#allocation15_spill] sm:$0xff] }
0x1050   : > { %v4953_v41 = vclamps-f32 %v3485_v63, 100.0  ;;  %v3520_v28 = vsel %vm256_vm0, %v3511_v60, 0.0 }
0x1051   : > { %v3481_v49 = vpop.xlane.xlu1 %3480 }
0x1052   : > { %v3509_v26 = vmul.f32 %v4953_v41, %v6458_v40  ;;  %v3491_v58 = vmul.f32 %v3481_v49, %v7326_v61 }
0x1054   : > { %v3517_v2 = vsel %vm256_vm0, %v3509_v26, 0.0  ;;  %v4959_v4 = vclamps-f32 %v3491_v58, 100.0 }
0x1055   : > { %v3519_v53 = vadd.f32 %v3518_v27, %v3517_v2 }
0x1056   : > { %v3515_v62 = vmul.f32 %v4959_v4, %v7329_v31 }
0x1057   : > { %v3521_v54 = vadd.f32 %v3520_v28, %v3519_v53 }
0x1058   : > { %v3528_v12 = vsel %vm256_vm0, %v3515_v62, 0.0 }
0x1059   : > { %v3523_v21 = vadd.f32 %v3522_v32, %v3521_v54 }
0x105b   : > { %v3525_v9 = vadd.f32 %v3524_v0, %v3523_v21 }
0x105d   : > { %v3527_v6 = vadd.f32 %v3526_v23, %v3525_v9 }
0x105f   : > { %v3529_v56 = vadd.f32 %v3528_v12, %v3527_v6  ;;  %v4204_v12 = vld [vmem:[#allocation4 + $0x330] sm:$0xff] }
0x1060   : > { %5485 = vmatprep.subr.mxu0 %v4204_v12 }
0x1061   : > { %v3531_v47 = vadd.f32 %v3530_v59, %v3529_v56  ;;  %v4203_v56 = vld [vmem:[#allocation4 + $0x328] sm:$0xff]  ;;  %5486 = vmatpush3.msra.mxu0 %v4204_v12  ;;  %v4202_v59 = vld [vmem:[#allocation4 + $0x320] sm:$0xff] }
0x1062   : > { %5487 = vmatprep.subr.mxu0 %v4203_v56 }
0x1063   : > { %5488 = vmatpush3.msra.mxu0 %v4203_v56  ;;  %v7333_v56 = vld [vmem:[#allocation9_spill] sm:$0xff] }
0x1064   : > { %5489 = vmatprep.subr.mxu0 %v4202_v59 }
0x1065   : > { %5490 = vmatpush3.msra.mxu0 %v4202_v59 }
0x1090   : > { %v3560_v8 = vpop.permute.xlu1 %3559 }
0x1091   : > { %v3562_v24 = vadd.f32 %v3560_v8, %v3531_v47  ;;  %v4201_v47 = vld [vmem:[#allocation4 + $0x318] sm:$0xff]  ;;  %v4200_v8 = vld [vmem:[#allocation4 + $0x310] sm:$0xff] }
0x1092   : > { %5491 = vmatprep.subr.mxu0 %v4201_v47 }
0x1093   : > { %v7052_v63 = vadd.f32 %v3562_v24, %v7331_v38  ;;  %v7115_v24 = vld [vmem:[%s7280_s4 + $0x30] sm:$0xff]  ;;  %5492 = vmatpush3.msra.mxu0 %v4201_v47  ;;  %v4199_v38 = vld [vmem:[#allocation4 + $0x308] sm:$0xff] }
0x1094   : > { %5493 = vmatprep.subr.mxu0 %v4200_v8  ;;  %v7145_v59 = vrot.slane %v7115_v24, %v7333_v56 }
0x1095   : > { %v3790_v57 = vrot.slane %v7052_v63, %v7332_v11  ;;  %v3783_v41 = vcombine.high %v7052_v63, %v7052_v63  ;;  %5494 = vmatpush3.msra.mxu0 %v4200_v8 }
0x1096   : > { %5495 = vmatprep.subr.mxu0 %v4199_v38 }
0x1097   : > { %v3806_v50 = vrot.slane %v3790_v57, %v7332_v11  ;;  %v3797_v17 = vrot.slane %v3783_v41, %v7332_v11  ;;  %v3798_v26 = vcombine.high %v3790_v57, %v3790_v57  ;;  %v4006_v57 = vrot.slane %v7115_v24, %v6295_v35  ;;  %v4198_v41 = vld [vmem:[#allocation4 + $0x300] sm:$0xff]  ;;  %5496 = vmatpush3.msra.mxu0 %v4199_v38 }
0x1098   : > { %5497 = vmatprep.subr.mxu0 %v4198_v41 }
0x1099   : > { %v3835_v15 = vrot.slane %v3806_v50, %v6193_v30  ;;  %v3813_v7 = vrot.slane %v3797_v17, %v7332_v11  ;;  %v3820_v42 = vrot.slane %v3798_v26, %v7332_v11  ;;  %v3828_v25 = vcombine.high %v3806_v50, %v3806_v50  ;;  %5498 = vmatpush3.msra.mxu0 %v4198_v41 }
0x109a   : > { %v3799_v2 = vcombine.high %v3797_v17, %v3797_v17 }
0x109b   : > { %v7064_v27 = vsub.f32 %v3835_v15, %v7052_v63  ;;  %v3851_v60 = vrot.slane %v3813_v7, %v6193_v30  ;;  %v3839_v16 = vrot.slane %v3820_v42, %v6193_v30  ;;  %v3843_v34 = vrot.slane %v3828_v25, %v6193_v30 }
0x109c   : > { %v3830_v18 = vcombine.high %v3820_v42, %v3820_v42  ;;  %v3827_v43 = vrot.slane %v3799_v2, %v7332_v11  ;;  %v3829_v51 = vcombine.high %v3813_v7, %v3813_v7 }
0x109d   : > { %v3880_v53 = vmul.f32 %v7064_v27, %v7064_v27  ;;  %v7072_v28 = vsub.f32 %v3851_v60, %v7052_v63  ;;  %v7075_v44 = vsub.f32 %v3839_v16, %v7052_v63  ;;  %v7078_v20 = vsub.f32 %v3843_v34, %v7052_v63  ;;  %v7130_v34 = vld [vmem:[%s7280_s4 + $0x38] sm:$0x3] }
0x109e   : > { %v3847_v32 = vrot.slane %v3830_v18, %v6193_v30  ;;  %v3855_v21 = vrot.slane %v3827_v43, %v6193_v30  ;;  %v3859_v19 = vrot.slane %v3829_v51, %v6193_v30  ;;  %v3831_v7 = vcombine.high %v3827_v43, %v3827_v43 }
0x109f   : > { %v3888_v36 = vsel %vm256_vm0, %v3880_v53, 0.0  ;;  %v3884_v54 = vmul.f32 %v7072_v28, %v7072_v28  ;;  %v3881_v49 = vmul.f32 %v7075_v44, %v7075_v44  ;;  %v3882_v58 = vmul.f32 %v7078_v20, %v7078_v20 }
0x10a0   : > { %3889 = vadd.xlane.f32.xlu0 %v3888_v36  ;;  %v7092_v37 = vsub.f32 %v3847_v32, %v7052_v63  ;;  %v7099_v3 = vsub.f32 %v3855_v21, %v7052_v63  ;;  %v7106_v23 = vsub.f32 %v3859_v19, %v7052_v63  ;;  %v3863_v42 = vrot.slane %v3831_v7, %v6193_v30 }
0x10a1   : > { %v3900_v46 = vsel %vm256_vm0, %v3884_v54, 0.0  ;;  %v3891_v61 = vsel %vm256_vm0, %v3881_v49, 0.0  ;;  %v3894_v0 = vsel %vm256_vm0, %v3882_v58, 0.0  ;;  %v4686_v18 = vrot.slane %v7130_v34, %v6193_v30 }
0x10a2   : > { %3901 = vadd.xlane.f32.xlu1 %v3900_v46  ;;  %v3883_v33 = vmul.f32 %v7092_v37, %v7092_v37  ;;  %v3885_v9 = vmul.f32 %v7099_v3, %v7099_v3  ;;  %v3886_v62 = vmul.f32 %v7106_v23, %v7106_v23  ;;  %v7122_v35 = vsub.f32 %v3863_v42, %v7052_v63 }
0x10a4   : > { %3892 = vadd.xlane.f32.xlu0 %v3891_v61  ;;  %v3897_v4 = vsel %vm256_vm0, %v3883_v33, 0.0  ;;  %v3903_v13 = vsel %vm256_vm0, %v3885_v9, 0.0  ;;  %v3906_v6 = vsel %vm256_vm0, %v3886_v62, 0.0  ;;  %v3887_v60 = vmul.f32 %v7122_v35, %v7122_v35 }
0x10a6   : > { %v3909_v16 = vsel %vm256_vm0, %v3887_v60, 0.0 }
0x10a8   : > { %3895 = vadd.xlane.f32.xlu0 %v3894_v0 }
0x10ac   : > { %3898 = vadd.xlane.f32.xlu0 %v3897_v4 }
0x10b0   : > { %3904 = vadd.xlane.f32.xlu0 %v3903_v13 }
0x10b4   : > { %3907 = vadd.xlane.f32.xlu0 %v3906_v6 }
0x10ed   : > { %v3998_v50 = vpop.f32.mrf.mxu1 }
0x10ee   : > { %4098 = vrot.lane.b32.xlu0 %v3998_v50, %s6077_s22  ;;  %v4016_v51 = vrot.slane %v3998_v50, %v7332_v11  ;;  %v4009_v61 = vcombine.high %v3998_v50, %v3998_v50 }
0x10ef   : > { %v4000_v17 = vpop.f32.mrf.mxu1 }
0x10f0   : > { %v4007_v26 = vadd.f32 %v4006_v57, %v4000_v17  ;;  %v4024_v21 = vcombine.high %v4016_v51, %v4016_v51  ;;  %v4023_v0 = vrot.slane %v4009_v61, %v7332_v11  ;;  %v4032_v33 = vrot.slane %v4016_v51, %v7332_v11 }
0x10f1   : > { %v7150_v57 = vrot.slane %v7115_v24, %v6193_v30 }
0x10f2   : > { %v5016_v15 = vmul.f32 -1.442695, %v4007_v26  ;;  %v4046_v19 = vrot.slane %v4024_v21, %v7332_v11  ;;  %v4025_v9 = vcombine.high %v4023_v0, %v4023_v0  ;;  %v4039_v13 = vrot.slane %v4023_v0, %v7332_v11 }
0x10f3   : > { %v4054_v62 = vcombine.high %v4032_v33, %v4032_v33  ;;  %v4061_v38 = vrot.slane %v4032_v33, %v6193_v30 }
0x10f4   : > { %5896 = vpow2.f32 %v5016_v15  ;;  %v4056_v6 = vcombine.high %v4046_v19, %v4046_v19  ;;  %v7141_v48 = vrot.slane %v4025_v9, %v7332_v11  ;;  %v4055_v12 = vcombine.high %v4039_v13, %v4039_v13 }
0x10f5   : > { %v4065_v41 = vrot.slane %v4046_v19, %v6193_v30  ;;  %v4069_v50 = vrot.slane %v4054_v62, %v6193_v30  ;;  %v4077_v17 = vrot.slane %v4039_v13, %v6193_v30 }
0x10f6   : > { %v4073_v11 = vrot.slane %v4056_v6, %v6193_v30  ;;  %v4085_v15 = vrot.slane %v4055_v12, %v6193_v30 }
0x1101   : > { %v5897_v25 = vpop.eup %5896 }
0x1102   : > { %v4679_v2 = vadd.f32 1.0, %v5897_v25 }
0x1104   : > { %5898 = vrcp.f32 %v4679_v2 }
0x110d   : > { %3910 = vadd.xlane.f32.xlu0 %v3909_v16 }
0x1111   : > { %v5899_v53 = vpop.eup %5898 }
0x1112   : > { %v4682_v43 = vmul.f32 %v5899_v53, %v4007_v26  ;;  %v4081_v26 = vrot.slane %v7141_v48, %v6193_v30 }
0x1114   : > { %v4687_v36 = vmul.f32 %v4686_v18, %v4682_v43 }
0x1116   : > { %v4688_v54 = vsel %vm497_vm4, %v4687_v36, 0.0 }
0x1117   : > { %4689 = vadd.xlane.f32.xlu1 %v4688_v54 }
0x1129   : > { %v3890_v49 = vpop.xlane.xlu0 %3889 }
0x112a   : > { %v4113_v7 = vmul.f32 %v7145_v59, %v3890_v49 }
0x112b   : > { %v3902_v47 = vpop.xlane.xlu1 %3901 }
0x112c   : > { %v4117_v42 = vmul.f32 %v7145_v59, %v3902_v47 }
0x112d   : > { %v3893_v32 = vpop.xlane.xlu0 %3892 }
0x112e   : > { %v4114_v25 = vmul.f32 %v7145_v59, %v3893_v32 }
0x1131   : > { %v3896_v46 = vpop.xlane.xlu0 %3895 }
0x1132   : > { %v4115_v2 = vmul.f32 %v7145_v59, %v3896_v46 }
0x1135   : > { %v3899_v58 = vpop.xlane.xlu0 %3898 }
0x1136   : > { %v4116_v60 = vmul.f32 %v7145_v59, %v3899_v58 }
0x1139   : > { %v3905_v4 = vpop.xlane.xlu0 %3904 }
0x113a   : > { %v4118_v16 = vmul.f32 %v7145_v59, %v3905_v4 }
0x113d   : > { %v3908_v8 = vpop.xlane.xlu0 %3907 }
0x113e   : > { %v4119_v49 = vmul.f32 %v7145_v59, %v3908_v8 }
0x1160   : > { %v7165_v18 = vpop.permute.xlu0 %4098 }
0x1161   : > { %v4101_v53 = vadd.f32 %v7165_v18, %v4061_v38  ;;  %v4102_v43 = vadd.f32 %v7165_v18, %v4065_v41  ;;  %v4103_v36 = vadd.f32 %v7165_v18, %v4069_v50  ;;  %v4104_v54 = vadd.f32 %v7165_v18, %v4073_v11 }
0x1162   : > { %v4105_v32 = vadd.f32 %v7165_v18, %v4077_v17  ;;  %v4106_v46 = vadd.f32 %v7165_v18, %v4081_v26  ;;  %v4107_v51 = vadd.f32 %v7165_v18, %v4085_v15 }
0x1163   : > { %v4121_v61 = vadd.f32 %v4113_v7, %v4101_v53  ;;  %v4122_v58 = vadd.f32 %v4114_v25, %v4102_v43  ;;  %v4123_v21 = vadd.f32 %v4115_v2, %v4103_v36  ;;  %v4124_v0 = vadd.f32 %v4116_v60, %v4104_v54 }
0x1164   : > { %v4125_v33 = vadd.f32 %v4117_v42, %v4105_v32  ;;  %v4126_v19 = vadd.f32 %v4118_v16, %v4106_v46  ;;  %v4127_v4 = vadd.f32 %v4119_v49, %v4107_v51 }
0x1165   : > { %v4133_v9 = vadd.f32 %v7150_v57, %v4121_v61  ;;  %v4134_v13 = vadd.f32 %v7150_v57, %v4122_v58  ;;  %v4135_v62 = vadd.f32 %v7150_v57, %v4123_v21  ;;  %v4136_v6 = vadd.f32 %v7150_v57, %v4124_v0 }
0x1166   : > { %v4137_v12 = vadd.f32 %v7150_v57, %v4125_v33  ;;  %v4138_v56 = vadd.f32 %v7150_v57, %v4126_v19  ;;  %v4139_v47 = vadd.f32 %v7150_v57, %v4127_v4 }
0x1167   : > { %v4968_v8 = vmul.f32 -1.442695, %v4133_v9  ;;  %v4969_v38 = vmul.f32 -1.442695, %v4134_v13  ;;  %v4970_v41 = vmul.f32 -1.442695, %v4135_v62 }
0x1168   : > { %v4971_v50 = vmul.f32 -1.442695, %v4136_v6  ;;  %v4972_v11 = vmul.f32 -1.442695, %v4137_v12  ;;  %v4973_v17 = vmul.f32 -1.442695, %v4138_v56 }
0x1169   : > { %5900 = vpow2.f32 %v4968_v8  ;;  %v4974_v26 = vmul.f32 -1.442695, %v4139_v47 }
0x116a   : > { %5902 = vpow2.f32 %v4969_v38 }
0x116b   : > { %5904 = vpow2.f32 %v4970_v41 }
0x116c   : > { %5906 = vpow2.f32 %v4971_v50 }
0x116d   : > { %5908 = vpow2.f32 %v4972_v11 }
0x116e   : > { %5910 = vpow2.f32 %v4973_v17 }
0x116f   : > { %5912 = vpow2.f32 %v4974_v26 }
0x1176   : > { %v5901_v15 = vpop.eup %5900 }
0x1177   : > { %v5903_v7 = vpop.eup %5902  ;;  %v4165_v42 = vadd.f32 1.0, %v5901_v15 }
0x1178   : > { %v5905_v25 = vpop.eup %5904  ;;  %v4166_v2 = vadd.f32 1.0, %v5903_v7 }
0x1179   : > { %v5907_v60 = vpop.eup %5906  ;;  %5914 = vrcp.f32 %v4165_v42  ;;  %v4167_v16 = vadd.f32 1.0, %v5905_v25 }
0x117a   : > { %v5909_v53 = vpop.eup %5908  ;;  %5916 = vrcp.f32 %v4166_v2  ;;  %v4168_v43 = vadd.f32 1.0, %v5907_v60  ;;  %v4399_v60 = vld [vmem:[#allocation4 + $0x358] sm:$0xff] }
0x117b   : > { %v5911_v36 = vpop.eup %5910  ;;  %5918 = vrcp.f32 %v4167_v16  ;;  %v4169_v54 = vadd.f32 1.0, %v5909_v53  ;;  %v4398_v16 = vld [vmem:[#allocation4 + $0x350] sm:$0xff]  ;;  %v4397_v53 = vld [vmem:[#allocation4 + $0x348] sm:$0xff] }
0x117c   : > { %v5913_v49 = vpop.eup %5912  ;;  %5920 = vrcp.f32 %v4168_v43  ;;  %v4170_v32 = vadd.f32 1.0, %v5911_v36  ;;  %v4396_v43 = vld [vmem:[#allocation4 + $0x340] sm:$0xff]  ;;  %v7200_v36 = vrot.slane %v7115_v24, %v6265_v14 }
0x117d   : > { %5922 = vrcp.f32 %v4169_v54  ;;  %v4171_v46 = vadd.f32 1.0, %v5913_v49 }
0x117e   : > { %5924 = vrcp.f32 %v4170_v32 }
0x117f   : > { %5926 = vrcp.f32 %v4171_v46 }
0x1186   : > { %v5915_v51 = vpop.eup %5914 }
0x1187   : > { %v5917_v61 = vpop.eup %5916  ;;  %v4189_v58 = vmul.f32 %v5915_v51, %v4133_v9 }
0x1188   : > { %v5919_v21 = vpop.eup %5918  ;;  %v4190_v0 = vmul.f32 %v5917_v61, %v4134_v13  ;;  %v4057_v13 = vcombine.high %v7141_v48, %v7141_v48 }
0x1189   : > { %v5921_v33 = vpop.eup %5920  ;;  %5499 = vmatprep.mubr.msk.f32.mxu0 %vm497_vm4, %v4189_v58  ;;  %v4191_v19 = vmul.f32 %v5919_v21, %v4135_v62 }
0x118a   : > { %v5923_v4 = vpop.eup %5922  ;;  %5500 = vmatmul.mubr.msk.f32.vlgmr.msra.gmra.mxu0 %vm497_vm4, %v4190_v0  ;;  %v4192_v8 = vmul.f32 %v5921_v33, %v4136_v6  ;;  %v4089_v62 = vrot.slane %v4057_v13, %v6193_v30 }
0x118b   : > { %5502 = vmatprep.mubr.msk.f32.mxu0 %vm497_vm4, %v4191_v19  ;;  %v5925_v38 = vpop.eup %5924  ;;  %v4193_v41 = vmul.f32 %v5923_v4, %v4137_v12 }
0x118c   : > { %v5927_v50 = vpop.eup %5926  ;;  %v4194_v9 = vmul.f32 %v5925_v38, %v4138_v56  ;;  %v4108_v6 = vadd.f32 %v7165_v18, %v4089_v62  ;;  %v4694_v56 = vrot.slane %v7130_v34, %v6265_v14  ;;  %v4403_v18 = vld [vmem:[#allocation4 + $0x378] sm:$0xff]  ;;  %v4400_v34 = vld [vmem:[#allocation4 + $0x360] sm:$0xff] }
0x118d   : > { %v4195_v11 = vmul.f32 %v5927_v50, %v4139_v47  ;;  %5511 = vmatprep.subr.mxu1 %v4403_v18 }
0x118e   : > { %5503 = vmatmul.mubr.msk.f32.gmra.mxu0 %vm497_vm4, %v4192_v8  ;;  %5512 = vmatpush3.msra.mxu1 %v4403_v18 }
0x118f   : > { %5505 = vmatprep.mubr.msk.f32.mxu0 %vm497_vm4, %v4193_v41 }
0x1192   : > { %5506 = vmatmul.mubr.msk.f32.gmra.mxu0 %vm497_vm4, %v4194_v9 }
0x1193   : > { %5508 = vmatprep.mubr.msk.f32.mxu0 %vm497_vm4, %v4195_v11 }
0x1196   : > { %v3911_v17 = vpop.xlane.xlu0 %3910 }
0x1197   : > { %v4120_v12 = vmul.f32 %v7145_v59, %v3911_v17  ;;  %v4402_v59 = vld [vmem:[#allocation4 + $0x370] sm:$0xff] }
0x1198   : > { %5513 = vmatprep.subr.mxu1 %v4402_v59 }
0x1199   : > { %v4128_v26 = vadd.f32 %v4120_v12, %v4108_v6  ;;  %5514 = vmatpush3.msra.mxu1 %v4402_v59 }
0x119b   : > { %v4140_v15 = vadd.f32 %v7150_v57, %v4128_v26  ;;  %v4401_v57 = vld [vmem:[#allocation4 + $0x368] sm:$0xff] }
0x119c   : > { %5515 = vmatprep.subr.mxu1 %v4401_v57 }
0x119d   : > { %v4975_v7 = vmul.f32 -1.442695, %v4140_v15  ;;  %5516 = vmatpush3.msra.mxu1 %v4401_v57 }
0x119e   : > { %5517 = vmatprep.subr.mxu1 %v4400_v34 }
0x119f   : > { %5928 = vpow2.f32 %v4975_v7  ;;  %5518 = vmatpush3.msra.mxu1 %v4400_v34 }
0x11a0   : > { %v4690_v48 = vpop.xlane.xlu1 %4689  ;;  %5519 = vmatprep.subr.mxu1 %v4399_v60 }
0x11a1   : > { %v4695_v47 = vadd.f32 %v4694_v56, %v4690_v48  ;;  %5520 = vmatpush3.msra.mxu1 %v4399_v60 }
0x11a2   : > { %5521 = vmatprep.subr.mxu1 %v4398_v16 }
0x11a3   : > { %4698 = vperm.xlu1 %5579, %v4695_v47   ;;  %5522 = vmatpush3.msra.mxu1 %v4398_v16 }
0x11a4   : > { %5523 = vmatprep.subr.mxu1 %v4397_v53 }
0x11a5   : > { %5524 = vmatpush3.msra.mxu1 %v4397_v53 }
0x11a6   : > { %5525 = vmatprep.subr.mxu1 %v4396_v43 }
0x11a7   : > { %5526 = vmatpush3.msra.mxu1 %v4396_v43 }
0x11ac   : > { %v5929_v42 = vpop.eup %5928 }
0x11ad   : > { %v4172_v25 = vadd.f32 1.0, %v5929_v42 }
0x11af   : > { %5930 = vrcp.f32 %v4172_v25 }
0x11bc   : > { %v5931_v30 = vpop.eup %5930 }
0x11bd   : > { %v4196_v2 = vmul.f32 %v5931_v30, %v4140_v15 }
0x11bf   : > { %5509 = vmatmul.mubr.msk.f32.gmra.mxu0 %vm497_vm4, %v4196_v2 }
0x124a   : > { %v5501_v54 = vpop.f32.mrf.mxu0 }
0x124b   : > { %v4306_v49 = vadd.f32 %v5501_v54, %v7200_v36 }
0x124c   : > { %v4300_v32 = vpop.f32.mrf.mxu0 }
0x124d   : > { %v4985_v46 = vmul.f32 -1.442695, %v4306_v49  ;;  %v4301_v51 = vadd.f32 %v4300_v32, %v7200_v36 }
0x124e   : > { %v5504_v61 = vpop.f32.mrf.mxu0 }
0x124f   : > { %5932 = vpow2.f32 %v4985_v46  ;;  %v4984_v58 = vmul.f32 -1.442695, %v4301_v51  ;;  %v4316_v21 = vadd.f32 %v5504_v61, %v7200_v36 }
0x1250   : > { %v4310_v0 = vpop.f32.mrf.mxu0 }
0x1251   : > { %5934 = vpow2.f32 %v4984_v58  ;;  %v4987_v33 = vmul.f32 -1.442695, %v4316_v21  ;;  %v4311_v19 = vadd.f32 %v4310_v0, %v7200_v36 }
0x1252   : > { %v5507_v4 = vpop.f32.mrf.mxu0 }
0x1253   : > { %5936 = vpow2.f32 %v4987_v33  ;;  %v4986_v14 = vmul.f32 -1.442695, %v4311_v19  ;;  %v4326_v8 = vadd.f32 %v5507_v4, %v7200_v36 }
0x1254   : > { %v4320_v38 = vpop.f32.mrf.mxu0 }
0x1255   : > { %5938 = vpow2.f32 %v4986_v14  ;;  %v4989_v41 = vmul.f32 -1.442695, %v4326_v8  ;;  %v4321_v50 = vadd.f32 %v4320_v38, %v7200_v36 }
0x1257   : > { %5940 = vpow2.f32 %v4989_v41  ;;  %v4988_v9 = vmul.f32 -1.442695, %v4321_v50 }
0x1259   : > { %5942 = vpow2.f32 %v4988_v9 }
0x125c   : > { %v5933_v11 = vpop.eup %5932 }
0x125d   : > { %v4364_v13 = vadd.f32 1.0, %v5933_v11 }
0x125e   : > { %v5935_v62 = vpop.eup %5934 }
0x125f   : > { %v4363_v17 = vadd.f32 1.0, %v5935_v62  ;;  %5944 = vrcp.f32 %v4364_v13 }
0x1260   : > { %v5937_v6 = vpop.eup %5936 }
0x1261   : > { %5946 = vrcp.f32 %v4363_v17  ;;  %v4366_v12 = vadd.f32 1.0, %v5937_v6 }
0x1262   : > { %v5939_v26 = vpop.eup %5938 }
0x1263   : > { %v4365_v15 = vadd.f32 1.0, %v5939_v26  ;;  %5948 = vrcp.f32 %v4366_v12 }
0x1264   : > { %v5941_v7 = vpop.eup %5940 }
0x1265   : > { %5950 = vrcp.f32 %v4365_v15  ;;  %v4368_v56 = vadd.f32 1.0, %v5941_v7 }
0x1266   : > { %v5943_v48 = vpop.eup %5942 }
0x1267   : > { %v4367_v47 = vadd.f32 1.0, %v5943_v48  ;;  %5952 = vrcp.f32 %v4368_v56 }
0x1269   : > { %5954 = vrcp.f32 %v4367_v47 }
0x126c   : > { %v5945_v42 = vpop.eup %5944 }
0x126d   : > { %v4388_v2 = vmul.f32 %v5945_v42, %v4306_v49 }
0x126e   : > { %v5947_v25 = vpop.eup %5946 }
0x126f   : > { %v4387_v30 = vmul.f32 %v5947_v25, %v4301_v51 }
0x1270   : > { %v5949_v18 = vpop.eup %5948 }
0x1271   : > { %5527 = vmatprep.mubr.msk.f32.mxu1 %vm497_vm4, %v4387_v30  ;;  %v4390_v34 = vmul.f32 %v5949_v18, %v4316_v21 }
0x1272   : > { %v5951_v59 = vpop.eup %5950  ;;  %5528 = vmatmul.mubr.msk.f32.vlgmr.msra.gmra.mxu1 %vm497_vm4, %v4388_v2 }
0x1273   : > { %v4389_v57 = vmul.f32 %v5951_v59, %v4311_v19 }
0x1274   : > { %v5953_v60 = vpop.eup %5952 }
0x1275   : > { %5530 = vmatprep.mubr.msk.f32.mxu1 %vm497_vm4, %v4389_v57  ;;  %v4392_v43 = vmul.f32 %v5953_v60, %v4326_v8 }
0x1276   : > { %v5955_v16 = vpop.eup %5954  ;;  %5531 = vmatmul.mubr.msk.f32.gmra.mxu1 %vm497_vm4, %v4390_v34 }
0x1277   : > { %v4391_v53 = vmul.f32 %v5955_v16, %v4321_v50 }
0x1279   : > { %5533 = vmatprep.mubr.msk.f32.mxu1 %vm497_vm4, %v4391_v53 }
0x127a   : > { %5534 = vmatmul.mubr.msk.f32.gmra.mxu1 %vm497_vm4, %v4392_v43 }
0x127f   : > { %v5510_v54 = vpop.f32.mrf.mxu0 }
0x1280   : > { %v4336_v49 = vadd.f32 %v5510_v54, %v7200_v36 }
0x1281   : > { %v4330_v32 = vpop.f32.mrf.mxu0 }
0x1282   : > { %v4991_v46 = vmul.f32 -1.442695, %v4336_v49  ;;  %v4331_v51 = vadd.f32 %v4330_v32, %v7200_v36  ;;  %v7220_v36 = vrot.slane %v7115_v24, %v6315_v1 }
0x1284   : > { %5956 = vpow2.f32 %v4991_v46  ;;  %v4990_v61 = vmul.f32 -1.442695, %v4331_v51 }
0x1286   : > { %5958 = vpow2.f32 %v4990_v61 }
0x1291   : > { %v5957_v58 = vpop.eup %5956 }
0x1292   : > { %v4370_v21 = vadd.f32 1.0, %v5957_v58 }
0x1293   : > { %v5959_v0 = vpop.eup %5958 }
0x1294   : > { %v4369_v33 = vadd.f32 1.0, %v5959_v0  ;;  %5960 = vrcp.f32 %v4370_v21 }
0x1296   : > { %5962 = vrcp.f32 %v4369_v33 }
0x12a1   : > { %v5961_v19 = vpop.eup %5960 }
0x12a2   : > { %v4394_v8 = vmul.f32 %v5961_v19, %v4336_v49  ;;  %v4596_v49 = vrot.slane %v7115_v24, %v6279_v29 }
0x12a3   : > { %v5963_v4 = vpop.eup %5962 }
0x12a4   : > { %v4393_v14 = vmul.f32 %v5963_v4, %v4331_v51 }
0x12a6   : > { %5536 = vmatprep.mubr.msk.f32.mxu1 %vm497_vm4, %v4393_v14 }
0x12a7   : > { %5537 = vmatmul.mubr.msk.f32.gmra.mxu1 %vm497_vm4, %v4394_v8 }
0x1332   : > { %v5529_v38 = vpop.f32.mrf.mxu1 }
0x1333   : > { %v4504_v41 = vadd.f32 %v5529_v38, %v7220_v36 }
0x1334   : > { %v4498_v50 = vpop.f32.mrf.mxu1 }
0x1335   : > { %v5001_v9 = vmul.f32 -1.442695, %v4504_v41  ;;  %v4499_v11 = vadd.f32 %v4498_v50, %v7220_v36 }
0x1336   : > { %v5532_v13 = vpop.f32.mrf.mxu1 }
0x1337   : > { %5964 = vpow2.f32 %v5001_v9  ;;  %v5000_v62 = vmul.f32 -1.442695, %v4499_v11  ;;  %v4514_v17 = vadd.f32 %v5532_v13, %v7220_v36 }
0x1338   : > { %v4508_v6 = vpop.f32.mrf.mxu1 }
0x1339   : > { %5966 = vpow2.f32 %v5000_v62  ;;  %v5003_v12 = vmul.f32 -1.442695, %v4514_v17  ;;  %v4509_v26 = vadd.f32 %v4508_v6, %v7220_v36 }
0x133a   : > { %v5535_v15 = vpop.f32.mrf.mxu1 }
0x133b   : > { %5968 = vpow2.f32 %v5003_v12  ;;  %v5002_v1 = vmul.f32 -1.442695, %v4509_v26  ;;  %v4524_v7 = vadd.f32 %v5535_v15, %v7220_v36 }
0x133c   : > { %v4518_v56 = vpop.f32.mrf.mxu1 }
0x133d   : > { %5970 = vpow2.f32 %v5002_v1  ;;  %v5005_v48 = vmul.f32 -1.442695, %v4524_v7  ;;  %v4519_v47 = vadd.f32 %v4518_v56, %v7220_v36 }
0x133f   : > { %5972 = vpow2.f32 %v5005_v48  ;;  %v5004_v42 = vmul.f32 -1.442695, %v4519_v47 }
0x1341   : > { %5974 = vpow2.f32 %v5004_v42 }
0x1344   : > { %v5965_v25 = vpop.eup %5964 }
0x1345   : > { %v4562_v30 = vadd.f32 1.0, %v5965_v25 }
0x1346   : > { %v5967_v2 = vpop.eup %5966 }
0x1347   : > { %5976 = vrcp.f32 %v4562_v30  ;;  %v4561_v18 = vadd.f32 1.0, %v5967_v2 }
0x1348   : > { %v5969_v59 = vpop.eup %5968 }
0x1349   : > { %5978 = vrcp.f32 %v4561_v18  ;;  %v4564_v57 = vadd.f32 1.0, %v5969_v59 }
0x134a   : > { %v5971_v34 = vpop.eup %5970 }
0x134b   : > { %5980 = vrcp.f32 %v4564_v57  ;;  %v4563_v60 = vadd.f32 1.0, %v5971_v34 }
0x134c   : > { %v5973_v16 = vpop.eup %5972 }
0x134d   : > { %5982 = vrcp.f32 %v4563_v60  ;;  %v4566_v53 = vadd.f32 1.0, %v5973_v16 }
0x134e   : > { %v5975_v43 = vpop.eup %5974 }
0x134f   : > { %5984 = vrcp.f32 %v4566_v53  ;;  %v4565_v54 = vadd.f32 1.0, %v5975_v43  ;;  %v4699_v53 = vpop.permute.xlu1 %4698 }
0x1350   : > { %v4701_v43 = vmul.f32 %v7019_v39, %v4699_v53 }
0x1351   : > { %5986 = vrcp.f32 %v4565_v54 }
0x1354   : > { %v5977_v32 = vpop.eup %5976 }
0x1355   : > { %v4586_v46 = vmul.f32 %v5977_v32, %v4504_v41 }
0x1356   : > { %v5979_v51 = vpop.eup %5978 }
0x1357   : > { %v4585_v61 = vmul.f32 %v5979_v51, %v4499_v11  ;;  %v4598_v58 = vmul.f32 %v4596_v49, %v4586_v46 }
0x1358   : > { %v5981_v21 = vpop.eup %5980 }
0x1359   : > { %v4588_v0 = vmul.f32 %v5981_v21, %v4514_v17  ;;  %v4608_v33 = vsel %vm497_vm4, %v4598_v58, 0.0  ;;  %v4597_v19 = vmul.f32 %v4596_v49, %v4585_v61 }
0x135a   : > { %v5983_v4 = vpop.eup %5982  ;;  %4609 = vadd.xlane.f32.xlu0 %v4608_v33 }
0x135b   : > { %v4587_v14 = vmul.f32 %v5983_v4, %v4509_v26  ;;  %v4605_v8 = vsel %vm497_vm4, %v4597_v19, 0.0  ;;  %v4600_v38 = vmul.f32 %v4596_v49, %v4588_v0 }
0x135c   : > { %v5985_v50 = vpop.eup %5984  ;;  %4606 = vadd.xlane.f32.xlu1 %v4605_v8 }
0x135d   : > { %v4590_v9 = vmul.f32 %v5985_v50, %v4524_v7  ;;  %v4614_v29 = vsel %vm497_vm4, %v4600_v38, 0.0  ;;  %v4599_v24 = vmul.f32 %v4596_v49, %v4587_v14 }
0x135e   : > { %v5987_v41 = vpop.eup %5986  ;;  %4615 = vadd.xlane.f32.xlu0 %v4614_v29 }
0x135f   : > { %v4589_v11 = vmul.f32 %v5987_v41, %v4519_v47  ;;  %v4611_v13 = vsel %vm497_vm4, %v4599_v24, 0.0  ;;  %v4602_v62 = vmul.f32 %v4596_v49, %v4590_v9 }
0x1361   : > { %v4620_v17 = vsel %vm497_vm4, %v4602_v62, 0.0  ;;  %v4601_v6 = vmul.f32 %v4596_v49, %v4589_v11 }
0x1362   : > { %4612 = vadd.xlane.f32.xlu0 %v4611_v13 }
0x1363   : > { %v4617_v1 = vsel %vm497_vm4, %v4601_v6, 0.0 }
0x1366   : > { %4621 = vadd.xlane.f32.xlu0 %v4620_v17 }
0x1367   : > { %v5538_v12 = vpop.f32.mrf.mxu1 }
0x1368   : > { %v4534_v26 = vadd.f32 %v5538_v12, %v7220_v36 }
0x1369   : > { %v4528_v15 = vpop.f32.mrf.mxu1 }
0x136a   : > { %v5007_v7 = vmul.f32 -1.442695, %v4534_v26  ;;  %v4529_v56 = vadd.f32 %v4528_v15, %v7220_v36  ;;  %4618 = vadd.xlane.f32.xlu0 %v4617_v1 }
0x136c   : > { %5988 = vpow2.f32 %v5007_v7  ;;  %v5006_v48 = vmul.f32 -1.442695, %v4529_v56 }
0x136e   : > { %5990 = vpow2.f32 %v5006_v48 }
0x1379   : > { %v5989_v47 = vpop.eup %5988 }
0x137a   : > { %v4568_v42 = vadd.f32 1.0, %v5989_v47 }
0x137b   : > { %v5991_v25 = vpop.eup %5990 }
0x137c   : > { %5992 = vrcp.f32 %v4568_v42  ;;  %v4567_v30 = vadd.f32 1.0, %v5991_v25 }
0x137e   : > { %5994 = vrcp.f32 %v4567_v30 }
0x1389   : > { %v5993_v2 = vpop.eup %5992 }
0x138a   : > { %v4592_v18 = vmul.f32 %v5993_v2, %v4534_v26 }
0x138b   : > { %v5995_v59 = vpop.eup %5994 }
0x138c   : > { %v4591_v57 = vmul.f32 %v5995_v59, %v4529_v56  ;;  %v4604_v34 = vmul.f32 %v4596_v49, %v4592_v18 }
0x138e   : > { %v4626_v60 = vsel %vm497_vm4, %v4604_v34, 0.0  ;;  %v4603_v16 = vmul.f32 %v4596_v49, %v4591_v57 }
0x138f   : > { %4627 = vadd.xlane.f32.xlu0 %v4626_v60 }
0x1390   : > { %v4623_v36 = vsel %vm497_vm4, %v4603_v16, 0.0 }
0x1393   : > { %4624 = vadd.xlane.f32.xlu0 %v4623_v36 }
0x13a9   : > { %4703 = vrot.lane.b32.xlu0 %v4701_v43, %s6074_s15  ;;  %s6080_s15 = smov 3  }
0x13e3   : > { %v4610_v54 = vpop.xlane.xlu0 %4609 }
0x13e4   : > { %v4630_v21 = vmul.f32 %v4610_v54, %v7075_v44 }
0x13e5   : > { %v4607_v51 = vpop.xlane.xlu1 %4606 }
0x13e6   : > { %v4629_v58 = vmul.f32 %v4607_v51, %v7064_v27  ;;  %v5009_v19 = vclamps-f32 %v4630_v21, 100.0 }
0x13e7   : > { %v4616_v32 = vpop.xlane.xlu0 %4615 }
0x13e8   : > { %v5008_v0 = vclamps-f32 %v4629_v58, 100.0  ;;  %v4632_v39 = vmul.f32 %v4616_v32, %v7092_v37  ;;  %v4654_v38 = vmul.f32 %v5009_v19, %v6462_v5 }
0x13ea   : > { %v4653_v14 = vmul.f32 %v5008_v0, %v6458_v40  ;;  %v5011_v9 = vclamps-f32 %v4632_v39, 100.0 }
0x13eb   : > { %v4613_v46 = vpop.xlane.xlu0 %4612 }
0x13ec   : > { %v4631_v49 = vmul.f32 %v4613_v46, %v7078_v20  ;;  %v4661_v27 = vsel %vm256_vm0, %v4653_v14, 0.0  ;;  %v4662_v20 = vsel %vm256_vm0, %v4654_v38, 0.0  ;;  %v4656_v40 = vmul.f32 %v5011_v9, %v7323_v22 }
0x13ed   : > { %v4663_v41 = vadd.f32 %v4662_v20, %v4661_v27 }
0x13ee   : > { %v5010_v4 = vclamps-f32 %v4631_v49, 100.0  ;;  %v4666_v13 = vsel %vm256_vm0, %v4656_v40, 0.0 }
0x13ef   : > { %v4622_v61 = vpop.xlane.xlu0 %4621 }
0x13f0   : > { %v4655_v50 = vmul.f32 %v5010_v4, %v6468_v45  ;;  %v4634_v24 = vmul.f32 %v4622_v61, %v7099_v3 }
0x13f2   : > { %v4664_v29 = vsel %vm256_vm0, %v4655_v50, 0.0  ;;  %v5013_v5 = vclamps-f32 %v4634_v24, 100.0 }
0x13f3   : > { %v4619_v33 = vpop.xlane.xlu0 %4618 }
0x13f4   : > { %v4633_v8 = vmul.f32 %v4619_v33, %v7072_v28  ;;  %v4665_v28 = vadd.f32 %v4664_v29, %v4663_v41  ;;  %v4658_v12 = vmul.f32 %v5013_v5, %v7327_v10 }
0x13f6   : > { %v5012_v44 = vclamps-f32 %v4633_v8, 100.0  ;;  %v4667_v17 = vadd.f32 %v4666_v13, %v4665_v28 }
0x13f8   : > { %v4657_v37 = vmul.f32 %v5012_v44, %v7325_v52  ;;  %v4670_v52 = vsel %vm256_vm0, %v4658_v12, 0.0 }
0x13fa   : > { %v4668_v62 = vsel %vm256_vm0, %v4657_v37, 0.0 }
0x13fb   : > { %v4669_v22 = vadd.f32 %v4668_v62, %v4667_v17 }
0x13fd   : > { %v4671_v7 = vadd.f32 %v4670_v52, %v4669_v22 }
0x1418   : > { %v4628_v11 = vpop.xlane.xlu0 %4627 }
0x1419   : > { %v4636_v45 = vmul.f32 %v4628_v11, %v7122_v35 }
0x141b   : > { %v5015_v26 = vclamps-f32 %v4636_v45, 100.0 }
0x141c   : > { %v4625_v6 = vpop.xlane.xlu0 %4624 }
0x141d   : > { %v4635_v3 = vmul.f32 %v4625_v6, %v7106_v23  ;;  %v4660_v1 = vmul.f32 %v5015_v26, %v7330_v55 }
0x141f   : > { %v5014_v15 = vclamps-f32 %v4635_v3, 100.0  ;;  %v4674_v47 = vsel %vm256_vm0, %v4660_v1, 0.0 }
0x1420   : > { %v4704_v10 = vpop.permute.xlu0 %4703 }
0x1421   : > { %v4659_v35 = vmul.f32 %v5014_v15, %v7329_v31 }
0x1423   : > { %v4672_v56 = vsel %vm256_vm0, %v4659_v35, 0.0 }
0x1424   : > { %v4673_v48 = vadd.f32 %v4672_v56, %v4671_v7 }
0x1426   : > { %v4675_v42 = vadd.f32 %v4674_v47, %v4673_v48 }
0x1428   : > { %v4706_v25 = vadd.f32 %v4704_v10, %v4675_v42 }
0x142a   : > { %4709 = vrot.lane.b32.xlu1 %v4706_v25, %s6080_s15  ;;  %v4707_v23 = vadd.f32 %v4706_v25, %v7052_v63 }
0x149c   : > { %v4710_v31 = vpop.permute.xlu1 %4709 }
0x149d   : > { %v4712_v55 = vsel %vm256_vm0, %v4707_v23, %v4710_v31 }
0x149e   : > { %4714 = vst.msk [vmem:[%s249_s19] sm:$0xff] %vm4713_vm6, %v4712_v55 }
0x149f PF: > { %s17_s18 = sadd.s32 1, %s6066_s18  }
0x14a0   : > { %p14_p2 = scmp.ge.s32.totalorder %s17_s18, 4  }
0x14a2   :  { %16 = sbr.rel (!%p14_p2) target bundleno = 2 (0x2), region = 98 }
0x14a7   :  { %4734 = vsyncpa [#allocation3], 1 }
0x14a8   :  { %4736 = vsyncpa [#allocation3 + $0x1], 1 }
0x14a9   :  { %4737 = vsyncpa [#allocation5], 1 }

</bundles_post_ra>
